<compile_context>
chip_gen: v7x
topology: tpu7x:2x2x1
jax: 0.10.0
libtpu: 0.0.40
codegen_flags: <defaults>
</compile_context>

<pallas_src>
import functools

import jax
import jax.numpy as jnp
from jax.experimental import pallas as pl
from jax.experimental.pallas import tpu as pltpu

GAMMA = 1.0
EPS_VAR = 1e-8
LANE = 128


# ----------------------------------------------------------------- helpers --
def _elu(h):
    # F.elu(alpha=1).  (exp lowers to a single EUP op; the unused branch's
    # exp value is simply discarded by the select.)
    return jnp.where(h > 0, h, jnp.exp(h) - 1.0)


def _relu(h):
    return jnp.maximum(h, 0.0)


def _round_up(x, m):
    return (x + m - 1) // m * m


def _pad2(a, rows, cols):
    pr, pc = rows - a.shape[0], cols - a.shape[1]
    if pr == 0 and pc == 0:
        return a
    return jnp.pad(a, ((0, pr), (0, pc)))


def _vmem_budget_and_limit():
    """Generation-aware VMEM sizing (64 MiB/TC on v7x, 128 MiB on v5e/v6e)."""
    cap = 64 * 1024 * 1024                 # v7x floor: safe default everywhere
    try:
        info = pltpu.get_tpu_info()
        cap = int(getattr(info, "vmem_capacity_bytes", cap) or cap)
    except Exception:
        pass
    limit = min(int(cap * 0.85), cap - 4 * 1024 * 1024)   # handed to Mosaic
    budget = int(limit * 0.80)                            # tile-chooser target
    return budget, limit


def _block_spec(shape, index_map, single_buffer=False):
    """BlockSpec; single_buffer=True keeps the block in ONE VMEM buffer (the
    block never changes across the grid, so double-buffering wastes VMEM)."""
    if single_buffer:
        return pl.BlockSpec(shape, index_map, pipeline_mode=pl.Buffered(1))
    return pl.BlockSpec(shape, index_map)


# ----------------------------------------------------------------- kernels --
def _prep1_kernel(x_ref, w1_ref, sm_ref, sv_ref):
    """K1: h = x @ W1; s_mean = elu(h)*att, s_var = relu(h)*att^2, att=exp(-g*relu(h))."""
    h = jnp.dot(x_ref[...], w1_ref[...], preferred_element_type=jnp.float32)
    mean = _elu(h)
    var = _relu(h)
    sm_ref[...] = (mean * jnp.exp(-GAMMA * var)).astype(sm_ref.dtype)
    sv_ref[...] = (var * jnp.exp(-2.0 * GAMMA * var)).astype(sv_ref.dtype)  # var*att^2


def _mid_kernel(am_ref, av_ref, sm_ref, sv_ref, wm_ref, wv_ref,
                tm_ref, tv_ref, accm_ref, accv_ref):
    """K2: accumulate adj @ s over the k axis; at the last k step apply
    act1=relu, the layer-2 linear and the attention weighting."""
    k = pl.program_id(1)

    @pl.when(k == 0)
    def _():
        accm_ref[...] = jnp.zeros_like(accm_ref)
        accv_ref[...] = jnp.zeros_like(accv_ref)

    # .astype is a no-op when the adjacency is already in the compute dtype
    # (bf16/f32 paths); it only does work on the optional fp8 adjacency path.
    accm_ref[...] += jnp.dot(am_ref[...].astype(sm_ref.dtype), sm_ref[...],
                             preferred_element_type=jnp.float32)
    accv_ref[...] += jnp.dot(av_ref[...].astype(sv_ref.dtype), sv_ref[...],
                             preferred_element_type=jnp.float32)

    @pl.when(k == pl.num_programs(1) - 1)
    def _():
        mean = _relu(accm_ref[...])                       # act1
        var = _relu(accv_ref[...])                        # act1
        hm = jnp.dot(mean, wm_ref[...], preferred_element_type=jnp.float32)
        hv = jnp.dot(var, wv_ref[...], preferred_element_type=jnp.float32)
        mean2 = _elu(hm)
        var2 = _relu(hv)
        tm_ref[...] = (mean2 * jnp.exp(-GAMMA * var2)).astype(tm_ref.dtype)
        tv_ref[...] = (var2 * jnp.exp(-2.0 * GAMMA * var2)).astype(tv_ref.dtype)


def _final_kernel(am_ref, av_ref, tm_ref, tv_ref, eps_ref, z_ref,
                  accm_ref, accv_ref):
    """K3: accumulate adj @ t over the k axis; finalize z = eps*sqrt(var+1e-8)+mean."""
    k = pl.program_id(1)

    @pl.when(k == 0)
    def _():
        accm_ref[...] = jnp.zeros_like(accm_ref)
        accv_ref[...] = jnp.zeros_like(accv_ref)

    accm_ref[...] += jnp.dot(am_ref[...].astype(tm_ref.dtype), tm_ref[...],
                             preferred_element_type=jnp.float32)
    accv_ref[...] += jnp.dot(av_ref[...].astype(tv_ref.dtype), tv_ref[...],
                             preferred_element_type=jnp.float32)

    @pl.when(k == pl.num_programs(1) - 1)
    def _():
        z_ref[...] = (eps_ref[...] * jnp.sqrt(accv_ref[...] + EPS_VAR)
                      + accm_ref[...])


def _fused_kernel(x_ref, am_ref, av_ref, w1_ref, wm_ref, wv_ref, eps_ref,
                  z_ref, *, compute_dtype):
    """Small-graph fast path: both NxN adjacencies stay VMEM-resident across
    BOTH propagation layers, so each is read from HBM exactly once."""
    am = am_ref[...].astype(compute_dtype)
    av = av_ref[...].astype(compute_dtype)
    h = jnp.dot(x_ref[...], w1_ref[...], preferred_element_type=jnp.float32)
    mean = _elu(h)
    var = _relu(h)
    sm = (mean * jnp.exp(-GAMMA * var)).astype(compute_dtype)
    sv = (var * jnp.exp(-2.0 * GAMMA * var)).astype(compute_dtype)
    mean = _relu(jnp.dot(am, sm, preferred_element_type=jnp.float32))   # act1
    var = _relu(jnp.dot(av, sv, preferred_element_type=jnp.float32))    # act1
    hm = jnp.dot(mean, wm_ref[...], preferred_element_type=jnp.float32)
    hv = jnp.dot(var, wv_ref[...], preferred_element_type=jnp.float32)
    mean2 = _elu(hm)
    var2 = _relu(hv)
    tm = (mean2 * jnp.exp(-GAMMA * var2)).astype(compute_dtype)
    tv = (var2 * jnp.exp(-2.0 * GAMMA * var2)).astype(compute_dtype)
    mean = jnp.dot(am, tm, preferred_element_type=jnp.float32)
    var = jnp.dot(av, tv, preferred_element_type=jnp.float32)
    z_ref[...] = eps_ref[...] * jnp.sqrt(var + EPS_VAR) + mean


# ------------------------------------------------------------ tile chooser --
def _choose_tiling(n, f_in, hid_pad, c_pad, adj_bytes, cbytes, budget):
    """Pick (tile_n, n_pad, tile_k) so the streamed+resident VMEM of the worst
    kernel (K1 / K2 / K3, pessimistically double-buffered) fits `budget`.
    Prefers the largest row tile, then the largest contraction tile (full-K
    when possible).  Row-tile count is kept >= 2 for v7x megacore."""
    feat = max(hid_pad, c_pad)

    def fits(tile_n, tile_k):
        # K2 / K3 (worst of the two; feature widths folded into `feat`):
        adj = 2 * 2 * tile_n * tile_k * adj_bytes       # adj_mean/adj_var stream
        fstream = 2 * 2 * tile_k * feat * cbytes        # s / t stream along k
        wts = 2 * 2 * hid_pad * c_pad * 4               # wm/wv (pessimistic x2)
        outs = 2 * 2 * tile_n * c_pad * 4               # outputs (+ eps in K3)
        scr = 2 * tile_n * feat * 4                     # f32 accumulators
        k23 = adj + fstream + wts + outs + scr
        # K1:
        k1 = (2 * tile_n * f_in * 4 + 2 * f_in * hid_pad * 4
              + 2 * 2 * tile_n * hid_pad * cbytes)
        return max(k23, k1) <= budget

    n8 = _round_up(n, 8)
    tile_cap = max(8, (n8 // 2) // 8 * 8)     # keep >= 2 row tiles when possible
    for tile_n in (512, 256, 128, 64, 32, 16, 8):
        if tile_n > tile_cap:
            continue
        n_full = _round_up(n, tile_n)
        if fits(tile_n, n_full):              # full contraction: single k step
            return tile_n, n_full, n_full
        for tile_k in (4096, 2048, 1024, 512, 256, 128):
            if tile_k >= n_full:
                continue
            if fits(tile_n, tile_k):
                return tile_n, _round_up(n, max(tile_n, tile_k)), tile_k
    # TODO(synk): graphs too large even for a 128-column adjacency strip would
    # also need K1's f_in contraction tiled; not required for typical GCN sizes.
    return 8, _round_up(n, 128), 128


# -------------------------------------------------------------- tiled path --
def _tiled_forward(x, adj_mean, adj_var, w1_p, wm_p, wv_p, eps,
                   n, c, f_in, hid_pad, c_pad, adj_dtype, cdt,
                   tile_n, n_pad, tile_k, vmem_limit, *, single_buffer_consts):
    rows = n_pad // tile_n
    kcols = n_pad // tile_k
    adj_bytes = jnp.dtype(adj_dtype).itemsize
    cbytes = jnp.dtype(cdt).itemsize
    single = single_buffer_consts

    x_p = _pad2(x.astype(jnp.float32), n_pad, f_in)
    am_p = _pad2(adj_mean, n_pad, n_pad).astype(adj_dtype)
    av_p = _pad2(adj_var, n_pad, n_pad).astype(adj_dtype)
    eps_p = _pad2(eps.astype(jnp.float32), n_pad, c_pad)

    params1 = pltpu.CompilerParams(dimension_semantics=("parallel",),
                                   vmem_limit_bytes=vmem_limit)
    params2 = pltpu.CompilerParams(dimension_semantics=("parallel", "arbitrary"),
                                   vmem_limit_bytes=vmem_limit)

    # --- K1: layer-1 linear + attention weighting (row-parallel) -------------
    s_mean, s_var = pl.pallas_call(
        _prep1_kernel,
        out_shape=(jax.ShapeDtypeStruct((n_pad, hid_pad), cdt),
                   jax.ShapeDtypeStruct((n_pad, hid_pad), cdt)),
        grid=(rows,),
        in_specs=[pl.BlockSpec((tile_n, f_in), lambda i: (i, 0)),
                  _block_spec((f_in, hid_pad), lambda i: (0, 0), single)],
        out_specs=(pl.BlockSpec((tile_n, hid_pad), lambda i: (i, 0)),
                   pl.BlockSpec((tile_n, hid_pad), lambda i: (i, 0))),
        compiler_params=params1,
        cost_estimate=pl.CostEstimate(
            flops=2 * n_pad * f_in * hid_pad,
            transcendentals=3 * n_pad * hid_pad,
            bytes_accessed=4 * n_pad * f_in + 4 * f_in * hid_pad
            + 2 * n_pad * hid_pad * cbytes),
    )(x_p, w1_p)

    # --- K2: propagate layer 1 (k-accumulated), act1, layer-2 + attention ----
    # Streamed adjacency tiles keep the default depth-2 buffering (DMA-bound;
    # deeper buffering would only eat VMEM that should go to bigger tiles).
    adj_spec = pl.BlockSpec((tile_n, tile_k), lambda i, k: (i, k))
    s_spec = _block_spec((tile_k, hid_pad), lambda i, k: (k, 0),
                         single and kcols == 1)
    w_spec = _block_spec((hid_pad, c_pad), lambda i, k: (0, 0), single)
    out2_spec = pl.BlockSpec((tile_n, c_pad), lambda i, k: (i, 0))

    t_mean, t_var = pl.pallas_call(
        _mid_kernel,
        out_shape=(jax.ShapeDtypeStruct((n_pad, c_pad), cdt),
                   jax.ShapeDtypeStruct((n_pad, c_pad), cdt)),
        grid=(rows, kcols),
        in_specs=[adj_spec, adj_spec, s_spec, s_spec, w_spec, w_spec],
        out_specs=(out2_spec, out2_spec),
        scratch_shapes=[pltpu.VMEM((tile_n, hid_pad), jnp.float32),
                        pltpu.VMEM((tile_n, hid_pad), jnp.float32)],
        compiler_params=params2,
        cost_estimate=pl.CostEstimate(
            flops=4 * n_pad * hid_pad * (n_pad + c_pad),
            transcendentals=3 * n_pad * c_pad,
            bytes_accessed=(2 * n_pad * n_pad * adj_bytes
                            + 2 * rows * n_pad * hid_pad * cbytes
                            + 2 * hid_pad * c_pad * 4
                            + 2 * n_pad * c_pad * cbytes)),
    )(am_p, av_p, s_mean, s_var, wm_p, wv_p)

    # --- K3: propagate layer 2 (k-accumulated) + reparameterization ----------
    t_spec = _block_spec((tile_k, c_pad), lambda i, k: (k, 0),
                         single and kcols == 1)
    eps_spec = pl.BlockSpec((tile_n, c_pad), lambda i, k: (i, 0))

    z_p = pl.pallas_call(
        _final_kernel,
        out_shape=jax.ShapeDtypeStruct((n_pad, c_pad), jnp.float32),
        grid=(rows, kcols),
        in_specs=[adj_spec, adj_spec, t_spec, t_spec, eps_spec],
        out_specs=pl.BlockSpec((tile_n, c_pad), lambda i, k: (i, 0)),
        scratch_shapes=[pltpu.VMEM((tile_n, c_pad), jnp.float32),
                        pltpu.VMEM((tile_n, c_pad), jnp.float32)],
        compiler_params=params2,
        cost_estimate=pl.CostEstimate(
            flops=4 * n_pad * n_pad * c_pad,
            transcendentals=n_pad * c_pad,
            bytes_accessed=(2 * n_pad * n_pad * adj_bytes
                            + 2 * rows * n_pad * c_pad * cbytes
                            + 2 * n_pad * c_pad * 4)),
    )(am_p, av_p, t_mean, t_var, eps_p)

    return z_p[:n, :c]


# ----------------------------------------------------------------- wrapper --
def robustgcn_forward(x, adj_mean, adj_var, w1, w_mean, w_var, eps, *,
                      adj_dtype=jnp.bfloat16, allow_fused=True,
                      vmem_budget=None):
    """RobustGCN forward (hids=[64], acts=['relu'], gamma=1.0, bias=False;
    the PyTorch forward never applies self.dropout).

    adj_dtype: storage/stream dtype of the two NxN adjacencies (the dominant
      HBM stream).  bf16 (default) ~halves kernel time vs f32 on v5e/v6e/v7x
      and hits the MXU natively with f32 accumulation.  f32 gives tight parity
      with an f32 reference.  jnp.float8_e4m3fn quarters the stream (v7x); the
      tiles are upcast to bf16 in-kernel.
      # TODO(synk): fp8/int8 adjacency with per-row scales for tighter accuracy.
    """
    n, f_in = x.shape
    hid = w1.shape[1]
    c = w_mean.shape[1]
    hid_pad = _round_up(hid, LANE)     # lane-dense K1 stores + full MXU columns
    c_pad = _round_up(c, LANE)         # lane-dense layer-2 / output stores
    adj_dtype = jnp.dtype(adj_dtype)
    cdt = jnp.float32 if adj_dtype == jnp.float32 else jnp.bfloat16
    adj_bytes = adj_dtype.itemsize
    cbytes = jnp.dtype(cdt).itemsize

    budget, limit = _vmem_budget_and_limit()
    if vmem_budget is not None:
        budget = int(vmem_budget)

    w1_p = _pad2(w1.astype(jnp.float32), f_in, hid_pad)
    wm_p = _pad2(w_mean.astype(jnp.float32), hid_pad, c_pad)
    wv_p = _pad2(w_var.astype(jnp.float32), hid_pad, c_pad)

    # --- small-graph fast path: adjacencies VMEM-resident across both layers -
    n8 = _round_up(n, 8)
    feat = max(hid_pad, c_pad)
    fused_bytes = (2 * n8 * n8 * adj_bytes + n8 * f_in * 4
                   + (f_in * hid_pad + 2 * hid_pad * c_pad) * 4
                   + 2 * n8 * c_pad * 4 + 6 * n8 * feat * 4)
    if allow_fused and n8 <= 2048 and fused_bytes <= budget // 2:
        x_p = _pad2(x.astype(jnp.float32), n8, f_in)
        am_p = _pad2(adj_mean, n8, n8).astype(adj_dtype)
        av_p = _pad2(adj_var, n8, n8).astype(adj_dtype)
        eps_p = _pad2(eps.astype(jnp.float32), n8, c_pad)
        z_p = pl.pallas_call(
            functools.partial(_fused_kernel, compute_dtype=cdt),
            out_shape=jax.ShapeDtypeStruct((n8, c_pad), jnp.float32),
            compiler_params=pltpu.CompilerParams(vmem_limit_bytes=limit),
        )(x_p, am_p, av_p, w1_p, wm_p, wv_p, eps_p)
        return z_p[:n, :c]

    # --- streaming path: row tiles x contraction tiles -----------------------
    tile_n, n_pad, tile_k = _choose_tiling(n, f_in, hid_pad, c_pad,
                                           adj_bytes, cbytes, budget)
    try:
        return _tiled_forward(x, adj_mean, adj_var, w1_p, wm_p, wv_p, eps,
                              n, c, f_in, hid_pad, c_pad, adj_dtype, cdt,
                              tile_n, n_pad, tile_k, limit,
                              single_buffer_consts=True)
    except Exception:
        # Fallback for JAX versions whose top-level pallas_call pipeline does
        # not accept pl.Buffered(...) on constant-index BlockSpecs.
        return _tiled_forward(x, adj_mean, adj_var, w1_p, wm_p, wv_p, eps,
                              n, c, f_in, hid_pad, c_pad, adj_dtype, cdt,
                              tile_n, n_pad, tile_k, limit,
                              single_buffer_consts=False)


# --------------------------------------------------------------- reference --
def robustgcn_reference(x, adj_mean, adj_var, w1, w_mean, w_var, eps):
    """Plain-JAX f32 reference (exp(-2g*v) is algebraically var*att^2)."""
    h = x @ w1
    mean, var = _elu(h), _relu(h)
    mean = adj_mean @ (mean * jnp.exp(-GAMMA * var))
    var = adj_var @ (var * jnp.exp(-2.0 * GAMMA * var))
    mean, var = _relu(mean), _relu(var)
    mean2 = _elu(mean @ w_mean)
    var2 = _relu(var @ w_var)
    mean = adj_mean @ (mean2 * jnp.exp(-GAMMA * var2))
    var = adj_var @ (var2 * jnp.exp(-2.0 * GAMMA * var2))
    return eps * jnp.sqrt(var + EPS_VAR) + mean


if __name__ == "__main__":
    key = jax.random.PRNGKey(0)
    N, F_IN, HID, C = 256, 96, 64, 10   # nodes, in_features, hids[0], classes

    k = jax.random.split(key, 6)
    x = jax.random.normal(k[0], (N, F_IN), jnp.float32)

    # Synthetic dense normalized adjacencies:
    #   adj_mean ~ D^-1/2 A D^-1/2,   adj_var ~ D^-1 A D^-1
    a = jax.random.uniform(k[1], (N, N), jnp.float32)
    a = (a + a.T) * 0.5 + jnp.eye(N, dtype=jnp.float32)
    deg = a.sum(-1, keepdims=True)
    adj_mean = a / jnp.sqrt(deg * deg.T)
    adj_var = a / (deg * deg.T)

    # Glorot-ish weights, laid out [in, out].
    w1 = jax.random.normal(k[2], (F_IN, HID), jnp.float32) * (2.0 / (F_IN + HID)) ** 0.5
    w_mean = jax.random.normal(k[3], (HID, C), jnp.float32) * (2.0 / (HID + C)) ** 0.5
    w_var = jax.random.normal(k[4], (HID, C), jnp.float32) * (2.0 / (HID + C)) ** 0.5

    # torch.randn_like(std) equivalent, sampled host-side and passed in.
    eps = jax.random.normal(k[5], (N, C), jnp.float32)

    z_ref = robustgcn_reference(x, adj_mean, adj_var, w1, w_mean, w_var, eps)

    # (a) default: bf16 adjacency, small graph -> fused VMEM-resident kernel.
    z_fused = jax.block_until_ready(
        robustgcn_forward(x, adj_mean, adj_var, w1, w_mean, w_var, eps))
    assert z_fused.shape == (N, C) and z_fused.dtype == jnp.float32
    assert jnp.allclose(z_fused, z_ref, atol=3e-2, rtol=3e-2), \
        "fused bf16 path mismatch vs. f32 reference"

    # (b) row-tiled streaming path (what large graphs take), bf16 adjacency.
    z_tiled = jax.block_until_ready(
        robustgcn_forward(x, adj_mean, adj_var, w1, w_mean, w_var, eps,
                          allow_fused=False))
    assert jnp.allclose(z_tiled, z_ref, atol=3e-2, rtol=3e-2), \
        "tiled bf16 path mismatch vs. f32 reference"

    # (c) f32 adjacency + tiny tile budget: exercises the contraction-axis
    #     (k-tiled) accumulator path; matches the f32 reference tightly.
    z_ktiled = jax.block_until_ready(
        robustgcn_forward(x, adj_mean, adj_var, w1, w_mean, w_var, eps,
                          adj_dtype=jnp.float32, allow_fused=False,
                          vmem_budget=1 << 20))
    assert jnp.allclose(z_ktiled, z_ref, atol=2e-2, rtol=2e-2), \
        "k-tiled f32 path mismatch vs. f32 reference"

    print("KERNEL_OK")
</pallas_src>

<mosaic_0001>
module attributes {stable_mosaic.version = 11 : i64} {
  func.func @_fused_kernel(%arg0: memref<256x96xf32, #tpu.memory_space<vmem>>, %arg1: memref<256x256xbf16, #tpu.memory_space<vmem>>, %arg2: memref<256x256xbf16, #tpu.memory_space<vmem>>, %arg3: memref<96x128xf32, #tpu.memory_space<vmem>>, %arg4: memref<128x128xf32, #tpu.memory_space<vmem>>, %arg5: memref<128x128xf32, #tpu.memory_space<vmem>>, %arg6: memref<256x128xf32, #tpu.memory_space<vmem>>, %arg7: memref<256x128xf32, #tpu.memory_space<vmem>>) attributes {dimension_semantics = [], scalar_prefetch = 0 : i64, scratch_operands = 0 : i64, tpu.core_type = #tpu.core_type<tc>} {
    %c0 = arith.constant 0 : index
    %c0_0 = arith.constant 0 : index
    %0 = vector.load %arg1[%c0, %c0_0] : memref<256x256xbf16, #tpu.memory_space<vmem>>, vector<256x256xbf16>
    %c0_1 = arith.constant 0 : index
    %c0_2 = arith.constant 0 : index
    %1 = vector.load %arg2[%c0_1, %c0_2] : memref<256x256xbf16, #tpu.memory_space<vmem>>, vector<256x256xbf16>
    %c0_3 = arith.constant 0 : index
    %c0_4 = arith.constant 0 : index
    %2 = vector.load %arg0[%c0_3, %c0_4] : memref<256x96xf32, #tpu.memory_space<vmem>>, vector<256x96xf32>
    %c0_5 = arith.constant 0 : index
    %c0_6 = arith.constant 0 : index
    %3 = vector.load %arg3[%c0_5, %c0_6] : memref<96x128xf32, #tpu.memory_space<vmem>>, vector<96x128xf32>
    %cst = arith.constant dense<0.000000e+00> : vector<256x128xf32>
    %4 = tpu.matmul %2, %3, %cst {dimension_numbers = #tpu.dot_dimension_numbers<[1], [0], [0], [1], [0, 0, 1, 1], [], []>} : vector<256x96xf32>, vector<96x128xf32>, vector<256x128xf32> -> vector<256x128xf32>
    %cst_7 = arith.constant 0.000000e+00 : f32
    %5 = vector.broadcast %cst_7 : f32 to vector<256x128xf32>
    %6 = arith.cmpf ogt, %4, %5 : vector<256x128xf32>
    %7 = math.exp %4 : vector<256x128xf32>
    %cst_8 = arith.constant 1.000000e+00 : f32
    %8 = vector.broadcast %cst_8 : f32 to vector<256x128xf32>
    %9 = arith.subf %7, %8 : vector<256x128xf32>
    %10 = arith.select %6, %4, %9 : vector<256x128xi1>, vector<256x128xf32>
    %cst_9 = arith.constant 0.000000e+00 : f32
    %11 = vector.broadcast %cst_9 : f32 to vector<256x128xf32>
    %12 = arith.maximumf %4, %11 : vector<256x128xf32>
    %cst_10 = arith.constant -1.000000e+00 : f32
    %13 = vector.broadcast %cst_10 : f32 to vector<256x128xf32>
    %14 = arith.mulf %13, %12 : vector<256x128xf32>
    %15 = math.exp %14 : vector<256x128xf32>
    %16 = arith.mulf %10, %15 : vector<256x128xf32>
    %17 = arith.truncf %16 : vector<256x128xf32> to vector<256x128xbf16>
    %cst_11 = arith.constant -2.000000e+00 : f32
    %18 = vector.broadcast %cst_11 : f32 to vector<256x128xf32>
    %19 = arith.mulf %18, %12 : vector<256x128xf32>
    %20 = math.exp %19 : vector<256x128xf32>
    %21 = arith.mulf %12, %20 : vector<256x128xf32>
    %22 = arith.truncf %21 : vector<256x128xf32> to vector<256x128xbf16>
    %cst_12 = arith.constant dense<0.000000e+00> : vector<256x128xf32>
    %23 = tpu.matmul %0, %17, %cst_12 {dimension_numbers = #tpu.dot_dimension_numbers<[1], [0], [0], [1], [0, 0, 1, 1], [], []>} : vector<256x256xbf16>, vector<256x128xbf16>, vector<256x128xf32> -> vector<256x128xf32>
    %cst_13 = arith.constant 0.000000e+00 : f32
    %24 = vector.broadcast %cst_13 : f32 to vector<256x128xf32>
    %25 = arith.maximumf %23, %24 : vector<256x128xf32>
    %cst_14 = arith.constant dense<0.000000e+00> : vector<256x128xf32>
    %26 = tpu.matmul %1, %22, %cst_14 {dimension_numbers = #tpu.dot_dimension_numbers<[1], [0], [0], [1], [0, 0, 1, 1], [], []>} : vector<256x256xbf16>, vector<256x128xbf16>, vector<256x128xf32> -> vector<256x128xf32>
    %cst_15 = arith.constant 0.000000e+00 : f32
    %27 = vector.broadcast %cst_15 : f32 to vector<256x128xf32>
    %28 = arith.maximumf %26, %27 : vector<256x128xf32>
    %c0_16 = arith.constant 0 : index
    %c0_17 = arith.constant 0 : index
    %29 = vector.load %arg4[%c0_16, %c0_17] : memref<128x128xf32, #tpu.memory_space<vmem>>, vector<128x128xf32>
    %cst_18 = arith.constant dense<0.000000e+00> : vector<256x128xf32>
    %30 = tpu.matmul %25, %29, %cst_18 {dimension_numbers = #tpu.dot_dimension_numbers<[1], [0], [0], [1], [0, 0, 1, 1], [], []>} : vector<256x128xf32>, vector<128x128xf32>, vector<256x128xf32> -> vector<256x128xf32>
    %c0_19 = arith.constant 0 : index
    %c0_20 = arith.constant 0 : index
    %31 = vector.load %arg5[%c0_19, %c0_20] : memref<128x128xf32, #tpu.memory_space<vmem>>, vector<128x128xf32>
    %cst_21 = arith.constant dense<0.000000e+00> : vector<256x128xf32>
    %32 = tpu.matmul %28, %31, %cst_21 {dimension_numbers = #tpu.dot_dimension_numbers<[1], [0], [0], [1], [0, 0, 1, 1], [], []>} : vector<256x128xf32>, vector<128x128xf32>, vector<256x128xf32> -> vector<256x128xf32>
    %cst_22 = arith.constant 0.000000e+00 : f32
    %33 = vector.broadcast %cst_22 : f32 to vector<256x128xf32>
    %34 = arith.cmpf ogt, %30, %33 : vector<256x128xf32>
    %35 = math.exp %30 : vector<256x128xf32>
    %cst_23 = arith.constant 1.000000e+00 : f32
    %36 = vector.broadcast %cst_23 : f32 to vector<256x128xf32>
    %37 = arith.subf %35, %36 : vector<256x128xf32>
    %38 = arith.select %34, %30, %37 : vector<256x128xi1>, vector<256x128xf32>
    %cst_24 = arith.constant 0.000000e+00 : f32
    %39 = vector.broadcast %cst_24 : f32 to vector<256x128xf32>
    %40 = arith.maximumf %32, %39 : vector<256x128xf32>
    %cst_25 = arith.constant -1.000000e+00 : f32
    %41 = vector.broadcast %cst_25 : f32 to vector<256x128xf32>
    %42 = arith.mulf %41, %40 : vector<256x128xf32>
    %43 = math.exp %42 : vector<256x128xf32>
    %44 = arith.mulf %38, %43 : vector<256x128xf32>
    %45 = arith.truncf %44 : vector<256x128xf32> to vector<256x128xbf16>
    %cst_26 = arith.constant -2.000000e+00 : f32
    %46 = vector.broadcast %cst_26 : f32 to vector<256x128xf32>
    %47 = arith.mulf %46, %40 : vector<256x128xf32>
    %48 = math.exp %47 : vector<256x128xf32>
    %49 = arith.mulf %40, %48 : vector<256x128xf32>
    %50 = arith.truncf %49 : vector<256x128xf32> to vector<256x128xbf16>
    %cst_27 = arith.constant dense<0.000000e+00> : vector<256x128xf32>
    %51 = tpu.matmul %0, %45, %cst_27 {dimension_numbers = #tpu.dot_dimension_numbers<[1], [0], [0], [1], [0, 0, 1, 1], [], []>} : vector<256x256xbf16>, vector<256x128xbf16>, vector<256x128xf32> -> vector<256x128xf32>
    %cst_28 = arith.constant dense<0.000000e+00> : vector<256x128xf32>
    %52 = tpu.matmul %1, %50, %cst_28 {dimension_numbers = #tpu.dot_dimension_numbers<[1], [0], [0], [1], [0, 0, 1, 1], [], []>} : vector<256x256xbf16>, vector<256x128xbf16>, vector<256x128xf32> -> vector<256x128xf32>
    %c0_29 = arith.constant 0 : index
    %c0_30 = arith.constant 0 : index
    %53 = vector.load %arg6[%c0_29, %c0_30] : memref<256x128xf32, #tpu.memory_space<vmem>>, vector<256x128xf32>
    %cst_31 = arith.constant 9.99999993E-9 : f32
    %54 = vector.broadcast %cst_31 : f32 to vector<256x128xf32>
    %55 = arith.addf %52, %54 : vector<256x128xf32>
    %56 = math.sqrt %55 : vector<256x128xf32>
    %57 = arith.mulf %53, %56 : vector<256x128xf32>
    %58 = arith.addf %57, %51 : vector<256x128xf32>
    %c0_32 = arith.constant 0 : index
    %c0_33 = arith.constant 0 : index
    %59 = vector.load %arg7[%c0_32, %c0_33] : memref<256x128xf32, #tpu.memory_space<vmem>>, vector<256x128xf32>
    tpu.vector_store %arg7[%c0_32, %c0_33], %58 {strides = array<i32>} : memref<256x128xf32, #tpu.memory_space<vmem>>, vector<256x128xf32>,
    return
  }
}

</mosaic_0001>

<bundles_post_ra>
// kernel: tpu_custom_call.1
= control target key start
LH: loop header
LB: loop body
LE: loop exit
PB: predicated region body
PF: predicated region fallthrough
CT: control target
= control target key end

     0   :  { %12 = vsyncpa [#allocation3], 0  ;;  %s7158_s0 = inlined_call_operand.vmem [shape: f32[256,96], index: 0, kind: input, shape index: {}]   ;;  %s7159_s1 = inlined_call_operand.vmem [shape: bf16[256,256], index: 1, kind: input, shape index: {}]   ;;  %s7160_s2 = inlined_call_operand.hbm [shape: bf16[256,256], index: 2, kind: input, shape index: {}]   ;;  %s7161_s3 = inlined_call_operand.hbm [shape: f32[96,128], index: 3, kind: input, shape index: {}]   ;;  %s7162_s4 = inlined_call_operand.vmem [shape: f32[128,128], index: 4, kind: input, shape index: {}]   ;;  %s7163_s5 = inlined_call_operand.hbm [shape: f32[128,128], index: 5, kind: input, shape index: {}]   ;;  %s7164_s6 = inlined_call_operand.hbm [shape: f32[256,128], index: 6, kind: input, shape index: {}]   ;;  %s7165_s7 = inlined_call_operand.hbm [shape: f32[256,128], index: 7, kind: output, shape index: {}]  }
   0x1   :  { %13 = vsyncpa [#allocation6], 0 }
   0x2   :  { %14 = vsyncpa [#allocation9], 0 }
   0x3   :  { %15 = vsyncpa [#allocation4], 0  ;;  %s5167_s24 = smov [#allocation5]   ;;  %s5168_s26 = smov [#allocation2]  }
   0x4   :  { %s37_s25 = sshll.u32 %s5167_s24, 4  ;;  %s25_s27 = sshll.u32 %s5168_s26, 4  ;;  %s38_s25 = int_to_ptr.vmem [resolvable:$true] %s37_s25  ;;  %s5214_s27 = int_to_ptr.vmem [resolvable:$true] %s25_s27 }
   0x5   :  { %s5049_s30 = scalar_lea.hbm %s7161_s3, 1536 }
   0x6   :  { %p5050_p0 = scmp.ne.s32.totalorder %s7161_s3, %s5049_s30  ;;  %p5053_p1 = scmp.lt.u32.totalorder %s5049_s30, %s7161_s3 }
   0x8   :  { %p5055_p2 = pnand %p5053_p1, %p5050_p0 }
   0xa   :  { %5058 = shalt.err (!%p5055_p2)
}
   0xb   :  { %s5059_s12 = scalar_lea.vmem %s38_s25, 1536  ;;  %p5064_p4 = scmp.lt.s32.totalorder %s38_s25, %s38_s25 }
   0xc   :  { %p5060_p3 = scmp.ne.s32.totalorder %s38_s25, %s5059_s12  ;;  %p5065_p5 = scmp.lt.s32.totalorder %s5059_s12, %s5059_s12 }
   0xe   :  { %p5066_p6 = por %p5065_p5, %p5064_p4 }
  0x10   :  { %p5067_p7 = pnand %p5066_p6, %p5060_p3 }
  0x12   :  { %5070 = shalt.err (!%p5067_p7)
}
  0x13   :  { %s5169_s13 = smov 128   ;;  %s5170_s14 = smov 8  }
  0x14   :  { %43 = dma.hbm_to_vmem [thread:$0]  %s7161_s3, 1536, %s38_s25, [#allocation6], %s5169_s13, %s5169_s13, %s5170_s14  }
  0x15   :  { %s5071_s19 = scalar_lea.hbm %s7160_s2, 4096 }
  0x16   :  { %p5072_p8 = scmp.ne.s32.totalorder %s7160_s2, %s5071_s19  ;;  %p5075_p9 = scmp.lt.u32.totalorder %s5071_s19, %s7160_s2 }
  0x18   :  { %p5077_p10 = pnand %p5075_p9, %p5072_p8 }
  0x1a   :  { %5080 = shalt.err (!%p5077_p10)
}
  0x1b   :  { %s5081_s24 = scalar_lea.vmem %s5214_s27, 4096  ;;  %p5086_p12 = scmp.lt.s32.totalorder %s5214_s27, %s5214_s27 }
  0x1c   :  { %p5082_p11 = scmp.ne.s32.totalorder %s5214_s27, %s5081_s24  ;;  %p5087_p13 = scmp.lt.s32.totalorder %s5081_s24, %s5081_s24 }
  0x1e   :  { %p5088_p0 = por %p5087_p13, %p5086_p12 }
  0x20   :  { %p5089_p1 = pnand %p5088_p0, %p5082_p11 }
  0x22   :  { %5092 = shalt.err (!%p5089_p1)
}
  0x23   :  { %31 = dma.hbm_to_vmem [thread:$0]  %s7160_s2, 4096, %s5214_s27, [#allocation3], %s5169_s13, %s5169_s13, %s5170_s14  }
  0x24   :  { %s5171_s26 = smov [#allocation7]   ;;  %s5172_s29 = smov [#allocation8]  }
  0x25   :  { %s51_s28 = sshll.u32 %s5171_s26, 4  ;;  %s63_s30 = sshll.u32 %s5172_s29, 4  ;;  %s52_s28 = int_to_ptr.vmem [resolvable:$true] %s51_s28  ;;  %s5251_s30 = int_to_ptr.vmem [resolvable:$true] %s63_s30 }
  0x26   :  { %s5093_s10 = scalar_lea.hbm %s7163_s5, 2048 }
  0x27   :  { %p5094_p2 = scmp.ne.s32.totalorder %s7163_s5, %s5093_s10  ;;  %p5097_p3 = scmp.lt.u32.totalorder %s5093_s10, %s7163_s5 }
  0x29   :  { %p5099_p4 = pnand %p5097_p3, %p5094_p2 }
  0x2b   :  { %5102 = shalt.err (!%p5099_p4)
}
  0x2c   :  { %s5103_s2 = scalar_lea.vmem %s52_s28, 2048  ;;  %p5108_p6 = scmp.lt.s32.totalorder %s52_s28, %s52_s28 }
  0x2d   :  { %p5104_p5 = scmp.ne.s32.totalorder %s52_s28, %s5103_s2  ;;  %p5109_p7 = scmp.lt.s32.totalorder %s5103_s2, %s5103_s2 }
  0x2f   :  { %p5110_p8 = por %p5109_p7, %p5108_p6 }
  0x31   :  { %p5111_p9 = pnand %p5110_p8, %p5104_p5 }
  0x33   :  { %5114 = shalt.err (!%p5111_p9)
}
  0x34   :  { %57 = dma.hbm_to_vmem [thread:$0]  %s7163_s5, 2048, %s52_s28, [#allocation6], %s5169_s13, %s5169_s13, %s5170_s14  }
  0x35   :  { %s5115_s20 = scalar_lea.hbm %s7164_s6, 4096 }
  0x36   :  { %p5116_p10 = scmp.ne.s32.totalorder %s7164_s6, %s5115_s20  ;;  %p5119_p11 = scmp.lt.u32.totalorder %s5115_s20, %s7164_s6 }
  0x38   :  { %p5121_p12 = pnand %p5119_p11, %p5116_p10 }
  0x3a   :  { %5124 = shalt.err (!%p5121_p12)
}
  0x3b   :  { %s5125_s3 = scalar_lea.vmem %s5251_s30, 4096  ;;  %p5130_p0 = scmp.lt.s32.totalorder %s5251_s30, %s5251_s30 }
  0x3c   :  { %p5126_p13 = scmp.ne.s32.totalorder %s5251_s30, %s5125_s3  ;;  %p5131_p1 = scmp.lt.s32.totalorder %s5125_s3, %s5125_s3 }
  0x3e   :  { %p5132_p2 = por %p5131_p1, %p5130_p0 }
  0x40   :  { %p5133_p3 = pnand %p5132_p2, %p5126_p13 }
  0x42   :  { %5136 = shalt.err (!%p5133_p3)
}
  0x43   :  { %69 = dma.hbm_to_vmem [thread:$0]  %s7164_s6, 4096, %s5251_s30, [#allocation9], %s5169_s13, %s5169_s13, %s5170_s14  }
  0x44   :  { %5159 = dma.done.wait [#allocation3], 4096  }
  0x45   :  { %5160 = vsyncadd [#allocation3], 4294963200 }
  0x46   :  { %5161 = dma.done.wait [#allocation6], 3584  }
  0x47   :  { %5162 = vsyncadd [#allocation6], 4294963712 }
  0x48   :  { %5163 = dma.done.wait [#allocation9], 4096  }
  0x49   :  { %5164 = vsyncadd [#allocation9], 4294963200  ;;  %v179_v0 = vld [vmem:[#allocation5] sm:$0xff]  ;;  %v180_v1 = vld [vmem:[#allocation5 + $0x8] sm:$0xff]  ;;  %vm191_vm0 = vcmask 785408  }
  0x4a   :  { %v181_v2 = vld [vmem:[#allocation5 + $0x10] sm:$0xff]  ;;  %v4334_v3 = vpack.c.bf16 %v180_v1, %v179_v0  ;;  %v182_v4 = vld [vmem:[#allocation5 + $0x18] sm:$0xff]  ;;  %v183_v6 = vld [vmem:[#allocation5 + $0x20] sm:$0xff] }
  0x4b   :  { %v4338_v5 = vpack.c.bf16 %v182_v4, %v181_v2  ;;  %v184_v7 = vld [vmem:[#allocation5 + $0x28] sm:$0xff]  ;;  %v147_v8 = vld [vmem:[%s7158_s0] sm:$0xff]  ;;  %v185_v11 = vld [vmem:[#allocation5 + $0x30] sm:$0xff] }
  0x4c   :  { %4335 = vmatprep.subr.bf16.mxu0 %v4334_v3  ;;  %4422 = vmatprep.subr.bf16.mxu1 %v4334_v3  ;;  %v163_v9 = vld [vmem:[%s7158_s0 + $0x80] sm:$0xff]  ;;  %v4342_v10 = vpack.c.bf16 %v184_v7, %v183_v6  ;;  %v186_v12 = vld [vmem:[#allocation5 + $0x38] sm:$0xff]  ;;  %v188_v15 = vld [vmem:[#allocation5 + $0x48] sm:$0xff] }
  0x4d   :  { %4337 = vmatpush3.bf16.msra.mxu0 %v4334_v3  ;;  %4428 = vmatpush3.bf16.msra.mxu1 %v4334_v3  ;;  %v4346_v13 = vpack.c.bf16 %v186_v12, %v185_v11  ;;  %v187_v14 = vld [vmem:[#allocation5 + $0x40] sm:$0xff]  ;;  %v189_v17 = vld [vmem:[#allocation5 + $0x50] sm:$0xff]  ;;  %v190_v18 = vld [vmem:[#allocation5 + $0x58] sm:$0xff] }
  0x4e   :  { %4339 = vmatprep.subr.bf16.mxu0 %v4338_v5  ;;  %4423 = vmatprep.subr.bf16.mxu1 %v4338_v5  ;;  %v4350_v16 = vpack.c.bf16 %v188_v15, %v187_v14  ;;  %v4354_v19 = vpack.c.bf16 %v190_v18, %v189_v17  ;;  %v148_v20 = vld [vmem:[%s7158_s0 + $0x8] sm:$0xff]  ;;  %v149_v22 = vld [vmem:[%s7158_s0 + $0x10] sm:$0xff]  ;;  %v150_v24 = vld [vmem:[%s7158_s0 + $0x18] sm:$0xff] }
  0x4f   :  { %4126 = vmatprep.mubr.msk.f32.mxu0 %vm191_vm0, %v147_v8  ;;  %4150 = vmatprep.mubr.msk.f32.mxu1 %vm191_vm0, %v163_v9  ;;  %v164_v21 = vld [vmem:[%s7158_s0 + $0x88] sm:$0xff]  ;;  %v165_v23 = vld [vmem:[%s7158_s0 + $0x90] sm:$0xff]  ;;  %v166_v25 = vld [vmem:[%s7158_s0 + $0x98] sm:$0xff] }
  0x50   :  { %v151_v26 = vld [vmem:[%s7158_s0 + $0x20] sm:$0xff]  ;;  %v152_v28 = vld [vmem:[%s7158_s0 + $0x28] sm:$0xff]  ;;  %v153_v30 = vld [vmem:[%s7158_s0 + $0x30] sm:$0xff] }
  0x51   :  { %4341 = vmatpush3.bf16.msra.mxu0 %v4338_v5  ;;  %4429 = vmatpush3.bf16.msra.mxu1 %v4338_v5  ;;  %v167_v27 = vld [vmem:[%s7158_s0 + $0xa0] sm:$0xff]  ;;  %v168_v29 = vld [vmem:[%s7158_s0 + $0xa8] sm:$0xff]  ;;  %v169_v31 = vld [vmem:[%s7158_s0 + $0xb0] sm:$0xff] }
  0x52   :  { %4343 = vmatprep.subr.bf16.mxu0 %v4342_v10  ;;  %4424 = vmatprep.subr.bf16.mxu1 %v4342_v10  ;;  %v154_v32 = vld [vmem:[%s7158_s0 + $0x38] sm:$0xff]  ;;  %v155_v34 = vld [vmem:[%s7158_s0 + $0x40] sm:$0xff]  ;;  %v156_v36 = vld [vmem:[%s7158_s0 + $0x48] sm:$0xff] }
  0x53   :  { %v170_v33 = vld [vmem:[%s7158_s0 + $0xb8] sm:$0xff]  ;;  %v171_v35 = vld [vmem:[%s7158_s0 + $0xc0] sm:$0xff]  ;;  %v172_v37 = vld [vmem:[%s7158_s0 + $0xc8] sm:$0xff] }
  0x54   :  { %v157_v38 = vld [vmem:[%s7158_s0 + $0x50] sm:$0xff]  ;;  %v158_v40 = vld [vmem:[%s7158_s0 + $0x58] sm:$0xff]  ;;  %v159_v42 = vld [vmem:[%s7158_s0 + $0x60] sm:$0xff] }
  0x55   :  { %4345 = vmatpush3.bf16.msra.mxu0 %v4342_v10  ;;  %4430 = vmatpush3.bf16.msra.mxu1 %v4342_v10  ;;  %v173_v39 = vld [vmem:[%s7158_s0 + $0xd0] sm:$0xff]  ;;  %v174_v41 = vld [vmem:[%s7158_s0 + $0xd8] sm:$0xff]  ;;  %v175_v43 = vld [vmem:[%s7158_s0 + $0xe0] sm:$0xff] }
  0x56   :  { %4347 = vmatprep.subr.bf16.mxu0 %v4346_v13  ;;  %4425 = vmatprep.subr.bf16.mxu1 %v4346_v13  ;;  %v160_v44 = vld [vmem:[%s7158_s0 + $0x68] sm:$0xff]  ;;  %v161_v46 = vld [vmem:[%s7158_s0 + $0x70] sm:$0xff]  ;;  %v162_v48 = vld [vmem:[%s7158_s0 + $0x78] sm:$0xff] }
  0x57   :  { %v176_v45 = vld [vmem:[%s7158_s0 + $0xe8] sm:$0xff]  ;;  %v177_v47 = vld [vmem:[%s7158_s0 + $0xf0] sm:$0xff]  ;;  %v178_v49 = vld [vmem:[%s7158_s0 + $0xf8] sm:$0xff] }
  0x59   :  { %4349 = vmatpush3.bf16.msra.mxu0 %v4346_v13  ;;  %4431 = vmatpush3.bf16.msra.mxu1 %v4346_v13 }
  0x5a   :  { %4351 = vmatprep.subr.bf16.mxu0 %v4350_v16  ;;  %4426 = vmatprep.subr.bf16.mxu1 %v4350_v16 }
  0x5d   :  { %4353 = vmatpush3.bf16.msra.mxu0 %v4350_v16  ;;  %4432 = vmatpush3.bf16.msra.mxu1 %v4350_v16 }
  0x5e   :  { %4355 = vmatprep.subr.bf16.mxu0 %v4354_v19  ;;  %4427 = vmatprep.subr.bf16.mxu1 %v4354_v19 }
  0x61   :  { %4357 = vmatpush3.bf16.msra.mxu0 %v4354_v19  ;;  %4433 = vmatpush3.bf16.msra.mxu1 %v4354_v19 }
  0x64   :  { %4127 = vmatmul.mubr.msk.f32.vlgmr.msra.gmra.mrb[0].mxu0 %vm191_vm0, %v148_v20  ;;  %4151 = vmatmul.mubr.msk.f32.vlgmr.msra.gmra.mrb[0].mxu1 %vm191_vm0, %v164_v21 }
  0x65   :  { %4129 = vmatprep.mubr.msk.f32.mxu0 %vm191_vm0, %v149_v22  ;;  %4153 = vmatprep.mubr.msk.f32.mxu1 %vm191_vm0, %v165_v23 }
  0x68   :  { %4130 = vmatmul.mubr.msk.f32.gmra.mrb[2].mxu0 %vm191_vm0, %v150_v24  ;;  %4154 = vmatmul.mubr.msk.f32.gmra.mrb[2].mxu1 %vm191_vm0, %v166_v25  ;;  %v4443_v25 = vld [vmem:[#allocation2 + $0x4] ss:$8 sps:$4 sm:$0xff]  }
  0x69   :  { %4132 = vmatprep.mubr.msk.f32.mxu0 %vm191_vm0, %v151_v26  ;;  %4156 = vmatprep.mubr.msk.f32.mxu1 %vm191_vm0, %v167_v27 }
  0x6c   :  { %4133 = vmatmul.mubr.msk.f32.gmra.mrb[4].mxu0 %vm191_vm0, %v152_v28  ;;  %4157 = vmatmul.mubr.msk.f32.gmra.mrb[4].mxu1 %vm191_vm0, %v168_v29 }
  0x6d   :  { %4135 = vmatprep.mubr.msk.f32.mxu0 %vm191_vm0, %v153_v30  ;;  %4159 = vmatprep.mubr.msk.f32.mxu1 %vm191_vm0, %v169_v31 }
  0x70   :  { %4136 = vmatmul.mubr.msk.f32.gmra.mrb[6].mxu0 %vm191_vm0, %v154_v32  ;;  %4160 = vmatmul.mubr.msk.f32.gmra.mrb[6].mxu1 %vm191_vm0, %v170_v33 }
  0x71   :  { %4138 = vmatprep.mubr.msk.f32.mxu0 %vm191_vm0, %v155_v34  ;;  %4162 = vmatprep.mubr.msk.f32.mxu1 %vm191_vm0, %v171_v35 }
  0x74   :  { %4139 = vmatmul.mubr.msk.f32.gmra.mrb[8].mxu0 %vm191_vm0, %v156_v36  ;;  %4163 = vmatmul.mubr.msk.f32.gmra.mrb[8].mxu1 %vm191_vm0, %v172_v37 }
  0x75   :  { %4141 = vmatprep.mubr.msk.f32.mxu0 %vm191_vm0, %v157_v38  ;;  %4165 = vmatprep.mubr.msk.f32.mxu1 %vm191_vm0, %v173_v39  ;;  %v4446_v38 = vld [vmem:[%s7159_s1 + $0x4] ss:$8 sps:$4 sm:$0xff]  }
  0x78   :  { %4142 = vmatmul.mubr.msk.f32.gmra.mrb[10].mxu0 %vm191_vm0, %v158_v40  ;;  %4166 = vmatmul.mubr.msk.f32.gmra.mrb[10].mxu1 %vm191_vm0, %v174_v41 }
  0x79   :  { %4144 = vmatprep.mubr.msk.f32.mxu0 %vm191_vm0, %v159_v42  ;;  %4168 = vmatprep.mubr.msk.f32.mxu1 %vm191_vm0, %v175_v43 }
  0x7c   :  { %4145 = vmatmul.mubr.msk.f32.gmra.mrb[12].mxu0 %vm191_vm0, %v160_v44  ;;  %4169 = vmatmul.mubr.msk.f32.gmra.mrb[12].mxu1 %vm191_vm0, %v176_v45 }
  0x7d   :  { %4147 = vmatprep.mubr.msk.f32.mxu0 %vm191_vm0, %v161_v46  ;;  %4171 = vmatprep.mubr.msk.f32.mxu1 %vm191_vm0, %v177_v47 }
  0x80   :  { %4148 = vmatmul.mubr.msk.f32.gmra.mrb[14].mxu0 %vm191_vm0, %v162_v48  ;;  %4172 = vmatmul.mubr.msk.f32.gmra.mrb[14].mxu1 %vm191_vm0, %v178_v49 }
  0x81   :  { %1538 = vmatprep.mubr.bf16.mxu0 %v4443_v25  ;;  %1185 = vmatprep.mubr.bf16.mxu1 %v4446_v38 }
 0x137   :  { %v5416_v50 = vpop.f32.mrb[0].mxu0  ;;  %v5418_v51 = vpop.f32.mrb[0].mxu1 }
 0x138   :  { %v547_v52 = vmul.f32 1.442695, %v5416_v50  ;;  %v5422_v53 = vmax.f32 %v5416_v50, 0.0  ;;  %v5424_v54 = vpop.f32.mrb[1].mxu0  ;;  %v579_v55 = vmul.f32 1.442695, %v5418_v51 }
 0x139   :  { %v5428_v56 = vmax.f32 %v5418_v51, 0.0  ;;  %v545_v59 = vmul.f32 1.442695, %v5424_v54  ;;  %v5434_v60 = vmax.f32 %v5424_v54, 0.0  ;;  %v5436_v61 = vpop.f32.mrb[1].mxu1  ;;  %vm514_vm1 = vcmp.gt.f32.partialorder %v5416_v50, 0.0 }
 0x13a   :  { %v706_v57 = vmul.f32 -1.0, %v5422_v53  ;;  %v850_v58 = vmul.f32 -2.0, %v5422_v53  ;;  %4537 = vpow2.f32 %v547_v52  ;;  %v5449_v8 = vmax.f32 %v5436_v61, 0.0 }
 0x13b   :  { %v722_v62 = vmul.f32 -1.0, %v5428_v56  ;;  %v866_v63 = vmul.f32 -2.0, %v5428_v56  ;;  %v5440_v0 = vpop.f32.mrb[2].mxu0  ;;  %v5442_v1 = vpop.f32.mrb[2].mxu1  ;;  %v705_v4 = vmul.f32 -1.0, %v5434_v60  ;;  %4539 = vpow2.f32 %v579_v55 }
 0x13c   :  { %v739_v2 = vmul.f32 1.442695, %v706_v57  ;;  %v883_v3 = vmul.f32 1.442695, %v850_v58  ;;  %v5445_v5 = vpop.f32.mrb[3].mxu0  ;;  %v849_v7 = vmul.f32 -2.0, %v5434_v60  ;;  %4541 = vpow2.f32 %v545_v59 }
 0x13d   :  { %v771_v6 = vmul.f32 1.442695, %v722_v62  ;;  %v915_v9 = vmul.f32 1.442695, %v866_v63  ;;  %v5451_v10 = vpop.f32.mrb[3].mxu1  ;;  %v721_v12 = vmul.f32 -1.0, %v5449_v8 }
 0x13e   :  { %4543 = vpow2.f32 %v739_v2  ;;  %v737_v11 = vmul.f32 1.442695, %v705_v4  ;;  %v865_v13 = vmul.f32 -2.0, %v5449_v8  ;;  %v881_v16 = vmul.f32 1.442695, %v849_v7 }
 0x13f   :  { %v5455_v14 = vpop.f32.mrb[4].mxu0  ;;  %v5457_v15 = vpop.f32.mrb[4].mxu1  ;;  %4545 = vpow2.f32 %v883_v3  ;;  %v5460_v17 = vmax.f32 %v5440_v0, 0.0  ;;  %v577_v20 = vmul.f32 1.442695, %v5436_v61  ;;  %v5470_v24 = vmax.f32 %v5442_v1, 0.0 }
 0x140   :  { %v5462_v18 = vpop.f32.mrb[5].mxu0  ;;  %v5464_v19 = vpop.f32.mrb[5].mxu1  ;;  %4547 = vpow2.f32 %v771_v6  ;;  %v769_v21 = vmul.f32 1.442695, %v721_v12  ;;  %v913_v26 = vmul.f32 1.442695, %v865_v13 }
 0x141   :  { %7195 = vst [vmem:[#allocation15_spill] sm:$0xff] %v5460_v17  ;;  %4549 = vpow2.f32 %v915_v9  ;;  %v708_v22 = vmul.f32 -1.0, %v5460_v17  ;;  %v852_v23 = vmul.f32 -2.0, %v5460_v17  ;;  %7196 = vst [vmem:[#allocation16_spill] sm:$0xff] %v5470_v24  ;;  %v5473_v27 = vmax.f32 %v5445_v5, 0.0 }
 0x142   :  { %4551 = vpow2.f32 %v737_v11  ;;  %v551_v30 = vmul.f32 1.442695, %v5440_v0  ;;  %v724_v31 = vmul.f32 -1.0, %v5470_v24  ;;  %v868_v34 = vmul.f32 -2.0, %v5470_v24 }
 0x143   :  { %7197 = vst [vmem:[#allocation17_spill] sm:$0xff] %v5473_v27  ;;  %v5475_v28 = vpop.f32.mrb[6].mxu0  ;;  %v5477_v29 = vpop.f32.mrb[6].mxu1  ;;  %4553 = vpow2.f32 %v881_v16  ;;  %v743_v33 = vmul.f32 1.442695, %v708_v22  ;;  %v707_v41 = vmul.f32 -1.0, %v5473_v27 }
 0x144   :  { %v5481_v32 = vpop.f32.mrb[7].mxu0  ;;  %4555 = vpow2.f32 %v577_v20  ;;  %v5484_v35 = vpop.f32.mrb[7].mxu1  ;;  %v887_v37 = vmul.f32 1.442695, %v852_v23  ;;  %v583_v40 = vmul.f32 1.442695, %v5442_v1 }
 0x145   :  { %v5486_v36 = vpop.eup %4537  ;;  %4557 = vpow2.f32 %v769_v21  ;;  %v775_v45 = vmul.f32 1.442695, %v724_v31  ;;  %v851_v46 = vmul.f32 -2.0, %v5473_v27  ;;  %v919_v52 = vmul.f32 1.442695, %v868_v34 }
 0x146   :  { %v5491_v39 = vpop.eup %4539  ;;  %4559 = vpow2.f32 %v913_v26  ;;  %v549_v57 = vmul.f32 1.442695, %v5445_v5  ;;  %v5512_v58 = vmax.f32 %v5451_v10, 0.0  ;;  %v741_v62 = vmul.f32 1.442695, %v707_v41 }
 0x147   :  { %v5495_v42 = vpop.f32.mrb[8].mxu0  ;;  %v5497_v43 = vpop.f32.mrb[8].mxu1  ;;  %4561 = vpow2.f32 %v551_v30  ;;  %v5517_v63 = vmax.f32 %v5455_v14, 0.0  ;;  %v885_v6 = vmul.f32 1.442695, %v851_v46  ;;  %v5539_v25 = vmax.f32 %v5457_v15, 0.0 }
 0x148   :  { %v5499_v44 = vpop.eup %4541  ;;  %v5502_v47 = vpop.f32.mrb[9].mxu0  ;;  %4563 = vpow2.f32 %v743_v33  ;;  %7198 = vst [vmem:[#allocation18_spill] sm:$0xff] %v5512_v58  ;;  %v723_v7 = vmul.f32 -1.0, %v5512_v58  ;;  %v867_v9 = vmul.f32 -2.0, %v5512_v58  ;;  %v581_v16 = vmul.f32 1.442695, %v5451_v10 }
 0x149   :  { %v5504_v48 = vpop.f32.mrb[9].mxu1  ;;  %v5506_v49 = vpop.eup %4543  ;;  %4565 = vpow2.f32 %v887_v37  ;;  %7199 = vst [vmem:[#allocation19_spill] sm:$0xff] %v5517_v63  ;;  %v710_v20 = vmul.f32 -1.0, %v5517_v63  ;;  %v854_v23 = vmul.f32 -2.0, %v5517_v63  ;;  %7200 = vst [vmem:[#allocation20_spill] sm:$0xff] %v5539_v25  ;;  %v726_v37 = vmul.f32 -1.0, %v5539_v25 }
 0x14a   :  { %v5508_v55 = vpop.eup %4545  ;;  %4567 = vpow2.f32 %v583_v40  ;;  %v773_v22 = vmul.f32 1.442695, %v723_v7  ;;  %v917_v30 = vmul.f32 1.442695, %v867_v9  ;;  %v555_v34 = vmul.f32 1.442695, %v5455_v14 }
 0x14b   :  { %v5514_v59 = vpop.eup %4547  ;;  %v5519_v2 = vpop.f32.mrb[10].mxu0  ;;  %4569 = vpow2.f32 %v775_v45  ;;  %v747_v45 = vmul.f32 1.442695, %v710_v20  ;;  %v870_v46 = vmul.f32 -2.0, %v5539_v25  ;;  %v587_v9 = vmul.f32 1.442695, %v5457_v15 }
 0x14c   :  { %v5521_v3 = vpop.f32.mrb[10].mxu1  ;;  %v5523_v4 = vpop.eup %4549  ;;  %4571 = vpow2.f32 %v919_v52  ;;  %v5557_v52 = vmax.f32 %v5462_v18, 0.0  ;;  %v779_v25 = vmul.f32 1.442695, %v726_v37  ;;  %vm530_vm2 = vcmp.gt.f32.partialorder %v5418_v51, 0.0 }
 0x14d   :  { %v5527_v11 = vpop.f32.mrb[11].mxu0  ;;  %v5529_v12 = vpop.f32.mrb[11].mxu1  ;;  %4573 = vpow2.f32 %v549_v57  ;;  %vm513_vm3 = vcmp.gt.f32.partialorder %v5424_v54, 0.0  ;;  %vm516_vm4 = vcmp.gt.f32.partialorder %v5440_v0, 0.0  ;;  %vm529_vm5 = vcmp.gt.f32.partialorder %v5436_v61, 0.0 }
 0x14e   :  { %v5531_v13 = vpop.eup %4551  ;;  %4575 = vpow2.f32 %v741_v62  ;;  %7201 = vst [vmem:[#allocation21_spill] sm:$0xff] %v5557_v52  ;;  %v709_v63 = vmul.f32 -1.0, %v5557_v52  ;;  %v853_v27 = vmul.f32 -2.0, %v5557_v52  ;;  %vm515_vm6 = vcmp.gt.f32.partialorder %v5445_v5, 0.0 }
 0x14f   :  { %v5535_v21 = vpop.eup %4553  ;;  %v5543_v31 = vpop.f32.mrb[12].mxu0  ;;  %4577 = vpow2.f32 %v885_v6  ;;  %v891_v6 = vmul.f32 1.442695, %v854_v23  ;;  %vm532_vm7 = vcmp.gt.f32.partialorder %v5442_v1, 0.0  ;;  %vm518_vm8 = vcmp.gt.f32.partialorder %v5455_v14, 0.0 }
 0x150   :  { %v5541_v26 = vpop.eup %4555  ;;  %v5549_v38 = vpop.f32.mrb[12].mxu1  ;;  %4579 = vpow2.f32 %v581_v16  ;;  %vm531_vm9 = vcmp.gt.f32.partialorder %v5451_v10, 0.0  ;;  %vm517_vm10 = vcmp.gt.f32.partialorder %v5462_v18, 0.0  ;;  %vm534_vm11 = vcmp.gt.f32.partialorder %v5457_v15, 0.0 }
 0x151   :  { %v5545_v33 = vpop.eup %4557  ;;  %v5551_v40 = vpop.f32.mrb[13].mxu0  ;;  %4581 = vpow2.f32 %v773_v22  ;;  %v5573_v22 = vmax.f32 %v5464_v19, 0.0  ;;  %vm533_vm12 = vcmp.gt.f32.partialorder %v5464_v19, 0.0  ;;  %vm520_vm13 = vcmp.gt.f32.partialorder %v5475_v28, 0.0 }
 0x152   :  { %v5553_v41 = vpop.eup %4559  ;;  %v5559_v57 = vpop.f32.mrb[13].mxu1  ;;  %4583 = vpow2.f32 %v917_v30  ;;  %vm519_vm14 = vcmp.gt.f32.partialorder %v5481_v32, 0.0  ;;  %vm536_vm15 = vcmp.gt.f32.partialorder %v5477_v29, 0.0  ;;  %vm535_vm0 = vcmp.gt.f32.partialorder %v5484_v35, 0.0 }
 0x153   :  { %7202 = vst [vmem:[#allocation22_spill] sm:$0xff] %v5559_v57  ;;  %v4562_v62 = vpop.eup %4561  ;;  %v5565_v17 = vpop.f32.mrb[14].mxu0  ;;  %4585 = vpow2.f32 %v555_v34  ;;  %7206 = vst [vmem:[#allocation26_spill] sm:$0xff] %v5573_v22  ;;  %v553_v34 = vmul.f32 1.442695, %v5462_v18  ;;  %v725_v37 = vmul.f32 -1.0, %v5573_v22 }
 0x154   :  { %v5561_v7 = vpop.eup %4563  ;;  %7203 = vst [vmem:[#allocation23_spill] sm:$0xff] %v5565_v17  ;;  %v5567_v16 = vpop.f32.mrb[14].mxu1  ;;  %v3387_v17 = vadd.f32 -1.0, %v5486_v36  ;;  %4587 = vpow2.f32 %v747_v45  ;;  %v3403_v45 = vadd.f32 -1.0, %v5491_v39  ;;  %v3386_v39 = vadd.f32 -1.0, %v5499_v44 }
 0x155   :  { %7204 = vst [vmem:[#allocation24_spill] sm:$0xff] %v5567_v16  ;;  %v5569_v20 = vpop.eup %4565  ;;  %v5575_v23 = vpop.f32.mrb[15].mxu0  ;;  %v923_v16 = vmul.f32 1.442695, %v870_v46  ;;  %4589 = vpow2.f32 %v891_v6  ;;  %v889_v46 = vmul.f32 1.442695, %v853_v27 }
 0x156   :  { %7205 = vst [vmem:[#allocation25_spill] sm:$0xff] %v5569_v20  ;;  %7207 = vst [vmem:[#allocation27_spill] sm:$0xff] %v5575_v23  ;;  %v5577_v30 = vpop.f32.mrb[15].mxu1  ;;  %v5579_v24 = vpop.eup %4567  ;;  %4591 = vpow2.f32 %v587_v9  ;;  %v869_v23 = vmul.f32 -2.0, %v5573_v22  ;;  %v642_v58 = vsel %vm514_vm1, %v5416_v50, %v3387_v17  ;;  %v777_v27 = vmul.f32 1.442695, %v725_v37 }
 0x157   :  { %7208 = vst [vmem:[#allocation28_spill] sm:$0xff] %v5577_v30  ;;  %v5583_v20 = vpop.eup %4569  ;;  %v745_v30 = vmul.f32 1.442695, %v709_v63  ;;  %4593 = vpow2.f32 %v779_v25  ;;  %v5601_v63 = vmax.f32 %v5475_v28, 0.0  ;;  %v5608_v25 = vmax.f32 %v5477_v29, 0.0 }
 0x158   :  { %7209 = vst [vmem:[#allocation29_spill] sm:$0xff] %v5583_v20  ;;  %v5588_v52 = vpop.eup %4571  ;;  %4595 = vpow2.f32 %v923_v16  ;;  %v3389_v50 = vadd.f32 -1.0, %v4562_v62  ;;  %v921_v17 = vmul.f32 1.442695, %v869_v23  ;;  %v5621_v57 = vmul.f32 %v5506_v49, %v642_v58 }
 0x159   :  { %7210 = vst [vmem:[#allocation30_spill] sm:$0xff] %v5588_v52  ;;  %v4574_v36 = vpop.eup %4573  ;;  %v585_v52 = vmul.f32 1.442695, %v5464_v19  ;;  %7211 = vst [vmem:[#allocation31_spill] sm:$0xff] %v5601_v63  ;;  %4597 = vpow2.f32 %v553_v34  ;;  %v712_v16 = vmul.f32 -1.0, %v5601_v63  ;;  %v856_v44 = vmul.f32 -2.0, %v5601_v63 }
 0x15a   :  { %v5594_v6 = vpop.eup %4575  ;;  %7213 = vst [vmem:[#allocation33_spill] sm:$0xff] %v5608_v25  ;;  %4599 = vpow2.f32 %v745_v30  ;;  %v728_v34 = vmul.f32 -1.0, %v5608_v25  ;;  %v5626_v62 = vsel %vm530_vm2, %v5418_v51, %v3403_v45  ;;  %v3402_v58 = vadd.f32 -1.0, %v5541_v26 }
 0x15b   :  { %v5603_v9 = vpop.eup %4577  ;;  %4601 = vpow2.f32 %v889_v46  ;;  %v751_v23 = vmul.f32 1.442695, %v712_v16  ;;  %v641_v46 = vsel %vm513_vm3, %v5424_v54, %v3386_v39  ;;  %v895_v63 = vmul.f32 1.442695, %v856_v44 }
 0x15c   :  { %7212 = vst [vmem:[#allocation32_spill] sm:$0xff] %v5603_v9  ;;  %v5610_v22 = vpop.eup %4579  ;;  %v559_v9 = vmul.f32 1.442695, %v5475_v28  ;;  %4603 = vpow2.f32 %v585_v52  ;;  %v591_v51 = vmul.f32 1.442695, %v5477_v29  ;;  %v5638_v45 = vmax.f32 %v5481_v32, 0.0 }
 0x15d   :  { %v5613_v20 = vpop.eup %4581  ;;  %4605 = vpow2.f32 %v777_v27  ;;  %v644_v54 = vsel %vm516_vm4, %v5440_v0, %v3389_v50  ;;  %v783_v39 = vmul.f32 1.442695, %v728_v34  ;;  %v5647_v27 = vmax.f32 %v5484_v35, 0.0 }
 0x15e   :  { %v5618_v37 = vpop.eup %4583  ;;  %4607 = vpow2.f32 %v921_v17  ;;  %7215 = vst [vmem:[#allocation35_spill] sm:$0xff] %v5638_v45  ;;  %v3388_v17 = vadd.f32 -1.0, %v4574_v36  ;;  %v557_v16 = vmul.f32 1.442695, %v5481_v32  ;;  %v711_v44 = vmul.f32 -1.0, %v5638_v45 }
 0x15f   :  { %7214 = vst [vmem:[#allocation34_spill] sm:$0xff] %v5618_v37  ;;  %v4586_v30 = vpop.eup %4585  ;;  %v872_v37 = vmul.f32 -2.0, %v5608_v25  ;;  %4609 = vpow2.f32 %v559_v9  ;;  %7217 = vst [vmem:[#allocation37_spill] sm:$0xff] %v5647_v27  ;;  %v855_v9 = vmul.f32 -2.0, %v5638_v45  ;;  %v727_v50 = vmul.f32 -1.0, %v5647_v27 }
 0x160   :  { %v5633_v49 = vpop.eup %4587  ;;  %4611 = vpow2.f32 %v751_v23  ;;  %v5666_v36 = vsel %vm529_vm5, %v5436_v61, %v3402_v58  ;;  %v749_v23 = vmul.f32 1.442695, %v711_v44  ;;  %v589_v61 = vmul.f32 1.442695, %v5484_v35 }
 0x161   :  { %v5640_v52 = vpop.eup %4589  ;;  %4613 = vpow2.f32 %v895_v63  ;;  %v927_v0 = vmul.f32 1.442695, %v872_v37  ;;  %v5670_v37 = vmul.f32 %v5561_v7, %v644_v54  ;;  %v893_v45 = vmul.f32 1.442695, %v855_v9 }
 0x162   :  { %7216 = vst [vmem:[#allocation36_spill] sm:$0xff] %v5640_v52  ;;  %v5649_v26 = vpop.eup %4591  ;;  %v5661_v52 = vmul.f32 %v5531_v13, %v641_v46  ;;  %4615 = vpow2.f32 %v591_v51  ;;  %v871_v13 = vmul.f32 -2.0, %v5647_v27  ;;  %v5679_v58 = vmax.f32 %v5495_v42, 0.0 }
 0x163   :  { %v5654_v25 = vpop.eup %4593  ;;  %4617 = vpow2.f32 %v783_v39  ;;  %v643_v7 = vsel %vm515_vm6, %v5445_v5, %v3388_v17  ;;  %v3391_v54 = vadd.f32 -1.0, %v4586_v30  ;;  %v781_v39 = vmul.f32 1.442695, %v727_v50 }
 0x164   :  { %7218 = vst [vmem:[#allocation38_spill] sm:$0xff] %v5654_v25  ;;  %v5658_v34 = vpop.eup %4595  ;;  %4619 = vpow2.f32 %v557_v16  ;;  %7220 = vst [vmem:[#allocation40_spill] sm:$0xff] %v5679_v58  ;;  %v3404_v9 = vadd.f32 -1.0, %v5610_v22  ;;  %v714_v16 = vmul.f32 -1.0, %v5679_v58  ;;  %v858_v25 = vmul.f32 -2.0, %v5679_v58 }
 0x165   :  { %7219 = vst [vmem:[#allocation39_spill] sm:$0xff] %v5658_v34  ;;  %v4598_v63 = vpop.eup %4597  ;;  %v3405_v34 = vadd.f32 -1.0, %v5579_v24  ;;  %4621 = vpow2.f32 %v927_v0  ;;  %v563_v24 = vmul.f32 1.442695, %v5495_v42  ;;  %v5694_v5 = vmax.f32 %v5497_v43, 0.0 }
 0x166   :  { %v5674_v46 = vpop.eup %4599  ;;  %4623 = vpow2.f32 %v749_v23  ;;  %v3390_v17 = vadd.f32 -1.0, %v4598_v63  ;;  %v755_v0 = vmul.f32 1.442695, %v714_v16  ;;  %v5704_v23 = vmul.f32 %v5594_v6, %v643_v7 }
 0x167   :  { %v5681_v51 = vpop.eup %4601  ;;  %4625 = vpow2.f32 %v893_v45  ;;  %7222 = vst [vmem:[#allocation42_spill] sm:$0xff] %v5694_v5  ;;  %v5701_v22 = vsel %vm532_vm7, %v5442_v1, %v3405_v34  ;;  %v646_v45 = vsel %vm518_vm8, %v5455_v14, %v3391_v54  ;;  %v899_v34 = vmul.f32 1.442695, %v858_v25 }
 0x168   :  { %7221 = vst [vmem:[#allocation41_spill] sm:$0xff] %v5681_v51  ;;  %v4604_v44 = vpop.eup %4603  ;;  %v925_v51 = vmul.f32 1.442695, %v871_v13  ;;  %4627 = vpow2.f32 %v589_v61  ;;  %v730_v13 = vmul.f32 -1.0, %v5694_v5  ;;  %v874_v63 = vmul.f32 -2.0, %v5694_v5 }
 0x169   :  { %v5690_v27 = vpop.eup %4605  ;;  %4629 = vpow2.f32 %v781_v39  ;;  %v5716_v6 = vmax.f32 %v5502_v47, 0.0  ;;  %v5723_v14 = vsel %vm531_vm9, %v5451_v10, %v3404_v9  ;;  %v3407_v7 = vadd.f32 -1.0, %v5649_v26 }
 0x16a   :  { %v5696_v30 = vpop.eup %4607  ;;  %4631 = vpow2.f32 %v563_v24  ;;  %v595_v54 = vmul.f32 1.442695, %v5497_v43  ;;  %v5728_v25 = vmul.f32 %v5633_v49, %v646_v45  ;;  %v645_v24 = vsel %vm517_vm10, %v5462_v18, %v3390_v17 }
 0x16b   :  { %v4610_v50 = vpop.eup %4609  ;;  %7223 = vst [vmem:[#allocation43_spill] sm:$0xff] %v5716_v6  ;;  %4633 = vpow2.f32 %v925_v51  ;;  %v561_v16 = vmul.f32 1.442695, %v5502_v47  ;;  %v787_v9 = vmul.f32 1.442695, %v730_v13  ;;  %v713_v26 = vmul.f32 -1.0, %v5716_v6 }
 0x16c   :  { %v5712_v1 = vpop.eup %4611  ;;  %4635 = vpow2.f32 %v755_v0  ;;  %v857_v51 = vmul.f32 -2.0, %v5716_v6  ;;  %v5740_v58 = vmax.f32 %v5504_v48, 0.0  ;;  %v3406_v45 = vadd.f32 -1.0, %v4604_v44 }
 0x16d   :  { %v5718_v61 = vpop.eup %4613  ;;  %v3393_v5 = vadd.f32 -1.0, %v4610_v50  ;;  %4637 = vpow2.f32 %v899_v34  ;;  %v931_v18 = vmul.f32 1.442695, %v874_v63  ;;  %v5747_v0 = vsel %vm534_vm11, %v5457_v15, %v3407_v7 }
 0x16e   :  { %7224 = vst [vmem:[#allocation44_spill] sm:$0xff] %v5718_v61  ;;  %v4616_v39 = vpop.eup %4615  ;;  %7226 = vst [vmem:[#allocation46_spill] sm:$0xff] %v5740_v58  ;;  %4639 = vpow2.f32 %v595_v54  ;;  %v753_v13 = vmul.f32 1.442695, %v713_v26  ;;  %v593_v6 = vmul.f32 1.442695, %v5504_v48  ;;  %v5759_v15 = vmul.f32 %v5674_v46, %v645_v24 }
 0x16f   :  { %v5735_v10 = vpop.eup %4617  ;;  %4641 = vpow2.f32 %v561_v16  ;;  %v729_v44 = vmul.f32 -1.0, %v5740_v58  ;;  %v873_v50 = vmul.f32 -2.0, %v5740_v58  ;;  %v5754_v34 = vmax.f32 %v5519_v2, 0.0 }
 0x170   :  { %7225 = vst [vmem:[#allocation45_spill] sm:$0xff] %v5735_v10  ;;  %v4620_v49 = vpop.eup %4619  ;;  %4643 = vpow2.f32 %v787_v9  ;;  %v897_v54 = vmul.f32 1.442695, %v857_v51  ;;  %v5764_v16 = vsel %vm533_vm12, %v5464_v19, %v3406_v45  ;;  %v648_v58 = vsel %vm520_vm13, %v5475_v28, %v3393_v5 }
 0x171   :  { %v5742_v17 = vpop.eup %4621  ;;  %7228 = vst [vmem:[#allocation48_spill] sm:$0xff] %v5754_v34  ;;  %v3392_v7 = vadd.f32 -1.0, %v4620_v49  ;;  %vm522_vm1 = vcmp.gt.f32.partialorder %v5495_v42, 0.0  ;;  %4645 = vpow2.f32 %v931_v18  ;;  %v567_v46 = vmul.f32 1.442695, %v5519_v2 }
 0x172   :  { %7227 = vst [vmem:[#allocation47_spill] sm:$0xff] %v5742_v17  ;;  %v4624_v61 = vpop.eup %4623  ;;  %4647 = vpow2.f32 %v593_v6  ;;  %v785_v9 = vmul.f32 1.442695, %v729_v44  ;;  %v716_v51 = vmul.f32 -1.0, %v5754_v34  ;;  %v860_v19 = vmul.f32 -2.0, %v5754_v34 }
 0x173   :  { %v5756_v63 = vpop.eup %4625  ;;  %v3409_v45 = vadd.f32 -1.0, %v4616_v39  ;;  %4649 = vpow2.f32 %v753_v13  ;;  %v5777_v28 = vmax.f32 %v5521_v3, 0.0  ;;  %v647_v18 = vsel %vm519_vm14, %v5481_v32, %v3392_v7 }
 0x174   :  { %7229 = vst [vmem:[#allocation49_spill] sm:$0xff] %v5756_v63  ;;  %v4628_v26 = vpop.eup %4627  ;;  %v929_v63 = vmul.f32 1.442695, %v873_v50  ;;  %4651 = vpow2.f32 %v897_v54  ;;  %v759_v6 = vmul.f32 1.442695, %v716_v51  ;;  %vm521_vm2 = vcmp.gt.f32.partialorder %v5502_v47, 0.0 }
 0x175   :  { %v5772_v24 = vpop.eup %4629  ;;  %7230 = vst [vmem:[#allocation50_spill] sm:$0xff] %v5777_v28  ;;  %v599_v44 = vmul.f32 1.442695, %v5521_v3  ;;  %4653 = vpow2.f32 %v567_v46  ;;  %v903_v34 = vmul.f32 1.442695, %v860_v19  ;;  %v732_v39 = vmul.f32 -1.0, %v5777_v28 }
 0x176   :  { %v4632_v49 = vpop.eup %4631  ;;  %v876_v13 = vmul.f32 -2.0, %v5777_v28  ;;  %v3408_v50 = vadd.f32 -1.0, %v4628_v26  ;;  %4655 = vpow2.f32 %v785_v9  ;;  %v5794_v7 = vmul.f32 %v5712_v1, %v648_v58 }
 0x177   :  { %v5779_v5 = vpop.eup %4633  ;;  %v3395_v10 = vadd.f32 -1.0, %v4632_v49  ;;  %v5799_v54 = vsel %vm536_vm15, %v5477_v29, %v3409_v45  ;;  %4657 = vpow2.f32 %v929_v63  ;;  %v565_v26 = vmul.f32 1.442695, %v5527_v11 }
 0x178   :  { %7231 = vst [vmem:[#allocation51_spill] sm:$0xff] %v5779_v5  ;;  %v4636_v17 = vpop.eup %4635  ;;  %v5789_v5 = vmax.f32 %v5527_v11, 0.0  ;;  %4659 = vpow2.f32 %v759_v6  ;;  %v791_v51 = vmul.f32 1.442695, %v732_v39  ;;  %v5804_v28 = vmul.f32 %v4624_v61, %v647_v18 }
 0x179   :  { %v5791_v32 = vpop.eup %4637  ;;  %4661 = vpow2.f32 %v903_v34  ;;  %v935_v58 = vmul.f32 1.442695, %v876_v13  ;;  %v5807_v1 = vmax.f32 %v5529_v12, 0.0  ;;  %v5814_v63 = vsel %vm535_vm0, %v5484_v35, %v3408_v50 }
 0x17a   :  { %v4640_v46 = vpop.eup %4639  ;;  %v715_v9 = vmul.f32 -1.0, %v5789_v5  ;;  %v859_v19 = vmul.f32 -2.0, %v5789_v5  ;;  %v650_v45 = vsel %vm522_vm1, %v5495_v42, %v3395_v10  ;;  %vm538_vm3 = vcmp.gt.f32.partialorder %v5497_v43, 0.0 }
 0x17b   :  { %v4642_v49 = vpop.eup %4641  ;;  %4663 = vpow2.f32 %v599_v44  ;;  %v597_v61 = vmul.f32 1.442695, %v5529_v12  ;;  %vm524_vm4 = vcmp.gt.f32.partialorder %v5519_v2, 0.0  ;;  %v817_v35 = vmul.f32 %v5545_v33, %v5666_v36 }
 0x17c   :  { %v5809_v29 = vpop.eup %4643  ;;  %v3394_v18 = vadd.f32 -1.0, %v4642_v49  ;;  %4665 = vpow2.f32 %v565_v26  ;;  %v757_v6 = vmul.f32 1.442695, %v715_v9  ;;  %v901_v13 = vmul.f32 1.442695, %v859_v19 }
 0x17d   :  { %v5821_v34 = vpop.eup %4645  ;;  %4667 = vpow2.f32 %v791_v51  ;;  %v818_v42 = vmul.f32 %v5514_v59, %v5626_v62  ;;  %v961_v10 = vmul.f32 %v5553_v41, %v5449_v8  ;;  %v5830_v50 = vmul.f32 %v4636_v17, %v650_v45 }
 0x17e   :  { %v4648_v39 = vpop.eup %4647  ;;  %v3411_v49 = vadd.f32 -1.0, %v4640_v46  ;;  %vm537_vm5 = vcmp.gt.f32.partialorder %v5504_v48, 0.0  ;;  %4669 = vpow2.f32 %v935_v58  ;;  %v731_v26 = vmul.f32 -1.0, %v5807_v1 }
 0x17f   :  { %v4650_v44 = vpop.eup %4649  ;;  %4671 = vpow2.f32 %v597_v61  ;;  %v875_v33 = vmul.f32 -2.0, %v5807_v1  ;;  %v841_v36 = vpack.c.bf16 %v818_v42, %v817_v35  ;;  %v962_v59 = vmul.f32 %v5523_v4, %v5428_v56 }
 0x180   :  { %v5834_v9 = vpop.eup %4651  ;;  %v649_v8 = vsel %vm521_vm2, %v5502_v47, %v3394_v18  ;;  %v3410_v41 = vadd.f32 -1.0, %v4648_v39  ;;  %4673 = vpow2.f32 %v757_v6  ;;  %v571_v17 = vmul.f32 1.442695, %v5543_v31 }
 0x181   :  { %v4654_v62 = vpop.eup %4653  ;;  %vm523_vm6 = vcmp.gt.f32.partialorder %v5527_v11, 0.0  ;;  %4675 = vpow2.f32 %v901_v13  ;;  %3558 = vmatprep.subr.bf16.mxu1 %v841_v36  ;;  %v985_v19 = vpack.c.bf16 %v962_v59, %v961_v10  ;;  %v5847_v58 = vmax.f32 %v5543_v31, 0.0 }
 0x182   :  { %v5843_v46 = vpop.eup %4655  ;;  %v3397_v51 = vadd.f32 -1.0, %v4654_v62  ;;  %v789_v4 = vmul.f32 1.442695, %v731_v26  ;;  %4677 = vpow2.f32 %v571_v17  ;;  %v603_v47 = vmul.f32 1.442695, %v5549_v38 }
 0x183   :  { %7232 = vst [vmem:[#allocation52_spill] sm:$0xff] %v5847_v58  ;;  %v5849_v56 = vpop.eup %4657  ;;  %v5853_v45 = vmax.f32 %v5549_v38, 0.0  ;;  %v933_v18 = vmul.f32 1.442695, %v875_v33  ;;  %3670 = vmatprep.subr.bf16.mxu0 %v985_v19  ;;  %v718_v6 = vmul.f32 -1.0, %v5847_v58  ;;  %v862_v35 = vmul.f32 -2.0, %v5847_v58 }
 0x184   :  { %v4660_v61 = vpop.eup %4659  ;;  %v833_v39 = vpack.c.bf16 %v5621_v57, %v5661_v52  ;;  %v5864_v42 = vsel %vm538_vm3, %v5497_v43, %v3411_v49  ;;  %v5866_v10 = vmul.f32 %v4650_v44, %v649_v8  ;;  %4679 = vpow2.f32 %v603_v47  ;;  %v7239_v58 = vld [vmem:[#allocation16_spill] sm:$0xff] }
 0x185   :  { %7233 = vst [vmem:[#allocation53_spill] sm:$0xff] %v5853_v45  ;;  %v5859_v13 = vpop.eup %4661  ;;  %v734_v26 = vmul.f32 -1.0, %v5853_v45  ;;  %v652_v36 = vsel %vm524_vm4, %v5519_v2, %v3397_v51  ;;  %vm540_vm7 = vcmp.gt.f32.partialorder %v5521_v3, 0.0  ;;  %v763_v57 = vmul.f32 1.442695, %v718_v6 }
 0x186   :  { %v4664_v33 = vpop.eup %4663  ;;  %v907_v52 = vmul.f32 1.442695, %v862_v35  ;;  %3559 = vmatpush3.bf16.msra.mxu1 %v833_v39  ;;  %v945_v59 = vmul.f32 %v5535_v21, %v5434_v60  ;;  %4681 = vpow2.f32 %v789_v4  ;;  %v878_v49 = vmul.f32 -2.0, %v5853_v45 }
 0x187   :  { %v4666_v43 = vpop.eup %4665  ;;  %v795_v44 = vmul.f32 1.442695, %v734_v26  ;;  %v946_v62 = vmul.f32 %v5508_v55, %v5422_v53  ;;  %v5883_v2 = vsel %vm537_vm5, %v5504_v48, %v3410_v41  ;;  %vm539_vm8 = vcmp.gt.f32.partialorder %v5529_v12, 0.0  ;;  %v7235_v41 = vld [vmem:[#allocation22_spill] sm:$0xff] }
 0x188   :  { %v5878_v8 = vpop.eup %4667  ;;  %v3396_v17 = vadd.f32 -1.0, %v4666_v43  ;;  %4683 = vpow2.f32 %v933_v18  ;;  %v569_v60 = vmul.f32 1.442695, %v5551_v40  ;;  %v5889_v51 = vmul.f32 %v4660_v61, %v652_v36 }
 0x189   :  { %v5887_v21 = vpop.eup %4669  ;;  %vm526_vm9 = vcmp.gt.f32.partialorder %v5543_v31, 0.0  ;;  %4685 = vpow2.f32 %v763_v57  ;;  %v977_v53 = vpack.c.bf16 %v946_v62, %v945_v59  ;;  %v5893_v55 = vmax.f32 %v5551_v40, 0.0  ;;  %v7236_v62 = vld [vmem:[#allocation29_spill] sm:$0xff] }
 0x18a   :  { %v4672_v19 = vpop.eup %4671  ;;  %v3413_v48 = vadd.f32 -1.0, %v4664_v33  ;;  %4687 = vpow2.f32 %v907_v52  ;;  %vm542_vm10 = vcmp.gt.f32.partialorder %v5549_v38, 0.0  ;;  %v601_v4 = vmul.f32 1.442695, %v7235_v41 }
 0x18b   :  { %7234 = vst [vmem:[#allocation54_spill] sm:$0xff] %v5893_v55  ;;  %v5898_v47 = vmax.f32 %v7235_v41, 0.0  ;;  %v4674_v18 = vpop.eup %4673  ;;  %v651_v61 = vsel %vm523_vm6, %v5527_v11, %v3396_v17  ;;  %4689 = vpow2.f32 %v795_v44  ;;  %v939_v6 = vmul.f32 1.442695, %v878_v49  ;;  %3671 = vmatpush3.bf16.msra.mxu0 %v977_v53 }
 0x18c   :  { %v717_v35 = vmul.f32 -1.0, %v5893_v55  ;;  %v5904_v39 = vpop.eup %4675  ;;  %v3412_v26 = vadd.f32 -1.0, %v4672_v19  ;;  %4691 = vpow2.f32 %v569_v60  ;;  %v861_v33 = vmul.f32 -2.0, %v5893_v55  ;;  %v7237_v19 = vld [vmem:[#allocation18_spill] sm:$0xff] }
 0x18d   :  { %v733_v36 = vmul.f32 -1.0, %v5898_v47  ;;  %v4678_v57 = vpop.eup %4677  ;;  %4693 = vpow2.f32 %v601_v4  ;;  %v877_v59 = vmul.f32 -2.0, %v5898_v47  ;;  %v819_v11 = vmul.f32 %v5613_v20, %v5723_v14  ;;  %v7238_v4 = vld [vmem:[#allocation34_spill] sm:$0xff] }
 0x18e   :  { %v761_v52 = vmul.f32 1.442695, %v717_v35  ;;  %v3399_v43 = vadd.f32 -1.0, %v4678_v57  ;;  %v905_v44 = vmul.f32 1.442695, %v861_v33  ;;  %v820_v17 = vmul.f32 %v7236_v62, %v5701_v22  ;;  %v4680_v53 = vpop.eup %4679  ;;  %v7240_v55 = vld [vmem:[#allocation30_spill] sm:$0xff] }
 0x18f   :  { %v793_v49 = vmul.f32 1.442695, %v733_v36  ;;  %v5916_v60 = vsel %vm540_vm7, %v5521_v3, %v3413_v48  ;;  %v963_v35 = vmul.f32 %v7238_v4, %v7237_v19  ;;  %v964_v45 = vmul.f32 %v7240_v55, %v7239_v58  ;;  %v7241_v36 = vld [vmem:[#allocation23_spill] sm:$0xff]  ;;  %v7249_v4 = vld [vmem:[#allocation25_spill] sm:$0xff] }
 0x190   :  { %4695 = vpow2.f32 %v761_v52  ;;  %v5922_v20 = vmul.f32 %v4674_v18, %v651_v61  ;;  %v3415_v14 = vadd.f32 -1.0, %v4680_v53  ;;  %vm525_vm11 = vcmp.gt.f32.partialorder %v5551_v40, 0.0  ;;  %v5925_v33 = vpop.eup %4681  ;;  %v7248_v19 = vld [vmem:[#allocation15_spill] sm:$0xff] }
 0x191   :  { %4697 = vpow2.f32 %v939_v6  ;;  %v842_v22 = vpack.c.bf16 %v820_v17, %v819_v11  ;;  %v5930_v3 = vsel %vm539_vm8, %v5529_v12, %v3412_v26  ;;  %vm541_vm12 = vcmp.gt.f32.partialorder %v7235_v41, 0.0 }
 0x192   :  { %4699 = vpow2.f32 %v905_v44  ;;  %v986_v48 = vpack.c.bf16 %v964_v45, %v963_v35  ;;  %v575_v58 = vmul.f32 1.442695, %v7241_v36  ;;  %v5934_v55 = vpop.eup %4683  ;;  %v654_v18 = vsel %vm526_vm9, %v5543_v31, %v3399_v43  ;;  %v7243_v45 = vld [vmem:[#allocation24_spill] sm:$0xff]  ;;  %v7246_v44 = vld [vmem:[#allocation17_spill] sm:$0xff] }
 0x193   :  { %4701 = vpow2.f32 %v793_v49  ;;  %v937_v61 = vmul.f32 1.442695, %v877_v59  ;;  %3560 = vmatprep.subr.bf16.mxu1 %v842_v22  ;;  %v5940_v6 = vmax.f32 %v7241_v36, 0.0  ;;  %v4686_v12 = vpop.eup %4685  ;;  %v5945_v26 = vsel %vm542_vm10, %v5549_v38, %v3415_v14  ;;  %v7247_v49 = vld [vmem:[#allocation32_spill] sm:$0xff] }
 0x194   :  { %3672 = vmatprep.subr.bf16.mxu0 %v986_v48  ;;  %4703 = vpow2.f32 %v575_v58  ;;  %v607_v57 = vmul.f32 1.442695, %v7243_v45  ;;  %v5949_v52 = vmax.f32 %v7243_v45, 0.0  ;;  %v5951_v31 = vpop.eup %4687  ;;  %v834_v43 = vpack.c.bf16 %v5670_v37, %v5704_v23  ;;  %v7250_v58 = vld [vmem:[#allocation27_spill] sm:$0xff] }
 0x195   :  { %7242 = vst [vmem:[#allocation22_spill] sm:$0xff] %v5940_v6  ;;  %7245 = vst [vmem:[#allocation18_spill] sm:$0xff] %v5951_v31  ;;  %v720_v59 = vmul.f32 -1.0, %v5940_v6  ;;  %v864_v11 = vmul.f32 -2.0, %v5940_v6  ;;  %v947_v38 = vmul.f32 %v7247_v49, %v7246_v44  ;;  %v5959_v62 = vpop.eup %4689  ;;  %v948_v35 = vmul.f32 %v7249_v4, %v7248_v19  ;;  %v7252_v4 = vld [vmem:[#allocation28_spill] sm:$0xff] }
 0x196   :  { %7244 = vst [vmem:[#allocation29_spill] sm:$0xff] %v5949_v52  ;;  %4705 = vpow2.f32 %v607_v57  ;;  %v736_v17 = vmul.f32 -1.0, %v5949_v52  ;;  %v880_v53 = vmul.f32 -2.0, %v5949_v52  ;;  %v4692_v14 = vpop.eup %4691  ;;  %3561 = vmatpush3.bf16.msra.mxu1 %v834_v43  ;;  %v5966_v37 = vmax.f32 %v7250_v58, 0.0 }
 0x197   :  { %4707 = vpow2.f32 %v937_v61  ;;  %v767_v22 = vmul.f32 1.442695, %v720_v59  ;;  %v911_v48 = vmul.f32 1.442695, %v864_v11  ;;  %v4694_v23 = vpop.eup %4693  ;;  %v3398_v44 = vadd.f32 -1.0, %v4692_v14 }
 0x198   :  { %7251 = vst [vmem:[#allocation34_spill] sm:$0xff] %v5966_v37  ;;  %vm528_vm13 = vcmp.gt.f32.partialorder %v7241_v36, 0.0  ;;  %v799_v57 = vmul.f32 1.442695, %v736_v17  ;;  %v943_v49 = vmul.f32 1.442695, %v880_v53  ;;  %v978_v6 = vpack.c.bf16 %v948_v35, %v947_v38 }
 0x199   :  { %v3414_v31 = vadd.f32 -1.0, %v4694_v23  ;;  %4709 = vpow2.f32 %v767_v22  ;;  %v573_v52 = vmul.f32 1.442695, %v7250_v58  ;;  %v719_v19 = vmul.f32 -1.0, %v5966_v37 }
 0x19a   :  { %v4696_v61 = vpop.eup %4695  ;;  %v5971_v59 = vmul.f32 %v4686_v12, %v654_v18  ;;  %v653_v11 = vsel %vm525_vm11, %v5551_v40, %v3398_v44  ;;  %4711 = vpow2.f32 %v911_v48  ;;  %vm544_vm14 = vcmp.gt.f32.partialorder %v7243_v45, 0.0  ;;  %3673 = vmatpush3.bf16.msra.mxu0 %v978_v6  ;;  %v7254_v48 = vld [vmem:[#allocation26_spill] sm:$0xff] }
 0x19b   :  { %v863_v43 = vmul.f32 -2.0, %v5966_v37  ;;  %v5978_v38 = vpop.eup %4697  ;;  %v5980_v17 = vmul.f32 %v4696_v61, %v653_v11  ;;  %v5985_v53 = vsel %vm541_vm12, %v7235_v41, %v3414_v31  ;;  %4713 = vpow2.f32 %v799_v57  ;;  %v7253_v41 = vld [vmem:[#allocation38_spill] sm:$0xff]  ;;  %v7256_v61 = vld [vmem:[#allocation39_spill] sm:$0xff] }
 0x19c   :  { %v765_v18 = vmul.f32 1.442695, %v719_v19  ;;  %v5987_v12 = vpop.eup %4699  ;;  %4715 = vpow2.f32 %v943_v49  ;;  %v605_v35 = vmul.f32 1.442695, %v7252_v4  ;;  %v5991_v6 = vmax.f32 %v7252_v4, 0.0  ;;  %v7255_v19 = vld [vmem:[#allocation20_spill] sm:$0xff] }
 0x19d   :  { %v909_v40 = vmul.f32 1.442695, %v863_v43  ;;  %v5993_v14 = vpop.eup %4701  ;;  %4717 = vpow2.f32 %v573_v52  ;;  %v821_v22 = vmul.f32 %v5690_v27, %v5764_v16  ;;  %v822_v31 = vmul.f32 %v7253_v41, %v5747_v0 }
 0x19e   :  { %v965_v23 = vmul.f32 %v5696_v30, %v7254_v48  ;;  %v4704_v44 = vpop.eup %4703  ;;  %4719 = vpow2.f32 %v765_v18  ;;  %v735_v57 = vmul.f32 -1.0, %v5991_v6  ;;  %v879_v49 = vmul.f32 -2.0, %v5991_v6 }
 0x19f   :  { %v966_v11 = vmul.f32 %v7256_v61, %v7255_v19  ;;  %v3401_v43 = vadd.f32 -1.0, %v4704_v44  ;;  %4721 = vpow2.f32 %v909_v40  ;;  %v843_v52 = vpack.c.bf16 %v822_v31, %v821_v22  ;;  %v7257_v19 = vld [vmem:[#allocation21_spill] sm:$0xff]  ;;  %v7259_v22 = vld [vmem:[#allocation19_spill] sm:$0xff]  ;;  %v7260_v31 = vld [vmem:[#allocation36_spill] sm:$0xff] }
 0x1a0   :  { %v835_v27 = vpack.c.bf16 %v5728_v25, %v5759_v15  ;;  %v4706_v16 = vpop.eup %4705  ;;  %4723 = vpow2.f32 %v605_v35  ;;  %v797_v0 = vmul.f32 1.442695, %v735_v57  ;;  %v941_v41 = vmul.f32 1.442695, %v879_v49  ;;  %v7258_v44 = vld [vmem:[#allocation41_spill] sm:$0xff]  ;;  %v7263_v57 = vld [vmem:[#allocation51_spill] sm:$0xff] }
 0x1a1   :  { %v987_v30 = vpack.c.bf16 %v966_v11, %v965_v23  ;;  %v6007_v48 = vpop.eup %4707  ;;  %v656_v18 = vsel %vm528_vm13, %v7241_v36, %v3401_v43  ;;  %v3417_v37 = vadd.f32 -1.0, %v4706_v16  ;;  %3562 = vmatprep.subr.bf16.mxu1 %v843_v52  ;;  %v949_v40 = vmul.f32 %v7258_v44, %v7257_v19  ;;  %v7261_v15 = vld [vmem:[#allocation45_spill] sm:$0xff]  ;;  %v7265_v16 = vld [vmem:[#allocation47_spill] sm:$0xff] }
 0x1a2   :  { %v950_v61 = vmul.f32 %v7260_v31, %v7259_v22  ;;  %4725 = vpow2.f32 %v797_v0  ;;  %3563 = vmatpush3.bf16.msra.mxu1 %v835_v27  ;;  %v823_v25 = vmul.f32 %v5772_v24, %v5814_v63  ;;  %v824_v35 = vmul.f32 %v7261_v15, %v5799_v54  ;;  %v7262_v23 = vld [vmem:[#allocation37_spill] sm:$0xff] }
 0x1a3   :  { %3674 = vmatprep.subr.bf16.mxu0 %v987_v30  ;;  %v967_v36 = vmul.f32 %v7263_v57, %v7262_v23  ;;  %v4710_v49 = vpop.eup %4709  ;;  %v6025_v11 = vsel %vm544_vm14, %v7243_v45, %v3417_v37  ;;  %4727 = vpow2.f32 %v941_v41  ;;  %v7264_v52 = vld [vmem:[#allocation33_spill] sm:$0xff]  ;;  %v836_v54 = vpack.c.bf16 %v5794_v7, %v5804_v28  ;;  %v7266_v30 = vld [vmem:[#allocation35_spill] sm:$0xff]  ;;  %v7269_v41 = vld [vmem:[#allocation44_spill] sm:$0xff] }
 0x1a4   :  { %v979_v43 = vpack.c.bf16 %v950_v61, %v949_v40  ;;  %v968_v27 = vmul.f32 %v7265_v16, %v7264_v52  ;;  %v6029_v0 = vpop.eup %4711  ;;  %v6031_v24 = vmul.f32 %v4710_v49, %v656_v18  ;;  %v844_v63 = vpack.c.bf16 %v824_v35, %v823_v25  ;;  %v7267_v19 = vld [vmem:[#allocation49_spill] sm:$0xff]  ;;  %v7268_v37 = vld [vmem:[#allocation31_spill] sm:$0xff]  ;;  %v7270_v25 = vld [vmem:[#allocation46_spill] sm:$0xff] }
 0x1a5   :  { %v951_v44 = vmul.f32 %v7267_v19, %v7266_v30  ;;  %v4714_v22 = vpop.eup %4713  ;;  %v952_v40 = vmul.f32 %v7269_v41, %v7268_v37  ;;  %v825_v31 = vmul.f32 %v5843_v46, %v5883_v2  ;;  %v826_v18 = vmul.f32 %v5809_v29, %v5864_v42  ;;  %v7271_v7 = vld [vmem:[#allocation42_spill] sm:$0xff]  ;;  %v7272_v23 = vld [vmem:[#allocation43_spill] sm:$0xff]  ;;  %v7273_v42 = vld [vmem:[#allocation40_spill] sm:$0xff] }
 0x1a6   :  { %3675 = vmatpush3.bf16.msra.mxu0 %v979_v43  ;;  %v988_v45 = vpack.c.bf16 %v968_v27, %v967_v36  ;;  %v4716_v61 = vpop.eup %4715  ;;  %3564 = vmatprep.subr.bf16.mxu1 %v844_v63  ;;  %v969_v28 = vmul.f32 %v5849_v56, %v7270_v25  ;;  %v970_v15 = vmul.f32 %v5821_v34, %v7271_v7  ;;  %vm527_vm15 = vcmp.gt.f32.partialorder %v7250_v58, 0.0  ;;  %v7274_v16 = vld [vmem:[#allocation50_spill] sm:$0xff] }
 0x1a7   :  { %v837_v35 = vpack.c.bf16 %v5830_v50, %v5866_v10  ;;  %v953_v57 = vmul.f32 %v5834_v9, %v7272_v23  ;;  %v4718_v36 = vpop.eup %4717  ;;  %3565 = vmatpush3.bf16.msra.mxu1 %v836_v54  ;;  %v980_v29 = vpack.c.bf16 %v952_v40, %v951_v44  ;;  %v845_v46 = vpack.c.bf16 %v826_v18, %v825_v31  ;;  %v7280_v40 = vld [vmem:[#allocation29_spill] sm:$0xff]  ;;  %v7282_v25 = vld [vmem:[#allocation22_spill] sm:$0xff] }
 0x1a8   :  { %3676 = vmatprep.subr.bf16.mxu0 %v988_v45  ;;  %v954_v2 = vmul.f32 %v5791_v32, %v7273_v42  ;;  %v4720_v56 = vpop.eup %4719  ;;  %v3400_v49 = vadd.f32 -1.0, %v4718_v36  ;;  %v989_v43 = vpack.c.bf16 %v970_v15, %v969_v28  ;;  %v827_v34 = vmul.f32 %v5925_v33, %v5930_v3  ;;  %v1942_v23 = vld [vmem:[#allocation7 + $0x10] sm:$0xff]  ;;  %v1943_v36 = vld [vmem:[#allocation7 + $0x18] sm:$0xff] }
 0x1a9   :  { %v828_v50 = vmul.f32 %v5878_v8, %v5916_v60  ;;  %v4722_v9 = vpop.eup %4721  ;;  %vm543_vm0 = vcmp.gt.f32.partialorder %v7252_v4, 0.0  ;;  %3566 = vmatprep.subr.bf16.mxu1 %v845_v46  ;;  %v971_v52 = vmul.f32 %v5934_v55, %v5807_v1  ;;  %v972_v32 = vmul.f32 %v5887_v21, %v7274_v16  ;;  %v7275_v55 = vld [vmem:[#allocation48_spill] sm:$0xff]  ;;  %v1701_v46 = vld [vmem:[%s7162_s4 + $0x10] sm:$0xff]  ;;  %v1702_v42 = vld [vmem:[%s7162_s4 + $0x18] sm:$0xff] }
 0x1aa   :  { %3677 = vmatpush3.bf16.msra.mxu0 %v980_v29  ;;  %v981_v10 = vpack.c.bf16 %v954_v2, %v953_v57  ;;  %v4724_v27 = vpop.eup %4723  ;;  %v655_v33 = vsel %vm527_vm15, %v7250_v58, %v3400_v49  ;;  %v838_v8 = vpack.c.bf16 %v5889_v51, %v5922_v20  ;;  %v955_v60 = vmul.f32 %v5904_v39, %v5789_v5  ;;  %v7276_v20 = vld [vmem:[#allocation53_spill] sm:$0xff]  ;;  %v1700_v57 = vld [vmem:[%s7162_s4 + $0x8] sm:$0xff] }
 0x1ab   :  { %3678 = vmatprep.subr.bf16.mxu0 %v989_v43  ;;  %v846_v3 = vpack.c.bf16 %v828_v50, %v827_v34  ;;  %v815_v63 = vmul.f32 %v4720_v56, %v655_v33  ;;  %v3416_v54 = vadd.f32 -1.0, %v4724_v27  ;;  %3567 = vmatpush3.bf16.msra.mxu1 %v837_v35  ;;  %v990_v1 = vpack.c.bf16 %v972_v32, %v971_v52  ;;  %v4441_v2 = vld [vmem:[#allocation2] ss:$8 sps:$4 sm:$0xff]   ;;  %v4447_v49 = vld [vmem:[#allocation2 + $0x14] ss:$8 sps:$4 sm:$0xff]  }
 0x1ac   :  { %v956_v21 = vmul.f32 %v5859_v13, %v7275_v55  ;;  %v4726_v30 = vpop.eup %4725  ;;  %v829_v58 = vmul.f32 %v5993_v14, %v5985_v53  ;;  %v830_v19 = vmul.f32 %v5959_v62, %v5945_v26  ;;  %v973_v51 = vmul.f32 %v6007_v48, %v5898_v47  ;;  %v7277_v53 = vld [vmem:[#allocation54_spill] sm:$0xff]  ;;  %v7278_v47 = vld [vmem:[#allocation52_spill] sm:$0xff]  ;;  %v1703_v43 = vld [vmem:[%s7162_s4 + $0x20] sm:$0xff] }
 0x1ad   :  { %3568 = vmatprep.subr.bf16.mxu1 %v846_v3  ;;  %v974_v5 = vmul.f32 %v5978_v38, %v7276_v20  ;;  %v4728_v39 = vpop.eup %4727  ;;  %v671_v44 = vsel %vm543_vm0, %v7252_v4, %v3416_v54  ;;  %v839_v45 = vpack.c.bf16 %v5971_v59, %v5980_v17  ;;  %v957_v14 = vmul.f32 %v5987_v12, %v7277_v53  ;;  %v7279_v48 = vld [vmem:[#allocation18_spill] sm:$0xff]  ;;  %v1704_v34 = vld [vmem:[%s7162_s4 + $0x28] sm:$0xff]  ;;  %v1705_v16 = vld [vmem:[%s7162_s4 + $0x30] sm:$0xff] }
 0x1ae   :  { %3679 = vmatpush3.bf16.msra.mxu0 %v981_v10  ;;  %v982_v13 = vpack.c.bf16 %v956_v21, %v955_v60  ;;  %v847_v26 = vpack.c.bf16 %v830_v19, %v829_v58  ;;  %v958_v37 = vmul.f32 %v7279_v48, %v7278_v47  ;;  %v831_v38 = vmul.f32 %v4726_v30, %v671_v44  ;;  %v7281_v17 = vld [vmem:[#allocation34_spill] sm:$0xff]  ;;  %v1945_v10 = vld [vmem:[#allocation7 + $0x28] sm:$0xff]  ;;  %v1707_v55 = vld [vmem:[%s7162_s4 + $0x40] sm:$0xff] }
 0x1af   :  { %3680 = vmatprep.subr.bf16.mxu0 %v990_v1  ;;  %v991_v62 = vpack.c.bf16 %v974_v5, %v973_v51  ;;  %3569 = vmatpush3.bf16.msra.mxu1 %v838_v8  ;;  %v832_v41 = vmul.f32 %v4714_v22, %v6025_v11  ;;  %v975_v4 = vmul.f32 %v4728_v39, %v5991_v6  ;;  %v1940_v11 = vld [vmem:[#allocation7] sm:$0xff]  ;;  %v1941_v6 = vld [vmem:[#allocation7 + $0x8] sm:$0xff]  ;;  %v1706_v32 = vld [vmem:[%s7162_s4 + $0x38] sm:$0xff] }
 0x1b0   :  { %v976_v31 = vmul.f32 %v4716_v61, %v7280_v40  ;;  %v840_v18 = vpack.c.bf16 %v6031_v24, %v815_v63  ;;  %3570 = vmatprep.subr.bf16.mxu1 %v847_v26  ;;  %v983_v59 = vpack.c.bf16 %v958_v37, %v957_v14  ;;  %v959_v12 = vmul.f32 %v4722_v9, %v7281_v17  ;;  %v4444_v24 = vld [vmem:[%s7159_s1] ss:$8 sps:$4 sm:$0xff]   ;;  %v4452_v27 = vld [vmem:[%s7159_s1 + $0x10] ss:$8 sps:$4 sm:$0xff]   ;;  %v4455_v3 = vld [vmem:[%s7159_s1 + $0x24] ss:$8 sps:$4 sm:$0xff]  }
 0x1b1   :  { %v960_v28 = vmul.f32 %v6029_v0, %v7282_v25  ;;  %v848_v7 = vpack.c.bf16 %v832_v41, %v831_v38  ;;  %v1699_v22 = vld [vmem:[%s7162_s4] sm:$0xff]  ;;  %v4449_v0 = vld [vmem:[%s7159_s1 + $0x14] ss:$8 sps:$4 sm:$0xff]   ;;  %v4390_v61 = vpack.c.bf16 %v1941_v6, %v1940_v11  ;;  %v4362_v56 = vpack.c.bf16 %v1702_v42, %v1701_v46  ;;  %v4451_v63 = vld [vmem:[#allocation2 + $0x10] ss:$8 sps:$4 sm:$0xff]  }
 0x1b2   :  { %3681 = vmatpush3.bf16.msra.mxu0 %v982_v13  ;;  %v992_v15 = vpack.c.bf16 %v976_v31, %v975_v4  ;;  %v4358_v29 = vpack.c.bf16 %v1700_v57, %v1699_v22  ;;  %v4394_v50 = vpack.c.bf16 %v1943_v36, %v1942_v23  ;;  %v1944_v9 = vld [vmem:[#allocation7 + $0x20] sm:$0xff]  ;;  %v4366_v52 = vpack.c.bf16 %v1704_v34, %v1703_v43  ;;  %v1946_v8 = vld [vmem:[#allocation7 + $0x30] sm:$0xff]  ;;  %v1947_v60 = vld [vmem:[#allocation7 + $0x38] sm:$0xff] }
 0x1b3   :  { %3682 = vmatprep.subr.bf16.mxu0 %v991_v62  ;;  %v984_v35 = vpack.c.bf16 %v960_v28, %v959_v12  ;;  %3571 = vmatpush3.bf16.msra.mxu1 %v839_v45  ;;  %v4398_v33 = vpack.c.bf16 %v1945_v10, %v1944_v9  ;;  %v4370_v54 = vpack.c.bf16 %v1706_v32, %v1705_v16  ;;  %v4453_v1 = vld [vmem:[#allocation2 + $0x24] ss:$8 sps:$4 sm:$0xff]   ;;  %v1709_v20 = vld [vmem:[%s7162_s4 + $0x50] sm:$0xff]  ;;  %v1710_v5 = vld [vmem:[%s7162_s4 + $0x58] sm:$0xff] }
 0x1b4   :  { %3572 = vmatprep.subr.bf16.mxu1 %v848_v7  ;;  %v1708_v21 = vld [vmem:[%s7162_s4 + $0x48] sm:$0xff]  ;;  %v4402_v30 = vpack.c.bf16 %v1947_v60, %v1946_v8  ;;  %v1948_v58 = vld [vmem:[#allocation7 + $0x40] sm:$0xff]  ;;  %v4461_v13 = vld [vmem:[%s7159_s1 + $0x34] ss:$8 sps:$4 sm:$0xff]   ;;  %v4378_v26 = vpack.c.bf16 %v1710_v5, %v1709_v20 }
 0x1b5   :  { %v1949_v19 = vld [vmem:[#allocation7 + $0x48] sm:$0xff]  ;;  %v4374_v51 = vpack.c.bf16 %v1708_v21, %v1707_v55  ;;  %v1950_v45 = vld [vmem:[#allocation7 + $0x50] sm:$0xff]  ;;  %v1951_v53 = vld [vmem:[#allocation7 + $0x58] sm:$0xff] }
 0x1b6   :  { %3683 = vmatpush3.bf16.msra.mxu0 %v983_v59  ;;  %v4458_v39 = vld [vmem:[%s7159_s1 + $0x20] ss:$8 sps:$4 sm:$0xff]   ;;  %v4406_v44 = vpack.c.bf16 %v1949_v19, %v1948_v58  ;;  %v4459_v62 = vld [vmem:[#allocation2 + $0x34] ss:$8 sps:$4 sm:$0xff]   ;;  %v4410_v47 = vpack.c.bf16 %v1951_v53, %v1950_v45  ;;  %v4464_v48 = vld [vmem:[%s7159_s1 + $0x30] ss:$8 sps:$4 sm:$0xff]  }
 0x1b7   :  { %3684 = vmatprep.subr.bf16.mxu0 %v992_v15  ;;  %3573 = vmatpush3.bf16.msra.mxu1 %v840_v18  ;;  %v4457_v14 = vld [vmem:[#allocation2 + $0x20] ss:$8 sps:$4 sm:$0xff]   ;;  %v4467_v37 = vld [vmem:[%s7159_s1 + $0x44] ss:$8 sps:$4 sm:$0xff]   ;;  %v4463_v38 = vld [vmem:[#allocation2 + $0x30] ss:$8 sps:$4 sm:$0xff]  }
 0x1b8   :  { %4359 = vmatprep.subr.bf16.mxu1 %v4358_v29  ;;  %v4465_v41 = vld [vmem:[#allocation2 + $0x44] ss:$8 sps:$4 sm:$0xff]   ;;  %v4470_v4 = vld [vmem:[%s7159_s1 + $0x40] ss:$8 sps:$4 sm:$0xff]   ;;  %v4473_v40 = vld [vmem:[%s7159_s1 + $0x54] ss:$8 sps:$4 sm:$0xff]  }
 0x1b9   :  { %v4469_v31 = vld [vmem:[#allocation2 + $0x40] ss:$8 sps:$4 sm:$0xff]   ;;  %v4471_v18 = vld [vmem:[#allocation2 + $0x54] ss:$8 sps:$4 sm:$0xff]   ;;  %v4476_v59 = vld [vmem:[%s7159_s1 + $0x50] ss:$8 sps:$4 sm:$0xff]  }
 0x1ba   :  { %3685 = vmatpush3.bf16.msra.mxu0 %v984_v35  ;;  %1186 = vmatmul.mubr.bf16.vlgmr.msra.gmra.mrb[16].mxu1 %v4444_v24  ;;  %v4479_v17 = vld [vmem:[%s7159_s1 + $0x64] ss:$8 sps:$4 sm:$0xff]   ;;  %v4475_v12 = vld [vmem:[#allocation2 + $0x50] ss:$8 sps:$4 sm:$0xff]   ;;  %v4482_v28 = vld [vmem:[%s7159_s1 + $0x60] ss:$8 sps:$4 sm:$0xff]  }
 0x1bb   :  { %4391 = vmatprep.subr.bf16.mxu0 %v4390_v61  ;;  %1193 = vmatprep.mubr.bf16.mxu1 %v4449_v0  ;;  %v4477_v25 = vld [vmem:[#allocation2 + $0x64] ss:$8 sps:$4 sm:$0xff]   ;;  %v4485_v7 = vld [vmem:[%s7159_s1 + $0x74] ss:$8 sps:$4 sm:$0xff]   ;;  %v4481_v15 = vld [vmem:[#allocation2 + $0x60] ss:$8 sps:$4 sm:$0xff]  }
 0x1bc   :  { %4361 = vmatpush3.bf16.msra.mxu1 %v4358_v29  ;;  %v4483_v35 = vld [vmem:[#allocation2 + $0x74] ss:$8 sps:$4 sm:$0xff]   ;;  %v4488_v11 = vld [vmem:[%s7159_s1 + $0x70] ss:$8 sps:$4 sm:$0xff]   ;;  %v4491_v6 = vld [vmem:[%s7159_s1 + $0x84] ss:$8 sps:$4 sm:$0xff]  }
 0x1bd   :  { %1539 = vmatmul.mubr.bf16.vlgmr.msra.gmra.mrb[16].mxu0 %v4441_v2  ;;  %4363 = vmatprep.subr.bf16.mxu1 %v4362_v56  ;;  %v4487_v24 = vld [vmem:[#allocation2 + $0x70] ss:$8 sps:$4 sm:$0xff]   ;;  %v4489_v22 = vld [vmem:[#allocation2 + $0x84] ss:$8 sps:$4 sm:$0xff]   ;;  %v4494_v0 = vld [vmem:[%s7159_s1 + $0x80] ss:$8 sps:$4 sm:$0xff]  }
 0x1be   :  { %1546 = vmatprep.mubr.bf16.mxu0 %v4447_v49  ;;  %4393 = vmatpush3.bf16.msra.mxu0 %v4390_v61  ;;  %v4497_v61 = vld [vmem:[%s7159_s1 + $0x94] ss:$8 sps:$4 sm:$0xff]   ;;  %v4493_v23 = vld [vmem:[#allocation2 + $0x80] ss:$8 sps:$4 sm:$0xff]   ;;  %v4500_v36 = vld [vmem:[%s7159_s1 + $0x90] ss:$8 sps:$4 sm:$0xff]  }
 0x1bf   :  { %4395 = vmatprep.subr.bf16.mxu0 %v4394_v50  ;;  %v4495_v57 = vld [vmem:[#allocation2 + $0x94] ss:$8 sps:$4 sm:$0xff]   ;;  %v4503_v29 = vld [vmem:[%s7159_s1 + $0xa4] ss:$8 sps:$4 sm:$0xff]   ;;  %v4499_v46 = vld [vmem:[#allocation2 + $0x90] ss:$8 sps:$4 sm:$0xff]  }
 0x1c0   :  { %4365 = vmatpush3.bf16.msra.mxu1 %v4362_v56  ;;  %v4501_v42 = vld [vmem:[#allocation2 + $0xa4] ss:$8 sps:$4 sm:$0xff]   ;;  %v4506_v2 = vld [vmem:[%s7159_s1 + $0xa0] ss:$8 sps:$4 sm:$0xff]   ;;  %v4509_v56 = vld [vmem:[%s7159_s1 + $0xb4] ss:$8 sps:$4 sm:$0xff]  }
 0x1c1   :  { %4367 = vmatprep.subr.bf16.mxu1 %v4366_v52  ;;  %v4505_v49 = vld [vmem:[#allocation2 + $0xa0] ss:$8 sps:$4 sm:$0xff]   ;;  %v4507_v43 = vld [vmem:[#allocation2 + $0xb4] ss:$8 sps:$4 sm:$0xff]   ;;  %v4512_v34 = vld [vmem:[%s7159_s1 + $0xb0] ss:$8 sps:$4 sm:$0xff]  }
 0x1c2   :  { %4397 = vmatpush3.bf16.msra.mxu0 %v4394_v50  ;;  %1194 = vmatmul.mubr.bf16.gmra.mrb[20].mxu1 %v4452_v27  ;;  %v1952_v50 = vld [vmem:[#allocation7 + $0x60] sm:$0xff]  ;;  %v1953_v9 = vld [vmem:[#allocation7 + $0x68] sm:$0xff]  ;;  %v4511_v27 = vld [vmem:[#allocation2 + $0xb0] ss:$8 sps:$4 sm:$0xff]  }
 0x1c3   :  { %4399 = vmatprep.subr.bf16.mxu0 %v4398_v33  ;;  %1201 = vmatprep.mubr.bf16.mxu1 %v4455_v3  ;;  %v4515_v10 = vld [vmem:[%s7159_s1 + $0xc4] ss:$8 sps:$4 sm:$0xff]   ;;  %v1954_v8 = vld [vmem:[#allocation7 + $0x70] sm:$0xff]  ;;  %v1955_v60 = vld [vmem:[#allocation7 + $0x78] sm:$0xff] }
 0x1c4   :  { %4369 = vmatpush3.bf16.msra.mxu1 %v4366_v52  ;;  %v4414_v52 = vpack.c.bf16 %v1953_v9, %v1952_v50  ;;  %v1711_v16 = vld [vmem:[%s7162_s4 + $0x60] sm:$0xff]  ;;  %v1712_v32 = vld [vmem:[%s7162_s4 + $0x68] sm:$0xff]  ;;  %v4519_v19 = vld [vmem:[#allocation2 + $0xd4] ss:$8 sps:$4 sm:$0xff]  }
 0x1c5   :  { %1547 = vmatmul.mubr.bf16.gmra.mrb[20].mxu0 %v4451_v63  ;;  %4371 = vmatprep.subr.bf16.mxu1 %v4370_v54  ;;  %v4513_v3 = vld [vmem:[#allocation2 + $0xc4] ss:$8 sps:$4 sm:$0xff]   ;;  %v4418_v63 = vpack.c.bf16 %v1955_v60, %v1954_v8  ;;  %v4518_v21 = vld [vmem:[%s7159_s1 + $0xc0] ss:$8 sps:$4 sm:$0xff]   ;;  %v4523_v5 = vld [vmem:[#allocation2 + $0xd0] ss:$8 sps:$4 sm:$0xff]  }
 0x1c6   :  { %1554 = vmatprep.mubr.bf16.mxu0 %v4453_v1  ;;  %4401 = vmatpush3.bf16.msra.mxu0 %v4398_v33  ;;  %v4382_v33 = vpack.c.bf16 %v1712_v32, %v1711_v16  ;;  %v1714_v1 = vld [vmem:[%s7162_s4 + $0x78] sm:$0xff]  ;;  %v4517_v58 = vld [vmem:[#allocation2 + $0xc0] ss:$8 sps:$4 sm:$0xff]   ;;  %v4527_v20 = vld [vmem:[%s7159_s1 + $0xe4] ss:$8 sps:$4 sm:$0xff]  }
 0x1c7   :  { %4403 = vmatprep.subr.bf16.mxu0 %v4402_v30  ;;  %v4529_v45 = vld [vmem:[#allocation2 + $0xe0] ss:$8 sps:$4 sm:$0xff]   ;;  %v4531_v53 = vld [vmem:[#allocation2 + $0xf4] ss:$8 sps:$4 sm:$0xff]  }
 0x1c8   :  { %4373 = vmatpush3.bf16.msra.mxu1 %v4370_v54  ;;  %v1713_v54 = vld [vmem:[%s7162_s4 + $0x70] sm:$0xff] }
 0x1c9   :  { %4375 = vmatprep.subr.bf16.mxu1 %v4374_v51  ;;  %v4386_v55 = vpack.c.bf16 %v1714_v1, %v1713_v54 }
 0x1ca   :  { %4405 = vmatpush3.bf16.msra.mxu0 %v4402_v30  ;;  %1202 = vmatmul.mubr.bf16.gmra.mrb[24].mxu1 %v4458_v39  ;;  %v4521_v30 = vld [vmem:[%s7159_s1 + $0xd4] ss:$8 sps:$4 sm:$0xff]   ;;  %v4525_v39 = vld [vmem:[#allocation2 + $0xe4] ss:$8 sps:$4 sm:$0xff]  }
 0x1cb   :  { %4407 = vmatprep.subr.bf16.mxu0 %v4406_v44  ;;  %1209 = vmatprep.mubr.bf16.mxu1 %v4461_v13  ;;  %v4533_v13 = vld [vmem:[%s7159_s1 + $0xf4] ss:$8 sps:$4 sm:$0xff]  }
 0x1cc   :  { %4377 = vmatpush3.bf16.msra.mxu1 %v4374_v51  ;;  %v4524_v51 = vld [vmem:[%s7159_s1 + $0xd0] ss:$8 sps:$4 sm:$0xff]  }
 0x1cd   :  { %1555 = vmatmul.mubr.bf16.gmra.mrb[24].mxu0 %v4457_v14  ;;  %4379 = vmatprep.subr.bf16.mxu1 %v4378_v26  ;;  %v4536_v14 = vld [vmem:[%s7159_s1 + $0xf0] ss:$8 sps:$4 sm:$0xff]  }
 0x1ce   :  { %1562 = vmatprep.mubr.bf16.mxu0 %v4459_v62  ;;  %4409 = vmatpush3.bf16.msra.mxu0 %v4406_v44  ;;  %v4530_v44 = vld [vmem:[%s7159_s1 + $0xe0] ss:$8 sps:$4 sm:$0xff]  }
 0x1cf   :  { %4411 = vmatprep.subr.bf16.mxu0 %v4410_v47 }
 0x1d0   :  { %4381 = vmatpush3.bf16.msra.mxu1 %v4378_v26  ;;  %v4535_v26 = vld [vmem:[#allocation2 + $0xf0] ss:$8 sps:$4 sm:$0xff]  }
 0x1d1   :  { %4383 = vmatprep.subr.bf16.mxu1 %v4382_v33 }
 0x1d2   :  { %4413 = vmatpush3.bf16.msra.mxu0 %v4410_v47  ;;  %1210 = vmatmul.mubr.bf16.gmra.mrb[28].mxu1 %v4464_v48 }
 0x1d3   :  { %1217 = vmatprep.mubr.bf16.mxu1 %v4467_v37  ;;  %4415 = vmatprep.subr.bf16.mxu0 %v4414_v52 }
 0x1d4   :  { %4385 = vmatpush3.bf16.msra.mxu1 %v4382_v33 }
 0x1d5   :  { %1563 = vmatmul.mubr.bf16.gmra.mrb[28].mxu0 %v4463_v38  ;;  %4387 = vmatprep.subr.bf16.mxu1 %v4386_v55 }
 0x1d6   :  { %1570 = vmatprep.mubr.bf16.mxu0 %v4465_v41  ;;  %4417 = vmatpush3.bf16.msra.mxu0 %v4414_v52 }
 0x1d7   :  { %4419 = vmatprep.subr.bf16.mxu0 %v4418_v63 }
 0x1d8   :  { %4389 = vmatpush3.bf16.msra.mxu1 %v4386_v55 }
 0x1da   :  { %1218 = vmatmul.mubr.bf16.gmra.mrb[32].mxu1 %v4470_v4  ;;  %4421 = vmatpush3.bf16.msra.mxu0 %v4418_v63 }
 0x1db   :  { %1225 = vmatprep.mubr.bf16.mxu1 %v4473_v40 }
 0x1dd   :  { %1571 = vmatmul.mubr.bf16.gmra.mrb[32].mxu0 %v4469_v31 }
 0x1de   :  { %1578 = vmatprep.mubr.bf16.mxu0 %v4471_v18 }
 0x1e2   :  { %1226 = vmatmul.mubr.bf16.gmra.mrb[36].mxu1 %v4476_v59 }
 0x1e3   :  { %1233 = vmatprep.mubr.bf16.mxu1 %v4479_v17 }
 0x1e5   :  { %1579 = vmatmul.mubr.bf16.gmra.mrb[36].mxu0 %v4475_v12 }
 0x1e6   :  { %1586 = vmatprep.mubr.bf16.mxu0 %v4477_v25 }
 0x1ea   :  { %1234 = vmatmul.mubr.bf16.gmra.mrb[40].mxu1 %v4482_v28 }
 0x1eb   :  { %1241 = vmatprep.mubr.bf16.mxu1 %v4485_v7 }
 0x1ed   :  { %1587 = vmatmul.mubr.bf16.gmra.mrb[40].mxu0 %v4481_v15 }
 0x1ee   :  { %1594 = vmatprep.mubr.bf16.mxu0 %v4483_v35 }
 0x1f2   :  { %1242 = vmatmul.mubr.bf16.gmra.mrb[44].mxu1 %v4488_v11 }
 0x1f3   :  { %1249 = vmatprep.mubr.bf16.mxu1 %v4491_v6 }
 0x1f5   :  { %1595 = vmatmul.mubr.bf16.gmra.mrb[44].mxu0 %v4487_v24 }
 0x1f6   :  { %1602 = vmatprep.mubr.bf16.mxu0 %v4489_v22 }
 0x1fa   :  { %1250 = vmatmul.mubr.bf16.gmra.mrb[48].mxu1 %v4494_v0 }
 0x1fb   :  { %1257 = vmatprep.mubr.bf16.mxu1 %v4497_v61 }
 0x1fd   :  { %1603 = vmatmul.mubr.bf16.gmra.mrb[48].mxu0 %v4493_v23 }
 0x1fe   :  { %1610 = vmatprep.mubr.bf16.mxu0 %v4495_v57 }
 0x202   :  { %1258 = vmatmul.mubr.bf16.gmra.mrb[52].mxu1 %v4500_v36 }
 0x203   :  { %1265 = vmatprep.mubr.bf16.mxu1 %v4503_v29 }
 0x205   :  { %1611 = vmatmul.mubr.bf16.gmra.mrb[52].mxu0 %v4499_v46 }
 0x206   :  { %1618 = vmatprep.mubr.bf16.mxu0 %v4501_v42 }
 0x20a   :  { %1266 = vmatmul.mubr.bf16.gmra.mrb[56].mxu1 %v4506_v2 }
 0x20b   :  { %1273 = vmatprep.mubr.bf16.mxu1 %v4509_v56 }
 0x20d   :  { %1619 = vmatmul.mubr.bf16.gmra.mrb[56].mxu0 %v4505_v49 }
 0x20e   :  { %1626 = vmatprep.mubr.bf16.mxu0 %v4507_v43 }
 0x212   :  { %1274 = vmatmul.mubr.bf16.gmra.mrb[60].mxu1 %v4512_v34 }
 0x213   :  { %1281 = vmatprep.mubr.bf16.mxu1 %v4515_v10 }
 0x215   :  { %1627 = vmatmul.mubr.bf16.gmra.mrb[60].mxu0 %v4511_v27 }
 0x216   :  { %1634 = vmatprep.mubr.bf16.mxu0 %v4513_v3 }
 0x21a   :  { %1282 = vmatmul.mubr.bf16.gmra.mrb[64].mxu1 %v4518_v21 }
 0x21b   :  { %1289 = vmatprep.mubr.bf16.mxu1 %v4521_v30 }
 0x21d   :  { %1635 = vmatmul.mubr.bf16.gmra.mrb[64].mxu0 %v4517_v58 }
 0x21e   :  { %1642 = vmatprep.mubr.bf16.mxu0 %v4519_v19 }
 0x222   :  { %1290 = vmatmul.mubr.bf16.gmra.mrb[68].mxu1 %v4524_v51 }
 0x223   :  { %1297 = vmatprep.mubr.bf16.mxu1 %v4527_v20 }
 0x225   :  { %1643 = vmatmul.mubr.bf16.gmra.mrb[68].mxu0 %v4523_v5 }
 0x226   :  { %1650 = vmatprep.mubr.bf16.mxu0 %v4525_v39 }
 0x22a   :  { %1298 = vmatmul.mubr.bf16.gmra.mrb[72].mxu1 %v4530_v44 }
 0x22b   :  { %1305 = vmatprep.mubr.bf16.mxu1 %v4533_v13 }
 0x22d   :  { %1651 = vmatmul.mubr.bf16.gmra.mrb[72].mxu0 %v4529_v45 }
 0x22e   :  { %1658 = vmatprep.mubr.bf16.mxu0 %v4531_v53 }
 0x232   :  { %1306 = vmatmul.mubr.bf16.gmra.mrb[76].mxu1 %v4536_v14 }
 0x235   :  { %1659 = vmatmul.mubr.bf16.gmra.mrb[76].mxu0 %v4535_v26 }
 0x28d   :  { %v3574_v62 = vpop.f32.mrb[16].mxu1 }
 0x28e   :  { %v3575_v47 = vpop.f32.mrb[17].mxu1 }
 0x28f   :  { %v3576_v37 = vadd.f32 %v3575_v47, %v3574_v62  ;;  %v3577_v38 = vpop.f32.mrb[18].mxu1 }
 0x290   :  { %v3686_v48 = vpop.f32.mrb[16].mxu0  ;;  %v3578_v4 = vpop.f32.mrb[19].mxu1 }
 0x291   :  { %v3687_v41 = vpop.f32.mrb[17].mxu0  ;;  %v1314_v31 = vmax.f32 %v3576_v37, 0.0  ;;  %v3579_v59 = vadd.f32 %v3578_v4, %v3577_v38 }
 0x292   :  { %v3688_v40 = vadd.f32 %v3687_v41, %v3686_v48  ;;  %v3689_v18 = vpop.f32.mrb[18].mxu0 }
 0x293   :  { %v3690_v17 = vpop.f32.mrb[19].mxu0  ;;  %v1315_v28 = vmax.f32 %v3579_v59, 0.0  ;;  %4206 = vmatprep.mubr.f32.mxu1 %v1314_v31 }
 0x294   :  { %v1667_v12 = vmax.f32 %v3688_v40, 0.0  ;;  %v3691_v25 = vadd.f32 %v3690_v17, %v3689_v18 }
 0x295   :  { %v3580_v15 = vpop.f32.mrb[20].mxu1  ;;  %4207 = vmatmul.mubr.f32.vlgmr.msra.gmra.mrb[80].mxu1 %v1315_v28 }
 0x296   :  { %v1668_v7 = vmax.f32 %v3691_v25, 0.0  ;;  %4286 = vmatprep.mubr.f32.mxu0 %v1667_v12  ;;  %v3581_v35 = vpop.f32.mrb[21].mxu1 }
 0x297   :  { %v3582_v6 = vadd.f32 %v3581_v35, %v3580_v15  ;;  %v3583_v24 = vpop.f32.mrb[22].mxu1 }
 0x298   :  { %v3692_v11 = vpop.f32.mrb[20].mxu0  ;;  %4287 = vmatmul.mubr.f32.vlgmr.msra.gmra.mrb[80].mxu0 %v1668_v7  ;;  %v3584_v0 = vpop.f32.mrb[23].mxu1 }
 0x299   :  { %v3693_v22 = vpop.f32.mrb[21].mxu0  ;;  %v1316_v23 = vmax.f32 %v3582_v6, 0.0  ;;  %v3585_v36 = vadd.f32 %v3584_v0, %v3583_v24 }
 0x29a   :  { %v3694_v61 = vadd.f32 %v3693_v22, %v3692_v11  ;;  %v3695_v57 = vpop.f32.mrb[22].mxu0 }
 0x29b   :  { %v3696_v29 = vpop.f32.mrb[23].mxu0  ;;  %v1317_v2 = vmax.f32 %v3585_v36, 0.0  ;;  %4209 = vmatprep.mubr.f32.mxu1 %v1316_v23 }
 0x29c   :  { %v1669_v46 = vmax.f32 %v3694_v61, 0.0  ;;  %v3697_v42 = vadd.f32 %v3696_v29, %v3695_v57 }
 0x29d   :  { %v3586_v49 = vpop.f32.mrb[24].mxu1  ;;  %4210 = vmatmul.mubr.f32.gmra.mrb[82].mxu1 %v1317_v2 }
 0x29e   :  { %v1670_v56 = vmax.f32 %v3697_v42, 0.0  ;;  %4289 = vmatprep.mubr.f32.mxu0 %v1669_v46  ;;  %v3587_v43 = vpop.f32.mrb[25].mxu1 }
 0x29f   :  { %v3588_v50 = vadd.f32 %v3587_v43, %v3586_v49  ;;  %v3589_v9 = vpop.f32.mrb[26].mxu1 }
 0x2a0   :  { %v3698_v34 = vpop.f32.mrb[24].mxu0  ;;  %4290 = vmatmul.mubr.f32.gmra.mrb[82].mxu0 %v1670_v56  ;;  %v3590_v52 = vpop.f32.mrb[27].mxu1 }
 0x2a1   :  { %v3699_v10 = vpop.f32.mrb[25].mxu0  ;;  %v1318_v32 = vmax.f32 %v3588_v50, 0.0  ;;  %v3591_v33 = vadd.f32 %v3590_v52, %v3589_v9 }
 0x2a2   :  { %v3700_v16 = vadd.f32 %v3699_v10, %v3698_v34  ;;  %v3701_v27 = vpop.f32.mrb[26].mxu0 }
 0x2a3   :  { %v3702_v3 = vpop.f32.mrb[27].mxu0  ;;  %v1319_v63 = vmax.f32 %v3591_v33, 0.0  ;;  %4212 = vmatprep.mubr.f32.mxu1 %v1318_v32 }
 0x2a4   :  { %v1671_v8 = vmax.f32 %v3700_v16, 0.0  ;;  %v3703_v60 = vadd.f32 %v3702_v3, %v3701_v27 }
 0x2a5   :  { %v3592_v1 = vpop.f32.mrb[28].mxu1  ;;  %4213 = vmatmul.mubr.f32.gmra.mrb[84].mxu1 %v1319_v63 }
 0x2a6   :  { %v1672_v54 = vmax.f32 %v3703_v60, 0.0  ;;  %4292 = vmatprep.mubr.f32.mxu0 %v1671_v8  ;;  %v3593_v55 = vpop.f32.mrb[29].mxu1 }
 0x2a7   :  { %v3594_v30 = vadd.f32 %v3593_v55, %v3592_v1  ;;  %v3595_v58 = vpop.f32.mrb[30].mxu1 }
 0x2a8   :  { %v3704_v21 = vpop.f32.mrb[28].mxu0  ;;  %4293 = vmatmul.mubr.f32.gmra.mrb[84].mxu0 %v1672_v54  ;;  %v3596_v51 = vpop.f32.mrb[31].mxu1 }
 0x2a9   :  { %v3705_v19 = vpop.f32.mrb[29].mxu0  ;;  %v1320_v5 = vmax.f32 %v3594_v30, 0.0  ;;  %v3597_v44 = vadd.f32 %v3596_v51, %v3595_v58 }
 0x2aa   :  { %v3706_v20 = vadd.f32 %v3705_v19, %v3704_v21  ;;  %v3707_v39 = vpop.f32.mrb[30].mxu0 }
 0x2ab   :  { %v3708_v13 = vpop.f32.mrb[31].mxu0  ;;  %v1321_v14 = vmax.f32 %v3597_v44, 0.0  ;;  %4215 = vmatprep.mubr.f32.mxu1 %v1320_v5 }
 0x2ac   :  { %v1673_v45 = vmax.f32 %v3706_v20, 0.0  ;;  %v3709_v53 = vadd.f32 %v3708_v13, %v3707_v39 }
 0x2ad   :  { %v3598_v62 = vpop.f32.mrb[32].mxu1  ;;  %4216 = vmatmul.mubr.f32.gmra.mrb[86].mxu1 %v1321_v14 }
 0x2ae   :  { %v1674_v26 = vmax.f32 %v3709_v53, 0.0  ;;  %4295 = vmatprep.mubr.f32.mxu0 %v1673_v45  ;;  %v3599_v47 = vpop.f32.mrb[33].mxu1 }
 0x2af   :  { %v3600_v37 = vadd.f32 %v3599_v47, %v3598_v62  ;;  %v3601_v38 = vpop.f32.mrb[34].mxu1 }
 0x2b0   :  { %v3710_v48 = vpop.f32.mrb[32].mxu0  ;;  %4296 = vmatmul.mubr.f32.gmra.mrb[86].mxu0 %v1674_v26  ;;  %v3602_v4 = vpop.f32.mrb[35].mxu1 }
 0x2b1   :  { %v3711_v41 = vpop.f32.mrb[33].mxu0  ;;  %v1322_v31 = vmax.f32 %v3600_v37, 0.0  ;;  %v3603_v59 = vadd.f32 %v3602_v4, %v3601_v38 }
 0x2b2   :  { %v3712_v40 = vadd.f32 %v3711_v41, %v3710_v48  ;;  %v3713_v18 = vpop.f32.mrb[34].mxu0 }
 0x2b3   :  { %v3714_v17 = vpop.f32.mrb[35].mxu0  ;;  %v1323_v28 = vmax.f32 %v3603_v59, 0.0  ;;  %4218 = vmatprep.mubr.f32.mxu1 %v1322_v31 }
 0x2b4   :  { %v1675_v12 = vmax.f32 %v3712_v40, 0.0  ;;  %v3715_v25 = vadd.f32 %v3714_v17, %v3713_v18 }
 0x2b5   :  { %v3604_v15 = vpop.f32.mrb[36].mxu1  ;;  %4219 = vmatmul.mubr.f32.gmra.mrb[88].mxu1 %v1323_v28 }
 0x2b6   :  { %v1676_v7 = vmax.f32 %v3715_v25, 0.0  ;;  %4298 = vmatprep.mubr.f32.mxu0 %v1675_v12  ;;  %v3605_v35 = vpop.f32.mrb[37].mxu1 }
 0x2b7   :  { %v3606_v6 = vadd.f32 %v3605_v35, %v3604_v15  ;;  %v3607_v24 = vpop.f32.mrb[38].mxu1 }
 0x2b8   :  { %v3716_v11 = vpop.f32.mrb[36].mxu0  ;;  %4299 = vmatmul.mubr.f32.gmra.mrb[88].mxu0 %v1676_v7  ;;  %v3608_v0 = vpop.f32.mrb[39].mxu1 }
 0x2b9   :  { %v3717_v22 = vpop.f32.mrb[37].mxu0  ;;  %v1324_v23 = vmax.f32 %v3606_v6, 0.0  ;;  %v3609_v36 = vadd.f32 %v3608_v0, %v3607_v24 }
 0x2ba   :  { %v3718_v61 = vadd.f32 %v3717_v22, %v3716_v11  ;;  %v3719_v57 = vpop.f32.mrb[38].mxu0 }
 0x2bb   :  { %v3720_v29 = vpop.f32.mrb[39].mxu0  ;;  %v1325_v2 = vmax.f32 %v3609_v36, 0.0  ;;  %4221 = vmatprep.mubr.f32.mxu1 %v1324_v23 }
 0x2bc   :  { %v1677_v46 = vmax.f32 %v3718_v61, 0.0  ;;  %v3721_v42 = vadd.f32 %v3720_v29, %v3719_v57 }
 0x2bd   :  { %v3610_v49 = vpop.f32.mrb[40].mxu1  ;;  %4222 = vmatmul.mubr.f32.gmra.mrb[90].mxu1 %v1325_v2 }
 0x2be   :  { %v1678_v56 = vmax.f32 %v3721_v42, 0.0  ;;  %4301 = vmatprep.mubr.f32.mxu0 %v1677_v46  ;;  %v3611_v43 = vpop.f32.mrb[41].mxu1 }
 0x2bf   :  { %v3612_v50 = vadd.f32 %v3611_v43, %v3610_v49  ;;  %v3613_v9 = vpop.f32.mrb[42].mxu1 }
 0x2c0   :  { %v3722_v34 = vpop.f32.mrb[40].mxu0  ;;  %4302 = vmatmul.mubr.f32.gmra.mrb[90].mxu0 %v1678_v56  ;;  %v3614_v52 = vpop.f32.mrb[43].mxu1 }
 0x2c1   :  { %v3723_v10 = vpop.f32.mrb[41].mxu0  ;;  %v1326_v32 = vmax.f32 %v3612_v50, 0.0  ;;  %v3615_v33 = vadd.f32 %v3614_v52, %v3613_v9 }
 0x2c2   :  { %v3724_v16 = vadd.f32 %v3723_v10, %v3722_v34  ;;  %v3725_v27 = vpop.f32.mrb[42].mxu0 }
 0x2c3   :  { %v3726_v3 = vpop.f32.mrb[43].mxu0  ;;  %v1327_v63 = vmax.f32 %v3615_v33, 0.0  ;;  %4224 = vmatprep.mubr.f32.mxu1 %v1326_v32 }
 0x2c4   :  { %v1679_v8 = vmax.f32 %v3724_v16, 0.0  ;;  %v3727_v60 = vadd.f32 %v3726_v3, %v3725_v27 }
 0x2c5   :  { %v3616_v1 = vpop.f32.mrb[44].mxu1  ;;  %4225 = vmatmul.mubr.f32.gmra.mrb[92].mxu1 %v1327_v63 }
 0x2c6   :  { %v1680_v54 = vmax.f32 %v3727_v60, 0.0  ;;  %4304 = vmatprep.mubr.f32.mxu0 %v1679_v8  ;;  %v3617_v55 = vpop.f32.mrb[45].mxu1 }
 0x2c7   :  { %v3618_v30 = vadd.f32 %v3617_v55, %v3616_v1  ;;  %v3619_v58 = vpop.f32.mrb[46].mxu1 }
 0x2c8   :  { %v3728_v21 = vpop.f32.mrb[44].mxu0  ;;  %4305 = vmatmul.mubr.f32.gmra.mrb[92].mxu0 %v1680_v54  ;;  %v3620_v51 = vpop.f32.mrb[47].mxu1 }
 0x2c9   :  { %v3729_v19 = vpop.f32.mrb[45].mxu0  ;;  %v1328_v5 = vmax.f32 %v3618_v30, 0.0  ;;  %v3621_v44 = vadd.f32 %v3620_v51, %v3619_v58 }
 0x2ca   :  { %v3730_v20 = vadd.f32 %v3729_v19, %v3728_v21  ;;  %v3731_v39 = vpop.f32.mrb[46].mxu0 }
 0x2cb   :  { %v3732_v13 = vpop.f32.mrb[47].mxu0  ;;  %v1329_v14 = vmax.f32 %v3621_v44, 0.0  ;;  %4227 = vmatprep.mubr.f32.mxu1 %v1328_v5 }
 0x2cc   :  { %v1681_v45 = vmax.f32 %v3730_v20, 0.0  ;;  %v3733_v53 = vadd.f32 %v3732_v13, %v3731_v39 }
 0x2cd   :  { %v3622_v62 = vpop.f32.mrb[48].mxu1  ;;  %4228 = vmatmul.mubr.f32.gmra.mrb[94].mxu1 %v1329_v14 }
 0x2ce   :  { %v1682_v26 = vmax.f32 %v3733_v53, 0.0  ;;  %4307 = vmatprep.mubr.f32.mxu0 %v1681_v45  ;;  %v3623_v47 = vpop.f32.mrb[49].mxu1 }
 0x2cf   :  { %v3624_v37 = vadd.f32 %v3623_v47, %v3622_v62  ;;  %v3625_v38 = vpop.f32.mrb[50].mxu1 }
 0x2d0   :  { %v3734_v48 = vpop.f32.mrb[48].mxu0  ;;  %4308 = vmatmul.mubr.f32.gmra.mrb[94].mxu0 %v1682_v26  ;;  %v3626_v4 = vpop.f32.mrb[51].mxu1 }
 0x2d1   :  { %v3735_v41 = vpop.f32.mrb[49].mxu0  ;;  %v1330_v31 = vmax.f32 %v3624_v37, 0.0  ;;  %v3627_v59 = vadd.f32 %v3626_v4, %v3625_v38 }
 0x2d2   :  { %v3736_v40 = vadd.f32 %v3735_v41, %v3734_v48  ;;  %v3737_v18 = vpop.f32.mrb[50].mxu0 }
 0x2d3   :  { %v3738_v17 = vpop.f32.mrb[51].mxu0  ;;  %v1331_v28 = vmax.f32 %v3627_v59, 0.0  ;;  %4230 = vmatprep.mubr.f32.mxu1 %v1330_v31 }
 0x2d4   :  { %v1683_v12 = vmax.f32 %v3736_v40, 0.0  ;;  %v3739_v25 = vadd.f32 %v3738_v17, %v3737_v18 }
 0x2d5   :  { %v3628_v15 = vpop.f32.mrb[52].mxu1  ;;  %4231 = vmatmul.mubr.f32.gmra.mrb[96].mxu1 %v1331_v28 }
 0x2d6   :  { %v1684_v7 = vmax.f32 %v3739_v25, 0.0  ;;  %4310 = vmatprep.mubr.f32.mxu0 %v1683_v12  ;;  %v3629_v35 = vpop.f32.mrb[53].mxu1 }
 0x2d7   :  { %v3630_v6 = vadd.f32 %v3629_v35, %v3628_v15  ;;  %v3631_v24 = vpop.f32.mrb[54].mxu1 }
 0x2d8   :  { %v3740_v11 = vpop.f32.mrb[52].mxu0  ;;  %4311 = vmatmul.mubr.f32.gmra.mrb[96].mxu0 %v1684_v7  ;;  %v3632_v0 = vpop.f32.mrb[55].mxu1 }
 0x2d9   :  { %v3741_v22 = vpop.f32.mrb[53].mxu0  ;;  %v1332_v23 = vmax.f32 %v3630_v6, 0.0  ;;  %v3633_v36 = vadd.f32 %v3632_v0, %v3631_v24 }
 0x2da   :  { %v3742_v61 = vadd.f32 %v3741_v22, %v3740_v11  ;;  %v3743_v57 = vpop.f32.mrb[54].mxu0 }
 0x2db   :  { %v3744_v29 = vpop.f32.mrb[55].mxu0  ;;  %v1333_v2 = vmax.f32 %v3633_v36, 0.0  ;;  %4233 = vmatprep.mubr.f32.mxu1 %v1332_v23 }
 0x2dc   :  { %v1685_v46 = vmax.f32 %v3742_v61, 0.0  ;;  %v3745_v42 = vadd.f32 %v3744_v29, %v3743_v57 }
 0x2dd   :  { %v3634_v49 = vpop.f32.mrb[56].mxu1  ;;  %4234 = vmatmul.mubr.f32.gmra.mrb[98].mxu1 %v1333_v2 }
 0x2de   :  { %v1686_v56 = vmax.f32 %v3745_v42, 0.0  ;;  %4313 = vmatprep.mubr.f32.mxu0 %v1685_v46  ;;  %v3635_v43 = vpop.f32.mrb[57].mxu1 }
 0x2df   :  { %v3636_v50 = vadd.f32 %v3635_v43, %v3634_v49  ;;  %v3637_v9 = vpop.f32.mrb[58].mxu1 }
 0x2e0   :  { %v3746_v34 = vpop.f32.mrb[56].mxu0  ;;  %4314 = vmatmul.mubr.f32.gmra.mrb[98].mxu0 %v1686_v56  ;;  %v3638_v52 = vpop.f32.mrb[59].mxu1 }
 0x2e1   :  { %v3747_v10 = vpop.f32.mrb[57].mxu0  ;;  %v1334_v32 = vmax.f32 %v3636_v50, 0.0  ;;  %v3639_v33 = vadd.f32 %v3638_v52, %v3637_v9 }
 0x2e2   :  { %v3748_v16 = vadd.f32 %v3747_v10, %v3746_v34  ;;  %v3749_v27 = vpop.f32.mrb[58].mxu0 }
 0x2e3   :  { %v3750_v3 = vpop.f32.mrb[59].mxu0  ;;  %v1335_v63 = vmax.f32 %v3639_v33, 0.0  ;;  %4236 = vmatprep.mubr.f32.mxu1 %v1334_v32 }
 0x2e4   :  { %v1687_v8 = vmax.f32 %v3748_v16, 0.0  ;;  %v3751_v60 = vadd.f32 %v3750_v3, %v3749_v27 }
 0x2e5   :  { %v3640_v1 = vpop.f32.mrb[60].mxu1  ;;  %4237 = vmatmul.mubr.f32.gmra.mrb[100].mxu1 %v1335_v63 }
 0x2e6   :  { %v1688_v54 = vmax.f32 %v3751_v60, 0.0  ;;  %4316 = vmatprep.mubr.f32.mxu0 %v1687_v8  ;;  %v3641_v55 = vpop.f32.mrb[61].mxu1 }
 0x2e7   :  { %v3642_v30 = vadd.f32 %v3641_v55, %v3640_v1  ;;  %v3643_v58 = vpop.f32.mrb[62].mxu1 }
 0x2e8   :  { %v3752_v21 = vpop.f32.mrb[60].mxu0  ;;  %4317 = vmatmul.mubr.f32.gmra.mrb[100].mxu0 %v1688_v54  ;;  %v3644_v51 = vpop.f32.mrb[63].mxu1 }
 0x2e9   :  { %v3753_v19 = vpop.f32.mrb[61].mxu0  ;;  %v1336_v5 = vmax.f32 %v3642_v30, 0.0  ;;  %v3645_v44 = vadd.f32 %v3644_v51, %v3643_v58 }
 0x2ea   :  { %v3754_v20 = vadd.f32 %v3753_v19, %v3752_v21  ;;  %v3755_v39 = vpop.f32.mrb[62].mxu0 }
 0x2eb   :  { %v3756_v13 = vpop.f32.mrb[63].mxu0  ;;  %v1337_v14 = vmax.f32 %v3645_v44, 0.0  ;;  %4239 = vmatprep.mubr.f32.mxu1 %v1336_v5 }
 0x2ec   :  { %v1689_v45 = vmax.f32 %v3754_v20, 0.0  ;;  %v3757_v53 = vadd.f32 %v3756_v13, %v3755_v39 }
 0x2ed   :  { %v3646_v62 = vpop.f32.mrb[64].mxu1  ;;  %4240 = vmatmul.mubr.f32.gmra.mrb[102].mxu1 %v1337_v14 }
 0x2ee   :  { %v1690_v26 = vmax.f32 %v3757_v53, 0.0  ;;  %4319 = vmatprep.mubr.f32.mxu0 %v1689_v45  ;;  %v3647_v47 = vpop.f32.mrb[65].mxu1 }
 0x2ef   :  { %v3648_v37 = vadd.f32 %v3647_v47, %v3646_v62  ;;  %v3649_v38 = vpop.f32.mrb[66].mxu1  ;;  %v4985_v62 = vld [vmem:[%s7159_s1 + $0x4] ss:$8 sps:$4 sm:$0xff]  }
 0x2f0   :  { %v3758_v48 = vpop.f32.mrb[64].mxu0  ;;  %4320 = vmatmul.mubr.f32.gmra.mrb[102].mxu0 %v1690_v26  ;;  %v3650_v4 = vpop.f32.mrb[67].mxu1  ;;  %v4986_v47 = vld [vmem:[#allocation2 + $0x4] ss:$8 sps:$4 sm:$0xff]  }
 0x2f1   :  { %v3759_v41 = vpop.f32.mrb[65].mxu0  ;;  %v1338_v31 = vmax.f32 %v3648_v37, 0.0  ;;  %v3651_v59 = vadd.f32 %v3650_v4, %v3649_v38 }
 0x2f2   :  { %v3760_v40 = vadd.f32 %v3759_v41, %v3758_v48  ;;  %v3761_v18 = vpop.f32.mrb[66].mxu0 }
 0x2f3   :  { %v3762_v17 = vpop.f32.mrb[67].mxu0  ;;  %v1339_v28 = vmax.f32 %v3651_v59, 0.0  ;;  %4242 = vmatprep.mubr.f32.mxu1 %v1338_v31 }
 0x2f4   :  { %v1691_v12 = vmax.f32 %v3760_v40, 0.0  ;;  %v3763_v25 = vadd.f32 %v3762_v17, %v3761_v18 }
 0x2f5   :  { %v3652_v15 = vpop.f32.mrb[68].mxu1  ;;  %4243 = vmatmul.mubr.f32.gmra.mrb[104].mxu1 %v1339_v28 }
 0x2f6   :  { %v1692_v7 = vmax.f32 %v3763_v25, 0.0  ;;  %4322 = vmatprep.mubr.f32.mxu0 %v1691_v12  ;;  %v3653_v35 = vpop.f32.mrb[69].mxu1 }
 0x2f7   :  { %v3654_v6 = vadd.f32 %v3653_v35, %v3652_v15  ;;  %v3655_v24 = vpop.f32.mrb[70].mxu1 }
 0x2f8   :  { %v3764_v11 = vpop.f32.mrb[68].mxu0  ;;  %4323 = vmatmul.mubr.f32.gmra.mrb[104].mxu0 %v1692_v7  ;;  %v3656_v0 = vpop.f32.mrb[71].mxu1 }
 0x2f9   :  { %v3765_v22 = vpop.f32.mrb[69].mxu0  ;;  %v1340_v23 = vmax.f32 %v3654_v6, 0.0  ;;  %v3657_v36 = vadd.f32 %v3656_v0, %v3655_v24 }
 0x2fa   :  { %v3766_v61 = vadd.f32 %v3765_v22, %v3764_v11  ;;  %v3767_v57 = vpop.f32.mrb[70].mxu0 }
 0x2fb   :  { %v3768_v29 = vpop.f32.mrb[71].mxu0  ;;  %v1341_v2 = vmax.f32 %v3657_v36, 0.0  ;;  %4245 = vmatprep.mubr.f32.mxu1 %v1340_v23 }
 0x2fc   :  { %v1693_v46 = vmax.f32 %v3766_v61, 0.0  ;;  %v3769_v42 = vadd.f32 %v3768_v29, %v3767_v57 }
 0x2fd   :  { %v3658_v49 = vpop.f32.mrb[72].mxu1  ;;  %4246 = vmatmul.mubr.f32.gmra.mrb[106].mxu1 %v1341_v2 }
 0x2fe   :  { %v1694_v56 = vmax.f32 %v3769_v42, 0.0  ;;  %4325 = vmatprep.mubr.f32.mxu0 %v1693_v46  ;;  %v3659_v43 = vpop.f32.mrb[73].mxu1 }
 0x2ff   :  { %v3660_v50 = vadd.f32 %v3659_v43, %v3658_v49  ;;  %v3661_v9 = vpop.f32.mrb[74].mxu1 }
 0x300   :  { %v3770_v34 = vpop.f32.mrb[72].mxu0  ;;  %4326 = vmatmul.mubr.f32.gmra.mrb[106].mxu0 %v1694_v56  ;;  %v3662_v52 = vpop.f32.mrb[75].mxu1 }
 0x301   :  { %v3771_v10 = vpop.f32.mrb[73].mxu0  ;;  %v1342_v32 = vmax.f32 %v3660_v50, 0.0  ;;  %v3663_v33 = vadd.f32 %v3662_v52, %v3661_v9 }
 0x302   :  { %v3772_v16 = vadd.f32 %v3771_v10, %v3770_v34  ;;  %v3773_v27 = vpop.f32.mrb[74].mxu0 }
 0x303   :  { %v3774_v3 = vpop.f32.mrb[75].mxu0  ;;  %v1343_v63 = vmax.f32 %v3663_v33, 0.0  ;;  %4248 = vmatprep.mubr.f32.mxu1 %v1342_v32 }
 0x304   :  { %v1695_v8 = vmax.f32 %v3772_v16, 0.0  ;;  %v3775_v60 = vadd.f32 %v3774_v3, %v3773_v27 }
 0x305   :  { %v3664_v1 = vpop.f32.mrb[76].mxu1  ;;  %4249 = vmatmul.mubr.f32.gmra.mrb[108].mxu1 %v1343_v63 }
 0x306   :  { %v1696_v54 = vmax.f32 %v3775_v60, 0.0  ;;  %4328 = vmatprep.mubr.f32.mxu0 %v1695_v8  ;;  %v3665_v55 = vpop.f32.mrb[77].mxu1 }
 0x307   :  { %v3666_v30 = vadd.f32 %v3665_v55, %v3664_v1  ;;  %v3667_v58 = vpop.f32.mrb[78].mxu1 }
 0x308   :  { %v3776_v21 = vpop.f32.mrb[76].mxu0  ;;  %4329 = vmatmul.mubr.f32.gmra.mrb[108].mxu0 %v1696_v54  ;;  %v3668_v51 = vpop.f32.mrb[79].mxu1 }
 0x309   :  { %v3777_v19 = vpop.f32.mrb[77].mxu0  ;;  %v1344_v5 = vmax.f32 %v3666_v30, 0.0  ;;  %v3669_v44 = vadd.f32 %v3668_v51, %v3667_v58 }
 0x30a   :  { %v3778_v20 = vadd.f32 %v3777_v19, %v3776_v21  ;;  %v3779_v39 = vpop.f32.mrb[78].mxu0 }
 0x30b   :  { %v3780_v13 = vpop.f32.mrb[79].mxu0  ;;  %v1345_v14 = vmax.f32 %v3669_v44, 0.0  ;;  %4251 = vmatprep.mubr.f32.mxu1 %v1344_v5 }
 0x30c   :  { %v1697_v45 = vmax.f32 %v3778_v20, 0.0  ;;  %v3781_v53 = vadd.f32 %v3780_v13, %v3779_v39 }
 0x30d   :  { %4252 = vmatmul.mubr.f32.gmra.mrb[110].mxu1 %v1345_v14 }
 0x30e   :  { %v1698_v26 = vmax.f32 %v3781_v53, 0.0  ;;  %4331 = vmatprep.mubr.f32.mxu0 %v1697_v45  ;;  %2693 = vmatprep.mubr.bf16.mxu1 %v4985_v62 }
 0x310   :  { %4332 = vmatmul.mubr.f32.gmra.mrb[110].mxu0 %v1698_v26 }
 0x311   :  { %2886 = vmatprep.mubr.bf16.mxu0 %v4986_v47 }
 0x368   :  { %v4208_v48 = vpop.f32.mrb[80].mxu1 }
 0x369   :  { %v2215_v37 = vmul.f32 1.442695, %v4208_v48  ;;  %v1781_v38 = vpop.f32.mrb[81].mxu1  ;;  %vm2182_vm1 = vcmp.gt.f32.partialorder %v4208_v48, 0.0 }
 0x36a   :  { %v2213_v4 = vmul.f32 1.442695, %v1781_v38  ;;  %vm2181_vm2 = vcmp.gt.f32.partialorder %v1781_v38, 0.0 }
 0x36b   :  { %v4288_v41 = vpop.f32.mrb[80].mxu0  ;;  %4729 = vpow2.f32 %v2215_v37 }
 0x36c   :  { %v2342_v40 = vmax.f32 %v4288_v41, 0.0  ;;  %v2022_v31 = vpop.f32.mrb[81].mxu0  ;;  %4731 = vpow2.f32 %v2213_v4 }
 0x36d   :  { %v6240_v18 = vmax.f32 %v2022_v31, 0.0 }
 0x36e   :  { %v2374_v59 = vmul.f32 -1.0, %v2342_v40  ;;  %v2518_v17 = vmul.f32 -2.0, %v2342_v40 }
 0x36f   :  { %v2373_v12 = vmul.f32 -1.0, %v6240_v18  ;;  %v2517_v25 = vmul.f32 -2.0, %v6240_v18 }
 0x370   :  { %v2407_v28 = vmul.f32 1.442695, %v2374_v59  ;;  %v2551_v7 = vmul.f32 1.442695, %v2518_v17  ;;  %v6244_v11 = vpop.f32.mrb[82].mxu1 }
 0x371   :  { %v2405_v15 = vmul.f32 1.442695, %v2373_v12  ;;  %v2549_v35 = vmul.f32 1.442695, %v2517_v25  ;;  %v2219_v6 = vmul.f32 1.442695, %v6244_v11 }
 0x372   :  { %4733 = vpow2.f32 %v2407_v28  ;;  %v6247_v24 = vpop.f32.mrb[83].mxu1  ;;  %vm2184_vm3 = vcmp.gt.f32.partialorder %v6244_v11, 0.0 }
 0x373   :  { %4735 = vpow2.f32 %v2551_v7  ;;  %v4291_v22 = vpop.f32.mrb[82].mxu0  ;;  %v2217_v0 = vmul.f32 1.442695, %v6247_v24  ;;  %vm2183_vm4 = vcmp.gt.f32.partialorder %v6247_v24, 0.0 }
 0x374   :  { %4737 = vpow2.f32 %v2405_v15  ;;  %v6250_v61 = vmax.f32 %v4291_v22, 0.0  ;;  %v2032_v23 = vpop.f32.mrb[83].mxu0 }
 0x375   :  { %4739 = vpow2.f32 %v2549_v35  ;;  %v6252_v57 = vmax.f32 %v2032_v23, 0.0  ;;  %v4730_v36 = vpop.eup %4729 }
 0x376   :  { %v2376_v29 = vmul.f32 -1.0, %v6250_v61  ;;  %v2520_v46 = vmul.f32 -2.0, %v6250_v61  ;;  %4741 = vpow2.f32 %v2219_v6  ;;  %v4732_v42 = vpop.eup %4731  ;;  %v3483_v2 = vadd.f32 -1.0, %v4730_v36 }
 0x377   :  { %v2375_v56 = vmul.f32 -1.0, %v6252_v57  ;;  %v2519_v49 = vmul.f32 -2.0, %v6252_v57  ;;  %4743 = vpow2.f32 %v2217_v0  ;;  %v3482_v43 = vadd.f32 -1.0, %v4732_v42 }
 0x378   :  { %v2411_v34 = vmul.f32 1.442695, %v2376_v29  ;;  %v2555_v50 = vmul.f32 1.442695, %v2520_v46  ;;  %v6258_v52 = vpop.f32.mrb[84].mxu1  ;;  %v2310_v16 = vsel %vm2182_vm1, %v4208_v48, %v3483_v2 }
 0x379   :  { %v2409_v9 = vmul.f32 1.442695, %v2375_v56  ;;  %v2553_v10 = vmul.f32 1.442695, %v2519_v49  ;;  %v2223_v32 = vmul.f32 1.442695, %v6258_v52  ;;  %v2309_v60 = vsel %vm2181_vm2, %v1781_v38, %v3482_v43 }
 0x37a   :  { %4745 = vpow2.f32 %v2411_v34  ;;  %v6262_v27 = vpop.f32.mrb[85].mxu1  ;;  %vm2186_vm5 = vcmp.gt.f32.partialorder %v6258_v52, 0.0 }
 0x37b   :  { %4747 = vpow2.f32 %v2555_v50  ;;  %v4294_v33 = vpop.f32.mrb[84].mxu0  ;;  %v2221_v3 = vmul.f32 1.442695, %v6262_v27  ;;  %vm2185_vm6 = vcmp.gt.f32.partialorder %v6262_v27, 0.0 }
 0x37c   :  { %v4734_v8 = vpop.eup %4733  ;;  %4749 = vpow2.f32 %v2409_v9  ;;  %v6265_v63 = vmax.f32 %v4294_v33, 0.0  ;;  %v2042_v54 = vpop.f32.mrb[85].mxu0 }
 0x37d   :  { %v4736_v1 = vpop.eup %4735  ;;  %v6267_v55 = vmul.f32 %v4734_v8, %v2310_v16  ;;  %4751 = vpow2.f32 %v2553_v10  ;;  %v6270_v21 = vmax.f32 %v2042_v54, 0.0 }
 0x37e   :  { %v4738_v30 = vpop.eup %4737  ;;  %v6272_v58 = vmul.f32 %v4736_v1, %v2342_v40  ;;  %v2378_v19 = vmul.f32 -1.0, %v6265_v63  ;;  %v2522_v51 = vmul.f32 -2.0, %v6265_v63  ;;  %4753 = vpow2.f32 %v2223_v32 }
 0x37f   :  { %v4740_v20 = vpop.eup %4739  ;;  %v6276_v5 = vmul.f32 %v4738_v30, %v2309_v60  ;;  %v2377_v39 = vmul.f32 -1.0, %v6270_v21  ;;  %v2521_v44 = vmul.f32 -2.0, %v6270_v21  ;;  %4755 = vpow2.f32 %v2221_v3 }
 0x380   :  { %v4742_v13 = vpop.eup %4741  ;;  %v6281_v45 = vmul.f32 %v4740_v20, %v6240_v18  ;;  %v2415_v53 = vmul.f32 1.442695, %v2378_v19  ;;  %v2559_v14 = vmul.f32 1.442695, %v2522_v51  ;;  %v6286_v38 = vpop.f32.mrb[86].mxu1 }
 0x381   :  { %v4744_v26 = vpop.eup %4743  ;;  %v2501_v62 = vpack.c.bf16 %v6267_v55, %v6276_v5  ;;  %v3485_v47 = vadd.f32 -1.0, %v4742_v13  ;;  %v2413_v48 = vmul.f32 1.442695, %v2377_v39  ;;  %v2557_v37 = vmul.f32 1.442695, %v2521_v44  ;;  %v6290_v40 = vpop.f32.mrb[87].mxu1 }
 0x382   :  { %v3484_v4 = vadd.f32 -1.0, %v4744_v26  ;;  %4757 = vpow2.f32 %v2415_v53  ;;  %v2227_v59 = vmul.f32 1.442695, %v6286_v38  ;;  %v2225_v7 = vmul.f32 1.442695, %v6290_v40 }
 0x383   :  { %v2312_v31 = vsel %vm2184_vm3, %v6244_v11, %v3485_v47  ;;  %4759 = vpow2.f32 %v2559_v14  ;;  %v4297_v18 = vpop.f32.mrb[86].mxu0  ;;  %vm2188_vm7 = vcmp.gt.f32.partialorder %v6286_v38, 0.0  ;;  %vm2187_vm8 = vcmp.gt.f32.partialorder %v6290_v40, 0.0 }
 0x384   :  { %v4746_v17 = vpop.eup %4745  ;;  %v2311_v12 = vsel %vm2183_vm4, %v6247_v24, %v3484_v4  ;;  %4761 = vpow2.f32 %v2413_v48  ;;  %v6299_v25 = vmax.f32 %v4297_v18, 0.0  ;;  %v2052_v28 = vpop.f32.mrb[87].mxu0 }
 0x385   :  { %v4748_v15 = vpop.eup %4747  ;;  %v6302_v35 = vmul.f32 %v4746_v17, %v2312_v31  ;;  %4763 = vpow2.f32 %v2557_v37  ;;  %v6305_v11 = vmax.f32 %v2052_v28, 0.0 }
 0x386   :  { %v4750_v6 = vpop.eup %4749  ;;  %v6308_v22 = vmul.f32 %v4748_v15, %v6250_v61  ;;  %v2380_v24 = vmul.f32 -1.0, %v6299_v25  ;;  %v2524_v0 = vmul.f32 -2.0, %v6299_v25  ;;  %4765 = vpow2.f32 %v2227_v59 }
 0x387   :  { %v4752_v23 = vpop.eup %4751  ;;  %v6312_v36 = vmul.f32 %v4750_v6, %v2311_v12  ;;  %v2379_v29 = vmul.f32 -1.0, %v6305_v11  ;;  %v2523_v46 = vmul.f32 -2.0, %v6305_v11  ;;  %4767 = vpow2.f32 %v2225_v7 }
 0x388   :  { %v4754_v42 = vpop.eup %4753  ;;  %v6317_v2 = vmul.f32 %v4752_v23, %v6252_v57  ;;  %v2419_v61 = vmul.f32 1.442695, %v2380_v24  ;;  %v2563_v56 = vmul.f32 1.442695, %v2524_v0  ;;  %v6322_v10 = vpop.f32.mrb[88].mxu1 }
 0x389   :  { %v4756_v49 = vpop.eup %4755  ;;  %v3487_v34 = vadd.f32 -1.0, %v4754_v42  ;;  %v2417_v50 = vmul.f32 1.442695, %v2379_v29  ;;  %v2561_v9 = vmul.f32 1.442695, %v2523_v46  ;;  %v6326_v57 = vpop.f32.mrb[89].mxu1 }
 0x38a   :  { %v3486_v32 = vadd.f32 -1.0, %v4756_v49  ;;  %4769 = vpow2.f32 %v2419_v61  ;;  %v2231_v8 = vmul.f32 1.442695, %v6322_v10  ;;  %v2229_v19 = vmul.f32 1.442695, %v6326_v57 }
 0x38b   :  { %v2314_v33 = vsel %vm2186_vm5, %v6258_v52, %v3487_v34  ;;  %4771 = vpow2.f32 %v2563_v56  ;;  %v4300_v3 = vpop.f32.mrb[88].mxu0  ;;  %vm2190_vm9 = vcmp.gt.f32.partialorder %v6322_v10, 0.0  ;;  %vm2189_vm10 = vcmp.gt.f32.partialorder %v6326_v57, 0.0 }
 0x38c   :  { %v4758_v60 = vpop.eup %4757  ;;  %v2313_v54 = vsel %vm2185_vm6, %v6262_v27, %v3486_v32  ;;  %4773 = vpow2.f32 %v2417_v50  ;;  %v6335_v1 = vmax.f32 %v4300_v3, 0.0  ;;  %v2062_v30 = vpop.f32.mrb[89].mxu0 }
 0x38d   :  { %v4760_v51 = vpop.eup %4759  ;;  %v6338_v20 = vmul.f32 %v4758_v60, %v2314_v33  ;;  %4775 = vpow2.f32 %v2561_v9  ;;  %v6341_v52 = vmax.f32 %v2062_v30, 0.0 }
 0x38e   :  { %v4762_v39 = vpop.eup %4761  ;;  %v6344_v44 = vmul.f32 %v4760_v51, %v6265_v63  ;;  %v2382_v27 = vmul.f32 -1.0, %v6335_v1  ;;  %v2526_v13 = vmul.f32 -2.0, %v6335_v1  ;;  %4777 = vpow2.f32 %v2231_v8 }
 0x38f   :  { %v4764_v53 = vpop.eup %4763  ;;  %v6348_v14 = vmul.f32 %v4762_v39, %v2313_v54  ;;  %v2381_v26 = vmul.f32 -1.0, %v6341_v52  ;;  %v2525_v47 = vmul.f32 -2.0, %v6341_v52  ;;  %4779 = vpow2.f32 %v2229_v19 }
 0x390   :  { %v4766_v48 = vpop.eup %4765  ;;  %v6353_v37 = vmul.f32 %v4764_v53, %v6270_v21  ;;  %v2423_v63 = vmul.f32 1.442695, %v2382_v27  ;;  %v2567_v4 = vmul.f32 1.442695, %v2526_v13  ;;  %v6358_v28 = vpop.f32.mrb[90].mxu1 }
 0x391   :  { %v4768_v31 = vpop.eup %4767  ;;  %v3489_v59 = vadd.f32 -1.0, %v4766_v48  ;;  %v2421_v17 = vmul.f32 1.442695, %v2381_v26  ;;  %v2565_v12 = vmul.f32 1.442695, %v2525_v47  ;;  %v6362_v21 = vpop.f32.mrb[91].mxu1 }
 0x392   :  { %v3488_v15 = vadd.f32 -1.0, %v4768_v31  ;;  %4781 = vpow2.f32 %v2423_v63  ;;  %v2235_v0 = vmul.f32 1.442695, %v6358_v28  ;;  %v2233_v61 = vmul.f32 1.442695, %v6362_v21 }
 0x393   :  { %v2316_v6 = vsel %vm2188_vm7, %v6286_v38, %v3489_v59  ;;  %4783 = vpow2.f32 %v2567_v4  ;;  %v4303_v24 = vpop.f32.mrb[90].mxu0  ;;  %vm2192_vm11 = vcmp.gt.f32.partialorder %v6358_v28, 0.0  ;;  %vm2191_vm12 = vcmp.gt.f32.partialorder %v6362_v21, 0.0 }
 0x394   :  { %v4770_v23 = vpop.eup %4769  ;;  %v2315_v29 = vsel %vm2187_vm8, %v6290_v40, %v3488_v15  ;;  %4785 = vpow2.f32 %v2421_v17  ;;  %v6371_v46 = vmax.f32 %v4303_v24, 0.0  ;;  %v2072_v42 = vpop.f32.mrb[91].mxu0 }
 0x395   :  { %v4772_v56 = vpop.eup %4771  ;;  %v6374_v49 = vmul.f32 %v4770_v23, %v2316_v6  ;;  %4787 = vpow2.f32 %v2565_v12  ;;  %v6377_v38 = vmax.f32 %v2072_v42, 0.0 }
 0x396   :  { %v4774_v34 = vpop.eup %4773  ;;  %v6380_v50 = vmul.f32 %v4772_v56, %v6299_v25  ;;  %v2384_v40 = vmul.f32 -1.0, %v6371_v46  ;;  %v2528_v9 = vmul.f32 -2.0, %v6371_v46  ;;  %4789 = vpow2.f32 %v2235_v0 }
 0x397   :  { %v4776_v32 = vpop.eup %4775  ;;  %v6384_v33 = vmul.f32 %v4774_v34, %v2315_v29  ;;  %v2383_v3 = vmul.f32 -1.0, %v6377_v38  ;;  %v2527_v8 = vmul.f32 -2.0, %v6377_v38  ;;  %4791 = vpow2.f32 %v2233_v61 }
 0x398   :  { %v4778_v60 = vpop.eup %4777  ;;  %v6389_v54 = vmul.f32 %v4776_v32, %v6305_v11  ;;  %v2427_v25 = vmul.f32 1.442695, %v2384_v40  ;;  %v2571_v30 = vmul.f32 1.442695, %v2528_v9  ;;  %v6394_v53 = vpop.f32.mrb[92].mxu1 }
 0x399   :  { %v4780_v19 = vpop.eup %4779  ;;  %v3491_v39 = vadd.f32 -1.0, %v4778_v60  ;;  %v2425_v27 = vmul.f32 1.442695, %v2383_v3  ;;  %v2569_v13 = vmul.f32 1.442695, %v2527_v8  ;;  %v6398_v11 = vpop.f32.mrb[93].mxu1 }
 0x39a   :  { %v3490_v47 = vadd.f32 -1.0, %v4780_v19  ;;  %4793 = vpow2.f32 %v2427_v25  ;;  %v2239_v4 = vmul.f32 1.442695, %v6394_v53  ;;  %v2237_v15 = vmul.f32 1.442695, %v6398_v11 }
 0x39b   :  { %v2318_v48 = vsel %vm2190_vm9, %v6322_v10, %v3491_v39  ;;  %4795 = vpow2.f32 %v2571_v30  ;;  %v4306_v63 = vpop.f32.mrb[92].mxu0  ;;  %vm2194_vm13 = vcmp.gt.f32.partialorder %v6394_v53, 0.0  ;;  %vm2193_vm14 = vcmp.gt.f32.partialorder %v6398_v11, 0.0 }
 0x39c   :  { %v4782_v31 = vpop.eup %4781  ;;  %v2317_v59 = vsel %vm2189_vm10, %v6326_v57, %v3490_v47  ;;  %4797 = vpow2.f32 %v2425_v27  ;;  %v6407_v17 = vmax.f32 %v4306_v63, 0.0  ;;  %v2082_v12 = vpop.f32.mrb[93].mxu0 }
 0x39d   :  { %v4784_v6 = vpop.eup %4783  ;;  %v6410_v24 = vmul.f32 %v4782_v31, %v2318_v48  ;;  %4799 = vpow2.f32 %v2569_v13  ;;  %v6413_v10 = vmax.f32 %v2082_v12, 0.0 }
 0x39e   :  { %v4786_v0 = vpop.eup %4785  ;;  %v6416_v23 = vmul.f32 %v4784_v6, %v6335_v1  ;;  %v2386_v57 = vmul.f32 -1.0, %v6407_v17  ;;  %v2530_v29 = vmul.f32 -2.0, %v6407_v17  ;;  %4801 = vpow2.f32 %v2239_v4 }
 0x39f   :  { %v4788_v42 = vpop.eup %4787  ;;  %v6420_v61 = vmul.f32 %v4786_v0, %v2317_v59  ;;  %v2385_v56 = vmul.f32 -1.0, %v6413_v10  ;;  %v2529_v34 = vmul.f32 -2.0, %v6413_v10  ;;  %4803 = vpow2.f32 %v2237_v15 }
 0x3a0   :  { %v4790_v40 = vpop.eup %4789  ;;  %v6425_v9 = vmul.f32 %v4788_v42, %v6341_v52  ;;  %v2431_v1 = vmul.f32 1.442695, %v2386_v57  ;;  %v2575_v32 = vmul.f32 1.442695, %v2530_v29  ;;  %v6430_v19 = vpop.f32.mrb[94].mxu1 }
 0x3a1   :  { %v4792_v3 = vpop.eup %4791  ;;  %v3493_v60 = vadd.f32 -1.0, %v4790_v40  ;;  %v2429_v25 = vmul.f32 1.442695, %v2385_v56  ;;  %v2573_v30 = vmul.f32 1.442695, %v2529_v34  ;;  %v6434_v52 = vpop.f32.mrb[95].mxu1 }
 0x3a2   :  { %v3492_v27 = vadd.f32 -1.0, %v4792_v3  ;;  %4805 = vpow2.f32 %v2431_v1  ;;  %v2243_v48 = vmul.f32 1.442695, %v6430_v19  ;;  %v2241_v12 = vmul.f32 1.442695, %v6434_v52 }
 0x3a3   :  { %v2320_v13 = vsel %vm2192_vm11, %v6358_v28, %v3493_v60  ;;  %4807 = vpow2.f32 %v2575_v32  ;;  %v4309_v47 = vpop.f32.mrb[94].mxu0  ;;  %vm2196_vm15 = vcmp.gt.f32.partialorder %v6430_v19, 0.0  ;;  %vm2195_vm0 = vcmp.gt.f32.partialorder %v6434_v52, 0.0 }
 0x3a4   :  { %v4794_v63 = vpop.eup %4793  ;;  %v2319_v4 = vsel %vm2191_vm12, %v6362_v21, %v3492_v27  ;;  %4809 = vpow2.f32 %v2429_v25  ;;  %v6443_v31 = vmax.f32 %v4309_v47, 0.0  ;;  %v2092_v59 = vpop.f32.mrb[95].mxu0 }
 0x3a5   :  { %v4796_v15 = vpop.eup %4795  ;;  %v6446_v6 = vmul.f32 %v4794_v63, %v2320_v13  ;;  %4811 = vpow2.f32 %v2573_v30  ;;  %v6449_v28 = vmax.f32 %v2092_v59, 0.0 }
 0x3a6   :  { %v4798_v0 = vpop.eup %4797  ;;  %v6452_v57 = vmul.f32 %v4796_v15, %v6371_v46  ;;  %v2388_v21 = vmul.f32 -1.0, %v6443_v31  ;;  %v2532_v29 = vmul.f32 -2.0, %v6443_v31  ;;  %4813 = vpow2.f32 %v2243_v48 }
 0x3a7   :  { %v4800_v42 = vpop.eup %4799  ;;  %v6456_v56 = vmul.f32 %v4798_v0, %v2319_v4  ;;  %v2387_v34 = vmul.f32 -1.0, %v6449_v28  ;;  %v2531_v40 = vmul.f32 -2.0, %v6449_v28  ;;  %4815 = vpow2.f32 %v2241_v12 }
 0x3a8   :  { %v4802_v1 = vpop.eup %4801  ;;  %v6461_v32 = vmul.f32 %v4800_v42, %v6377_v38  ;;  %v2435_v46 = vmul.f32 1.442695, %v2388_v21  ;;  %v2579_v3 = vmul.f32 1.442695, %v2532_v29  ;;  %v6466_v47 = vpop.f32.mrb[96].mxu1 }
 0x3a9   :  { %v4804_v60 = vpop.eup %4803  ;;  %v3495_v30 = vadd.f32 -1.0, %v4802_v1  ;;  %v2433_v27 = vmul.f32 1.442695, %v2387_v34  ;;  %v2577_v13 = vmul.f32 1.442695, %v2531_v40  ;;  %v6470_v38 = vpop.f32.mrb[97].mxu1 }
 0x3aa   :  { %v3494_v63 = vadd.f32 -1.0, %v4804_v60  ;;  %4817 = vpow2.f32 %v2435_v46  ;;  %v2247_v12 = vmul.f32 1.442695, %v6466_v47  ;;  %v2245_v42 = vmul.f32 1.442695, %v6470_v38 }
 0x3ab   :  { %v2322_v4 = vsel %vm2194_vm13, %v6394_v53, %v3495_v30  ;;  %4819 = vpow2.f32 %v2579_v3  ;;  %v4312_v59 = vpop.f32.mrb[96].mxu0  ;;  %vm2198_vm1 = vcmp.gt.f32.partialorder %v6466_v47, 0.0  ;;  %vm2197_vm2 = vcmp.gt.f32.partialorder %v6470_v38, 0.0 }
 0x3ac   :  { %v4806_v15 = vpop.eup %4805  ;;  %v2321_v0 = vsel %vm2193_vm14, %v6398_v11, %v3494_v63  ;;  %4821 = vpow2.f32 %v2433_v27  ;;  %v6479_v21 = vmax.f32 %v4312_v59, 0.0  ;;  %v2102_v29 = vpop.f32.mrb[97].mxu0 }
 0x3ad   :  { %v4808_v34 = vpop.eup %4807  ;;  %v6482_v40 = vmul.f32 %v4806_v15, %v2322_v4  ;;  %4823 = vpow2.f32 %v2577_v13  ;;  %v6485_v53 = vmax.f32 %v2102_v29, 0.0 }
 0x3ae   :  { %v4810_v1 = vpop.eup %4809  ;;  %v6488_v46 = vmul.f32 %v4808_v34, %v6407_v17  ;;  %v2390_v11 = vmul.f32 -1.0, %v6479_v21  ;;  %v2534_v3 = vmul.f32 -2.0, %v6479_v21  ;;  %4825 = vpow2.f32 %v2247_v12 }
 0x3af   :  { %v4812_v60 = vpop.eup %4811  ;;  %v6492_v30 = vmul.f32 %v4810_v1, %v2321_v0  ;;  %v2389_v27 = vmul.f32 -1.0, %v6485_v53  ;;  %v2533_v63 = vmul.f32 -2.0, %v6485_v53  ;;  %4827 = vpow2.f32 %v2245_v42 }
 0x3b0   :  { %v4814_v13 = vpop.eup %4813  ;;  %v6497_v4 = vmul.f32 %v4812_v60, %v6413_v10  ;;  %v2439_v17 = vmul.f32 1.442695, %v2390_v11  ;;  %v2583_v59 = vmul.f32 1.442695, %v2534_v3  ;;  %v6502_v1 = vpop.f32.mrb[98].mxu1 }
 0x3b1   :  { %v4816_v15 = vpop.eup %4815  ;;  %v3497_v29 = vadd.f32 -1.0, %v4814_v13  ;;  %v2437_v0 = vmul.f32 1.442695, %v2389_v27  ;;  %v2581_v34 = vmul.f32 1.442695, %v2533_v63  ;;  %v6506_v10 = vpop.f32.mrb[99].mxu1 }
 0x3b2   :  { %v3496_v48 = vadd.f32 -1.0, %v4816_v15  ;;  %4829 = vpow2.f32 %v2439_v17  ;;  %v2251_v60 = vmul.f32 1.442695, %v6502_v1  ;;  %v2249_v17 = vmul.f32 1.442695, %v6506_v10 }
 0x3b3   :  { %v2324_v11 = vsel %vm2196_vm15, %v6430_v19, %v3497_v29  ;;  %4831 = vpow2.f32 %v2583_v59  ;;  %v4315_v3 = vpop.f32.mrb[98].mxu0  ;;  %vm2200_vm3 = vcmp.gt.f32.partialorder %v6502_v1, 0.0  ;;  %vm2199_vm4 = vcmp.gt.f32.partialorder %v6506_v10, 0.0 }
 0x3b4   :  { %v4818_v13 = vpop.eup %4817  ;;  %v2323_v27 = vsel %vm2195_vm0, %v6434_v52, %v3496_v48  ;;  %4833 = vpow2.f32 %v2437_v0  ;;  %v6515_v63 = vmax.f32 %v4315_v3, 0.0  ;;  %v2112_v15 = vpop.f32.mrb[99].mxu0 }
 0x3b5   :  { %v4820_v42 = vpop.eup %4819  ;;  %v6518_v12 = vmul.f32 %v4818_v13, %v2324_v11  ;;  %4835 = vpow2.f32 %v2581_v34  ;;  %v6521_v19 = vmax.f32 %v2112_v15, 0.0 }
 0x3b6   :  { %v4822_v59 = vpop.eup %4821  ;;  %v6524_v29 = vmul.f32 %v4820_v42, %v6443_v31  ;;  %v2392_v52 = vmul.f32 -1.0, %v6515_v63  ;;  %v2536_v48 = vmul.f32 -2.0, %v6515_v63  ;;  %4837 = vpow2.f32 %v2251_v60 }
 0x3b7   :  { %v4824_v0 = vpop.eup %4823  ;;  %v6528_v3 = vmul.f32 %v4822_v59, %v2323_v27  ;;  %v2391_v11 = vmul.f32 -1.0, %v6521_v19  ;;  %v2535_v13 = vmul.f32 -2.0, %v6521_v19  ;;  %4839 = vpow2.f32 %v2249_v17 }
 0x3b8   :  { %v4826_v34 = vpop.eup %4825  ;;  %v6533_v15 = vmul.f32 %v4824_v0, %v6449_v28  ;;  %v2443_v31 = vmul.f32 1.442695, %v2392_v52  ;;  %v2587_v42 = vmul.f32 1.442695, %v2536_v48  ;;  %v6538_v8 = vpop.f32.mrb[100].mxu1 }
 0x3b9   :  { %v4828_v25 = vpop.eup %4827  ;;  %v3499_v39 = vadd.f32 -1.0, %v4826_v34  ;;  %v2441_v27 = vmul.f32 1.442695, %v2391_v11  ;;  %v2585_v59 = vmul.f32 1.442695, %v2535_v13  ;;  %v6542_v28 = vpop.f32.mrb[101].mxu1 }
 0x3ba   :  { %v3498_v26 = vadd.f32 -1.0, %v4828_v25  ;;  %4841 = vpow2.f32 %v2443_v31  ;;  %v2255_v0 = vmul.f32 1.442695, %v6538_v8  ;;  %v2253_v31 = vmul.f32 1.442695, %v6542_v28 }
 0x3bb   :  { %v2326_v52 = vsel %vm2198_vm1, %v6466_v47, %v3499_v39  ;;  %4843 = vpow2.f32 %v2587_v42  ;;  %v4318_v48 = vpop.f32.mrb[100].mxu0  ;;  %vm2202_vm5 = vcmp.gt.f32.partialorder %v6538_v8, 0.0  ;;  %vm2201_vm6 = vcmp.gt.f32.partialorder %v6542_v28, 0.0 }
 0x3bc   :  { %v4830_v34 = vpop.eup %4829  ;;  %v2325_v11 = vsel %vm2197_vm2, %v6470_v38, %v3498_v26  ;;  %4845 = vpow2.f32 %v2441_v27  ;;  %v6551_v13 = vmax.f32 %v4318_v48, 0.0  ;;  %v2122_v25 = vpop.f32.mrb[101].mxu0 }
 0x3bd   :  { %v4832_v17 = vpop.eup %4831  ;;  %v2486_v60 = vmul.f32 %v4830_v34, %v2326_v52  ;;  %4847 = vpow2.f32 %v2585_v59  ;;  %v6555_v39 = vmax.f32 %v2122_v25, 0.0 }
 0x3be   :  { %v4834_v47 = vpop.eup %4833  ;;  %v2630_v42 = vmul.f32 %v4832_v17, %v6479_v21  ;;  %v2394_v51 = vmul.f32 -1.0, %v6551_v13  ;;  %v2538_v26 = vmul.f32 -2.0, %v6551_v13  ;;  %4849 = vpow2.f32 %v2255_v0 }
 0x3bf   :  { %v4836_v38 = vpop.eup %4835  ;;  %v2485_v27 = vmul.f32 %v4834_v47, %v2325_v11  ;;  %v2393_v48 = vmul.f32 -1.0, %v6555_v39  ;;  %v2537_v7 = vmul.f32 -2.0, %v6555_v39  ;;  %4851 = vpow2.f32 %v2253_v31 }
 0x3c0   :  { %v4838_v52 = vpop.eup %4837  ;;  %v2629_v59 = vmul.f32 %v4836_v38, %v6485_v53  ;;  %v2447_v34 = vmul.f32 1.442695, %v2394_v51  ;;  %v2591_v25 = vmul.f32 1.442695, %v2538_v26  ;;  %v6564_v0 = vpop.f32.mrb[102].mxu1 }
 0x3c1   :  { %v4840_v21 = vpop.eup %4839  ;;  %v3501_v17 = vadd.f32 -1.0, %v4838_v52  ;;  %v2445_v18 = vmul.f32 1.442695, %v2393_v48  ;;  %v2589_v16 = vmul.f32 1.442695, %v2537_v7  ;;  %v2509_v43 = vpack.c.bf16 %v2486_v60, %v2485_v27  ;;  %v6566_v41 = vpop.f32.mrb[103].mxu1 }
 0x3c2   :  { %v3500_v11 = vadd.f32 -1.0, %v4840_v21  ;;  %4853 = vpow2.f32 %v2447_v34  ;;  %v2653_v47 = vpack.c.bf16 %v2630_v42, %v2629_v59  ;;  %v2259_v31 = vmul.f32 1.442695, %v6564_v0 }
 0x3c3   :  { %v2328_v53 = vsel %vm2200_vm3, %v6502_v1, %v3501_v17  ;;  %4855 = vpow2.f32 %v2591_v25  ;;  %3878 = vmatprep.subr.bf16.mxu1 %v2509_v43  ;;  %v4321_v51 = vpop.f32.mrb[102].mxu0  ;;  %v2257_v1 = vmul.f32 1.442695, %v6566_v41  ;;  %v7283_v27 = vpack.c.bf16 %v6272_v58, %v6281_v45 }
 0x3c4   :  { %v4842_v26 = vpop.eup %4841  ;;  %v2327_v7 = vsel %vm2199_vm4, %v6506_v10, %v3500_v11  ;;  %4857 = vpow2.f32 %v2445_v18  ;;  %3990 = vmatprep.subr.bf16.mxu0 %v2653_v47  ;;  %v6575_v60 = vmax.f32 %v4321_v51, 0.0  ;;  %3879 = vmatpush3.bf16.msra.mxu1 %v2501_v62  ;;  %v2132_v42 = vpop.f32.mrb[103].mxu0  ;;  %vm2204_vm7 = vcmp.gt.f32.partialorder %v6564_v0, 0.0 }
 0x3c5   :  { %v4844_v43 = vpop.eup %4843  ;;  %v2488_v38 = vmul.f32 %v4842_v26, %v2328_v53  ;;  %4859 = vpow2.f32 %v2589_v16  ;;  %3991 = vmatpush3.bf16.msra.mxu0 %v7283_v27  ;;  %v6585_v18 = vmax.f32 %v2132_v42, 0.0  ;;  %v7284_v27 = vpack.c.bf16 %v6302_v35, %v6312_v36 }
 0x3c6   :  { %v4846_v10 = vpop.eup %4845  ;;  %v2632_v48 = vmul.f32 %v4844_v43, %v6515_v63  ;;  %v2396_v55 = vmul.f32 -1.0, %v6575_v60  ;;  %v2540_v5 = vmul.f32 -2.0, %v6575_v60  ;;  %4861 = vpow2.f32 %v2259_v31 }
 0x3c7   :  { %v4848_v62 = vpop.eup %4847  ;;  %v2487_v52 = vmul.f32 %v4846_v10, %v2327_v7  ;;  %v2395_v59 = vmul.f32 -1.0, %v6585_v18  ;;  %v2539_v16 = vmul.f32 -2.0, %v6585_v18  ;;  %4863 = vpow2.f32 %v2257_v1 }
 0x3c8   :  { %v4850_v34 = vpop.eup %4849  ;;  %v2631_v58 = vmul.f32 %v4848_v62, %v6521_v19  ;;  %v2451_v45 = vmul.f32 1.442695, %v2396_v55  ;;  %v2595_v25 = vmul.f32 1.442695, %v2540_v5  ;;  %v6594_v53 = vpop.f32.mrb[104].mxu1  ;;  %v7285_v5 = vpack.c.bf16 %v6308_v22, %v6317_v2 }
 0x3c9   :  { %v4852_v63 = vpop.eup %4851  ;;  %v3503_v21 = vadd.f32 -1.0, %v4850_v34  ;;  %v2449_v17 = vmul.f32 1.442695, %v2395_v59  ;;  %v2593_v11 = vmul.f32 1.442695, %v2539_v16  ;;  %v2510_v47 = vpack.c.bf16 %v2488_v38, %v2487_v52  ;;  %v6596_v26 = vpop.f32.mrb[105].mxu1 }
 0x3ca   :  { %v3502_v51 = vadd.f32 -1.0, %v4852_v63  ;;  %4865 = vpow2.f32 %v2451_v45  ;;  %v2654_v31 = vpack.c.bf16 %v2632_v48, %v2631_v58  ;;  %v2263_v42 = vmul.f32 1.442695, %v6594_v53 }
 0x3cb   :  { %v2330_v19 = vsel %vm2202_vm5, %v6538_v8, %v3503_v21  ;;  %4867 = vpow2.f32 %v2595_v25  ;;  %3880 = vmatprep.subr.bf16.mxu1 %v2510_v47  ;;  %v4324_v7 = vpop.f32.mrb[104].mxu0  ;;  %v2261_v8 = vmul.f32 1.442695, %v6596_v26  ;;  %vm2203_vm8 = vcmp.gt.f32.partialorder %v6566_v41, 0.0 }
 0x3cc   :  { %v4854_v1 = vpop.eup %4853  ;;  %v2329_v43 = vsel %vm2201_vm6, %v6542_v28, %v3502_v51  ;;  %4869 = vpow2.f32 %v2449_v17  ;;  %3992 = vmatprep.subr.bf16.mxu0 %v2654_v31  ;;  %v6605_v38 = vmax.f32 %v4324_v7, 0.0  ;;  %3881 = vmatpush3.bf16.msra.mxu1 %v7284_v27  ;;  %v2142_v10 = vpop.f32.mrb[105].mxu0  ;;  %vm2206_vm9 = vcmp.gt.f32.partialorder %v6594_v53, 0.0 }
 0x3cd   :  { %v4856_v48 = vpop.eup %4855  ;;  %v2490_v55 = vmul.f32 %v4854_v1, %v2330_v19  ;;  %4871 = vpow2.f32 %v2593_v11  ;;  %3993 = vmatpush3.bf16.msra.mxu0 %v7285_v5  ;;  %v6615_v28 = vmax.f32 %v2142_v10, 0.0  ;;  %v7286_v10 = vpack.c.bf16 %v6338_v20, %v6348_v14 }
 0x3ce   :  { %v4858_v62 = vpop.eup %4857  ;;  %v2634_v52 = vmul.f32 %v4856_v48, %v6551_v13  ;;  %v2398_v35 = vmul.f32 -1.0, %v6605_v38  ;;  %v2542_v36 = vmul.f32 -2.0, %v6605_v38  ;;  %4873 = vpow2.f32 %v2263_v42 }
 0x3cf   :  { %v4860_v59 = vpop.eup %4859  ;;  %v2489_v16 = vmul.f32 %v4858_v62, %v2329_v43  ;;  %v2397_v34 = vmul.f32 -1.0, %v6615_v28  ;;  %v2541_v58 = vmul.f32 -2.0, %v6615_v28  ;;  %4875 = vpow2.f32 %v2261_v8 }
 0x3d0   :  { %v4862_v45 = vpop.eup %4861  ;;  %v2633_v22 = vmul.f32 %v4860_v59, %v6555_v39  ;;  %v2455_v2 = vmul.f32 1.442695, %v2398_v35  ;;  %v2599_v25 = vmul.f32 1.442695, %v2542_v36  ;;  %v6624_v47 = vpop.f32.mrb[106].mxu1  ;;  %v7287_v5 = vpack.c.bf16 %v6344_v44, %v6353_v37 }
 0x3d1   :  { %v4864_v13 = vpop.eup %4863  ;;  %v3505_v63 = vadd.f32 -1.0, %v4862_v45  ;;  %v2453_v21 = vmul.f32 1.442695, %v2397_v34  ;;  %v2597_v17 = vmul.f32 1.442695, %v2541_v58  ;;  %v2511_v11 = vpack.c.bf16 %v2490_v55, %v2489_v16  ;;  %v6626_v19 = vpop.f32.mrb[107].mxu1 }
 0x3d2   :  { %v3504_v51 = vadd.f32 -1.0, %v4864_v13  ;;  %4877 = vpow2.f32 %v2455_v2  ;;  %v2655_v31 = vpack.c.bf16 %v2634_v52, %v2633_v22  ;;  %v2267_v42 = vmul.f32 1.442695, %v6624_v47 }
 0x3d3   :  { %v2332_v39 = vsel %vm2204_vm7, %v6564_v0, %v3505_v63  ;;  %4879 = vpow2.f32 %v2599_v25  ;;  %3882 = vmatprep.subr.bf16.mxu1 %v2511_v11  ;;  %v4327_v7 = vpop.f32.mrb[106].mxu0  ;;  %v2265_v0 = vmul.f32 1.442695, %v6626_v19  ;;  %vm2205_vm10 = vcmp.gt.f32.partialorder %v6596_v26, 0.0 }
 0x3d4   :  { %v4866_v1 = vpop.eup %4865  ;;  %v2331_v43 = vsel %vm2203_vm8, %v6566_v41, %v3504_v51  ;;  %4881 = vpow2.f32 %v2453_v21  ;;  %3994 = vmatprep.subr.bf16.mxu0 %v2655_v31  ;;  %v6635_v27 = vmax.f32 %v4327_v7, 0.0  ;;  %3883 = vmatpush3.bf16.msra.mxu1 %v7286_v10  ;;  %v2152_v8 = vpop.f32.mrb[107].mxu0  ;;  %vm2208_vm11 = vcmp.gt.f32.partialorder %v6624_v47, 0.0 }
 0x3d5   :  { %v4868_v48 = vpop.eup %4867  ;;  %v2492_v55 = vmul.f32 %v4866_v1, %v2332_v39  ;;  %4883 = vpow2.f32 %v2597_v17  ;;  %3995 = vmatpush3.bf16.msra.mxu0 %v7287_v5  ;;  %v6645_v41 = vmax.f32 %v2152_v8, 0.0  ;;  %v7289_v8 = vpack.c.bf16 %v6380_v50, %v6389_v54 }
 0x3d6   :  { %v4870_v62 = vpop.eup %4869  ;;  %v2636_v52 = vmul.f32 %v4868_v48, %v6575_v60  ;;  %v2400_v20 = vmul.f32 -1.0, %v6635_v27  ;;  %v2544_v14 = vmul.f32 -2.0, %v6635_v27  ;;  %4885 = vpow2.f32 %v2267_v42 }
 0x3d7   :  { %v4872_v35 = vpop.eup %4871  ;;  %v2491_v36 = vmul.f32 %v4870_v62, %v2331_v43  ;;  %v2399_v59 = vmul.f32 -1.0, %v6645_v41  ;;  %v2543_v16 = vmul.f32 -2.0, %v6645_v41  ;;  %4887 = vpow2.f32 %v2265_v0 }
 0x3d8   :  { %v4874_v34 = vpop.eup %4873  ;;  %v2635_v44 = vmul.f32 %v4872_v35, %v6585_v18  ;;  %v2459_v37 = vmul.f32 1.442695, %v2400_v20  ;;  %v2603_v58 = vmul.f32 1.442695, %v2544_v14  ;;  %v6654_v13 = vpop.f32.mrb[108].mxu1  ;;  %v7288_v42 = vpack.c.bf16 %v6374_v49, %v6384_v33 }
 0x3d9   :  { %v4876_v60 = vpop.eup %4875  ;;  %v3507_v45 = vadd.f32 -1.0, %v4874_v34  ;;  %v2457_v22 = vmul.f32 1.442695, %v2399_v59  ;;  %v2601_v2 = vmul.f32 1.442695, %v2543_v16  ;;  %v2512_v25 = vpack.c.bf16 %v2492_v55, %v2491_v36  ;;  %v6656_v17 = vpop.f32.mrb[109].mxu1 }
 0x3da   :  { %v3506_v63 = vadd.f32 -1.0, %v4876_v60  ;;  %4889 = vpow2.f32 %v2459_v37  ;;  %v2656_v21 = vpack.c.bf16 %v2636_v52, %v2635_v44  ;;  %v2271_v51 = vmul.f32 1.442695, %v6654_v13 }
 0x3db   :  { %v2334_v18 = vsel %vm2206_vm9, %v6594_v53, %v3507_v45  ;;  %4891 = vpow2.f32 %v2603_v58  ;;  %3884 = vmatprep.subr.bf16.mxu1 %v2512_v25  ;;  %v4330_v11 = vpop.f32.mrb[108].mxu0  ;;  %v2269_v53 = vmul.f32 1.442695, %v6656_v17  ;;  %vm2207_vm12 = vcmp.gt.f32.partialorder %v6626_v19, 0.0 }
 0x3dc   :  { %v4878_v31 = vpop.eup %4877  ;;  %v2333_v39 = vsel %vm2205_vm10, %v6596_v26, %v3506_v63  ;;  %4893 = vpow2.f32 %v2457_v22  ;;  %3996 = vmatprep.subr.bf16.mxu0 %v2656_v21  ;;  %v6665_v7 = vmax.f32 %v4330_v11, 0.0  ;;  %3885 = vmatpush3.bf16.msra.mxu1 %v7288_v42  ;;  %v2162_v1 = vpop.f32.mrb[109].mxu0  ;;  %v7290_v63 = vpack.c.bf16 %v6410_v24, %v6420_v61 }
 0x3dd   :  { %v4880_v43 = vpop.eup %4879  ;;  %v2494_v10 = vmul.f32 %v4878_v31, %v2334_v18  ;;  %4895 = vpow2.f32 %v2601_v2  ;;  %3997 = vmatpush3.bf16.msra.mxu0 %v7289_v8  ;;  %v6675_v26 = vmax.f32 %v2162_v1, 0.0  ;;  %vm2210_vm13 = vcmp.gt.f32.partialorder %v6654_v13, 0.0 }
 0x3de   :  { %v4882_v0 = vpop.eup %4881  ;;  %v2638_v48 = vmul.f32 %v4880_v43, %v6605_v38  ;;  %v2402_v49 = vmul.f32 -1.0, %v6665_v7  ;;  %v2546_v33 = vmul.f32 -2.0, %v6665_v7  ;;  %4897 = vpow2.f32 %v2271_v51 }
 0x3df   :  { %v4884_v55 = vpop.eup %4883  ;;  %v2493_v5 = vmul.f32 %v4882_v0, %v2333_v39  ;;  %v2401_v62 = vmul.f32 -1.0, %v6675_v26  ;;  %v2545_v52 = vmul.f32 -2.0, %v6675_v26  ;;  %4899 = vpow2.f32 %v2269_v53 }
 0x3e0   :  { %v4886_v20 = vpop.eup %4885  ;;  %v2637_v50 = vmul.f32 %v4884_v55, %v6615_v28  ;;  %v2463_v54 = vmul.f32 1.442695, %v2402_v49  ;;  %v2607_v14 = vmul.f32 1.442695, %v2546_v33  ;;  %v6684_v34 = vpop.f32.mrb[110].mxu1  ;;  %v7291_v51 = vpack.c.bf16 %v6416_v23, %v6425_v9 }
 0x3e1   :  { %v4888_v38 = vpop.eup %4887  ;;  %v3509_v35 = vadd.f32 -1.0, %v4886_v20  ;;  %v2461_v36 = vmul.f32 1.442695, %v2401_v62  ;;  %v2605_v59 = vmul.f32 1.442695, %v2545_v52  ;;  %v2513_v16 = vpack.c.bf16 %v2494_v10, %v2493_v5  ;;  %v6686_v58 = vpop.f32.mrb[111].mxu1 }
 0x3e2   :  { %v3508_v44 = vadd.f32 -1.0, %v4888_v38  ;;  %4901 = vpow2.f32 %v2463_v54  ;;  %v2657_v37 = vpack.c.bf16 %v2638_v48, %v2637_v50  ;;  %v2275_v45 = vmul.f32 1.442695, %v6684_v34 }
 0x3e3   :  { %v2336_v28 = vsel %vm2208_vm11, %v6624_v47, %v3509_v35  ;;  %4903 = vpow2.f32 %v2607_v14  ;;  %3886 = vmatprep.subr.bf16.mxu1 %v2513_v16  ;;  %v4333_v60 = vpop.f32.mrb[110].mxu0  ;;  %v2273_v47 = vmul.f32 1.442695, %v6686_v58  ;;  %vm2209_vm14 = vcmp.gt.f32.partialorder %v6656_v17, 0.0 }
 0x3e4   :  { %v4890_v22 = vpop.eup %4889  ;;  %v2335_v2 = vsel %vm2207_vm12, %v6626_v19, %v3508_v44  ;;  %4905 = vpow2.f32 %v2461_v36  ;;  %3998 = vmatprep.subr.bf16.mxu0 %v2657_v37  ;;  %v6695_v25 = vmax.f32 %v4333_v60, 0.0  ;;  %3887 = vmatpush3.bf16.msra.mxu1 %v7290_v63  ;;  %v2172_v21 = vpop.f32.mrb[111].mxu0  ;;  %v7292_v20 = vpack.c.bf16 %v6446_v6, %v6456_v56 }
 0x3e5   :  { %v4892_v18 = vpop.eup %4891  ;;  %v2496_v11 = vmul.f32 %v4890_v22, %v2336_v28  ;;  %4907 = vpow2.f32 %v2605_v59  ;;  %3999 = vmatpush3.bf16.msra.mxu0 %v7291_v51  ;;  %v2371_v19 = vmax.f32 %v2172_v21, 0.0  ;;  %v7293_v14 = vpack.c.bf16 %v6452_v57, %v6461_v32  ;;  %v4996_v51 = vld [vmem:[#allocation2 + $0x20] ss:$8 sps:$4 sm:$0xff]  }
 0x3e6   :  { %v4894_v31 = vpop.eup %4893  ;;  %v2640_v39 = vmul.f32 %v4892_v18, %v6635_v27  ;;  %v2404_v42 = vmul.f32 -1.0, %v6695_v25  ;;  %v2548_v24 = vmul.f32 -2.0, %v6695_v25  ;;  %4909 = vpow2.f32 %v2275_v45 }
 0x3e7   :  { %v4896_v61 = vpop.eup %4895  ;;  %v2495_v1 = vmul.f32 %v4894_v31, %v2335_v2  ;;  %v2403_v53 = vmul.f32 -1.0, %v2371_v19  ;;  %v2547_v43 = vmul.f32 -2.0, %v2371_v19  ;;  %4911 = vpow2.f32 %v2273_v47  ;;  %v4998_v31 = vld [vmem:[#allocation2 + $0x34] ss:$8 sps:$4 sm:$0xff]  }
 0x3e8   :  { %v4898_v10 = vpop.eup %4897  ;;  %v2639_v8 = vmul.f32 %v4896_v61, %v6645_v41  ;;  %v2467_v23 = vmul.f32 1.442695, %v2404_v42  ;;  %v2611_v9 = vmul.f32 1.442695, %v2548_v24  ;;  %vm2212_vm15 = vcmp.gt.f32.partialorder %v6684_v34, 0.0 }
 0x3e9   :  { %v4900_v0 = vpop.eup %4899  ;;  %v3511_v48 = vadd.f32 -1.0, %v4898_v10  ;;  %v2465_v27 = vmul.f32 1.442695, %v2403_v53  ;;  %v2609_v49 = vmul.f32 1.442695, %v2547_v43  ;;  %v2514_v33 = vpack.c.bf16 %v2496_v11, %v2495_v1 }
 0x3ea   :  { %v3510_v55 = vadd.f32 -1.0, %v4900_v0  ;;  %4913 = vpow2.f32 %v2467_v23  ;;  %v2658_v5 = vpack.c.bf16 %v2640_v39, %v2639_v8  ;;  %vm2211_vm0 = vcmp.gt.f32.partialorder %v6686_v58, 0.0  ;;  %v4995_v11 = vld [vmem:[%s7159_s1 + $0x20] ss:$8 sps:$4 sm:$0xff]   ;;  %v4999_v39 = vld [vmem:[%s7159_s1 + $0x30] ss:$8 sps:$4 sm:$0xff]  }
 0x3eb   :  { %v2338_v62 = vsel %vm2210_vm13, %v6654_v13, %v3511_v48  ;;  %4915 = vpow2.f32 %v2611_v9  ;;  %3888 = vmatprep.subr.bf16.mxu1 %v2514_v33  ;;  %v7294_v28 = vpack.c.bf16 %v6482_v40, %v6492_v30  ;;  %v7295_v45 = vpack.c.bf16 %v6488_v46, %v6497_v4  ;;  %v4987_v46 = vld [vmem:[%s7159_s1] ss:$8 sps:$4 sm:$0xff]   ;;  %v5000_v42 = vld [vmem:[#allocation2 + $0x30] ss:$8 sps:$4 sm:$0xff]   ;;  %v5001_v24 = vld [vmem:[%s7159_s1 + $0x44] ss:$8 sps:$4 sm:$0xff]  }
 0x3ec   :  { %v4902_v52 = vpop.eup %4901  ;;  %v2337_v41 = vsel %vm2209_vm14, %v6656_v17, %v3510_v55  ;;  %4917 = vpow2.f32 %v2465_v27  ;;  %4000 = vmatprep.subr.bf16.mxu0 %v2658_v5  ;;  %3889 = vmatpush3.bf16.msra.mxu1 %v7292_v20  ;;  %v7296_v40 = vpack.c.bf16 %v6518_v12, %v6528_v3  ;;  %v7297_v30 = vpack.c.bf16 %v6524_v29, %v6533_v15  ;;  %v4988_v4 = vld [vmem:[#allocation2] ss:$8 sps:$4 sm:$0xff]   ;;  %v4991_v12 = vld [vmem:[%s7159_s1 + $0x10] ss:$8 sps:$4 sm:$0xff]   ;;  %v4993_v3 = vld [vmem:[%s7159_s1 + $0x24] ss:$8 sps:$4 sm:$0xff]  }
 0x3ed   :  { %v4904_v50 = vpop.eup %4903  ;;  %v2498_v54 = vmul.f32 %v4902_v52, %v2338_v62  ;;  %4919 = vpow2.f32 %v2609_v49  ;;  %4001 = vmatpush3.bf16.msra.mxu0 %v7293_v14  ;;  %v4992_v29 = vld [vmem:[#allocation2 + $0x10] ss:$8 sps:$4 sm:$0xff]   ;;  %v4994_v15 = vld [vmem:[#allocation2 + $0x24] ss:$8 sps:$4 sm:$0xff]   ;;  %v5003_v1 = vld [vmem:[%s7159_s1 + $0x40] ss:$8 sps:$4 sm:$0xff]  }
 0x3ee   :  { %v4906_v38 = vpop.eup %4905  ;;  %v2642_v13 = vmul.f32 %v4904_v50, %v6665_v7  ;;  %v5002_v61 = vld [vmem:[#allocation2 + $0x44] ss:$8 sps:$4 sm:$0xff]   ;;  %v5004_v53 = vld [vmem:[#allocation2 + $0x40] ss:$8 sps:$4 sm:$0xff]   ;;  %v5005_v43 = vld [vmem:[%s7159_s1 + $0x54] ss:$8 sps:$4 sm:$0xff]  }
 0x3ef   :  { %v4908_v35 = vpop.eup %4907  ;;  %v2497_v36 = vmul.f32 %v4906_v38, %v2337_v41  ;;  %v5006_v10 = vld [vmem:[#allocation2 + $0x54] ss:$8 sps:$4 sm:$0xff]   ;;  %v5007_v8 = vld [vmem:[%s7159_s1 + $0x50] ss:$8 sps:$4 sm:$0xff]   ;;  %v5009_v9 = vld [vmem:[%s7159_s1 + $0x64] ss:$8 sps:$4 sm:$0xff]  }
 0x3f0   :  { %v4910_v59 = vpop.eup %4909  ;;  %v2641_v17 = vmul.f32 %v4908_v35, %v6675_v26  ;;  %v5008_v23 = vld [vmem:[#allocation2 + $0x50] ss:$8 sps:$4 sm:$0xff]   ;;  %v5010_v0 = vld [vmem:[#allocation2 + $0x64] ss:$8 sps:$4 sm:$0xff]   ;;  %v5011_v48 = vld [vmem:[%s7159_s1 + $0x60] ss:$8 sps:$4 sm:$0xff]  }
 0x3f1   :  { %v4912_v16 = vpop.eup %4911  ;;  %v3513_v6 = vadd.f32 -1.0, %v4910_v59  ;;  %v2515_v56 = vpack.c.bf16 %v2498_v54, %v2497_v36  ;;  %v5012_v27 = vld [vmem:[#allocation2 + $0x60] ss:$8 sps:$4 sm:$0xff]   ;;  %v5013_v49 = vld [vmem:[%s7159_s1 + $0x74] ss:$8 sps:$4 sm:$0xff]  }
 0x3f2   :  { %v3512_v44 = vadd.f32 -1.0, %v4912_v16  ;;  %v2659_v37 = vpack.c.bf16 %v2642_v13, %v2641_v17  ;;  %v5014_v33 = vld [vmem:[#allocation2 + $0x74] ss:$8 sps:$4 sm:$0xff]   ;;  %v5015_v55 = vld [vmem:[%s7159_s1 + $0x70] ss:$8 sps:$4 sm:$0xff]  }
 0x3f3   :  { %v2340_v57 = vsel %vm2212_vm15, %v6684_v34, %v3513_v6  ;;  %3890 = vmatprep.subr.bf16.mxu1 %v2515_v56  ;;  %v5016_v5 = vld [vmem:[#allocation2 + $0x70] ss:$8 sps:$4 sm:$0xff]   ;;  %v5017_v62 = vld [vmem:[%s7159_s1 + $0x84] ss:$8 sps:$4 sm:$0xff]   ;;  %v5019_v41 = vld [vmem:[%s7159_s1 + $0x80] ss:$8 sps:$4 sm:$0xff]  }
 0x3f4   :  { %v4914_v32 = vpop.eup %4913  ;;  %v2339_v7 = vsel %vm2211_vm0, %v6686_v58, %v3512_v44  ;;  %4002 = vmatprep.subr.bf16.mxu0 %v2659_v37  ;;  %3891 = vmatpush3.bf16.msra.mxu1 %v7294_v28  ;;  %v4989_v58 = vld [vmem:[%s7159_s1 + $0x14] ss:$8 sps:$4 sm:$0xff]   ;;  %v5018_v52 = vld [vmem:[#allocation2 + $0x84] ss:$8 sps:$4 sm:$0xff]   ;;  %v5020_v20 = vld [vmem:[#allocation2 + $0x80] ss:$8 sps:$4 sm:$0xff]  }
 0x3f5   :  { %v4916_v26 = vpop.eup %4915  ;;  %v2500_v60 = vmul.f32 %v4914_v32, %v2340_v57  ;;  %4003 = vmatpush3.bf16.msra.mxu0 %v7295_v45  ;;  %v5021_v50 = vld [vmem:[%s7159_s1 + $0x94] ss:$8 sps:$4 sm:$0xff]   ;;  %v5023_v14 = vld [vmem:[%s7159_s1 + $0x90] ss:$8 sps:$4 sm:$0xff]   ;;  %v5025_v13 = vld [vmem:[%s7159_s1 + $0xa4] ss:$8 sps:$4 sm:$0xff]  }
 0x3f6   :  { %v4918_v22 = vpop.eup %4917  ;;  %v2644_v2 = vmul.f32 %v4916_v26, %v6695_v25  ;;  %v4990_v25 = vld [vmem:[#allocation2 + $0x14] ss:$8 sps:$4 sm:$0xff]   ;;  %v5024_v38 = vld [vmem:[#allocation2 + $0x90] ss:$8 sps:$4 sm:$0xff]   ;;  %v5026_v35 = vld [vmem:[#allocation2 + $0xa4] ss:$8 sps:$4 sm:$0xff]  }
 0x3f7   :  { %v4920_v63 = vpop.eup %4919  ;;  %v2499_v34 = vmul.f32 %v4918_v22, %v2339_v7  ;;  %v5022_v54 = vld [vmem:[#allocation2 + $0x94] ss:$8 sps:$4 sm:$0xff]   ;;  %v5027_v36 = vld [vmem:[%s7159_s1 + $0xa0] ss:$8 sps:$4 sm:$0xff]   ;;  %v5031_v6 = vld [vmem:[%s7159_s1 + $0xb0] ss:$8 sps:$4 sm:$0xff]  }
 0x3f8   :  { %v2643_v21 = vmul.f32 %v4920_v63, %v2371_v19  ;;  %v4997_v19 = vld [vmem:[%s7159_s1 + $0x34] ss:$8 sps:$4 sm:$0xff]   ;;  %v5028_v59 = vld [vmem:[#allocation2 + $0xa0] ss:$8 sps:$4 sm:$0xff]   ;;  %v5032_v56 = vld [vmem:[#allocation2 + $0xb0] ss:$8 sps:$4 sm:$0xff]  }
 0x3f9   :  { %v2516_v47 = vpack.c.bf16 %v2500_v60, %v2499_v34  ;;  %v5029_v17 = vld [vmem:[%s7159_s1 + $0xb4] ss:$8 sps:$4 sm:$0xff]   ;;  %v5033_v44 = vld [vmem:[%s7159_s1 + $0xc4] ss:$8 sps:$4 sm:$0xff]   ;;  %v5035_v57 = vld [vmem:[%s7159_s1 + $0xc0] ss:$8 sps:$4 sm:$0xff]  }
 0x3fa   :  { %v2660_v18 = vpack.c.bf16 %v2644_v2, %v2643_v21  ;;  %v5030_v16 = vld [vmem:[#allocation2 + $0xb4] ss:$8 sps:$4 sm:$0xff]   ;;  %v5034_v37 = vld [vmem:[#allocation2 + $0xc4] ss:$8 sps:$4 sm:$0xff]   ;;  %v5036_v32 = vld [vmem:[#allocation2 + $0xc0] ss:$8 sps:$4 sm:$0xff]  }
 0x3fb   :  { %3892 = vmatprep.subr.bf16.mxu1 %v2516_v47  ;;  %v5037_v7 = vld [vmem:[%s7159_s1 + $0xd4] ss:$8 sps:$4 sm:$0xff]   ;;  %v5039_v26 = vld [vmem:[%s7159_s1 + $0xd0] ss:$8 sps:$4 sm:$0xff]   ;;  %v5041_v45 = vld [vmem:[%s7159_s1 + $0xe4] ss:$8 sps:$4 sm:$0xff]  }
 0x3fc   :  { %4004 = vmatprep.subr.bf16.mxu0 %v2660_v18  ;;  %3893 = vmatpush3.bf16.msra.mxu1 %v7296_v40  ;;  %v5038_v28 = vld [vmem:[#allocation2 + $0xd4] ss:$8 sps:$4 sm:$0xff]   ;;  %v5040_v60 = vld [vmem:[#allocation2 + $0xd0] ss:$8 sps:$4 sm:$0xff]   ;;  %v5042_v22 = vld [vmem:[#allocation2 + $0xe4] ss:$8 sps:$4 sm:$0xff]  }
 0x3fd   :  { %4005 = vmatpush3.bf16.msra.mxu0 %v7297_v30  ;;  %v5043_v2 = vld [vmem:[%s7159_s1 + $0xe0] ss:$8 sps:$4 sm:$0xff]   ;;  %v5045_v34 = vld [vmem:[%s7159_s1 + $0xf4] ss:$8 sps:$4 sm:$0xff]   ;;  %v5047_v47 = vld [vmem:[%s7159_s1 + $0xf0] ss:$8 sps:$4 sm:$0xff]  }
 0x3fe   :  { %v5044_v63 = vld [vmem:[#allocation2 + $0xe0] ss:$8 sps:$4 sm:$0xff]   ;;  %v5046_v21 = vld [vmem:[#allocation2 + $0xf4] ss:$8 sps:$4 sm:$0xff]   ;;  %v5048_v18 = vld [vmem:[#allocation2 + $0xf0] ss:$8 sps:$4 sm:$0xff]  }
 0x3ff   :  { %2694 = vmatmul.mubr.bf16.vlgmr.msra.gmra.mrb[112].mxu1 %v4987_v46  ;;  %s5173_s1 = smov [#allocation10]  }
 0x400   :  { %2887 = vmatmul.mubr.bf16.vlgmr.msra.gmra.mrb[112].mxu0 %v4988_v4  ;;  %2701 = vmatprep.mubr.bf16.mxu1 %v4989_v58  ;;  %s3340_s17 = sshll.u32 %s5173_s1, 4  ;;  %s3341_s17 = int_to_ptr.vmem [resolvable:$true] %s3340_s17 }
 0x401   :  { %2894 = vmatprep.mubr.bf16.mxu0 %v4990_v25  ;;  %s5137_s18 = scalar_lea.vmem %s3341_s17, 4096  ;;  %p5142_p5 = scmp.lt.s32.totalorder %s3341_s17, %s3341_s17 }
 0x402   :  { %p5138_p4 = scmp.ne.s32.totalorder %s3341_s17, %s5137_s18  ;;  %p5143_p6 = scmp.lt.s32.totalorder %s5137_s18, %s5137_s18 }
 0x404   :  { %p5144_p7 = por %p5143_p6, %p5142_p5 }
 0x406   :  { %p5145_p8 = pnand %p5144_p7, %p5138_p4 }
 0x407   :  { %2702 = vmatmul.mubr.bf16.gmra.mrb[116].mxu1 %v4991_v12 }
 0x408   :  { %2895 = vmatmul.mubr.bf16.gmra.mrb[116].mxu0 %v4992_v29  ;;  %2709 = vmatprep.mubr.bf16.mxu1 %v4993_v3 }
 0x409   :  { %2902 = vmatprep.mubr.bf16.mxu0 %v4994_v15 }
 0x40f   :  { %2710 = vmatmul.mubr.bf16.gmra.mrb[120].mxu1 %v4995_v11 }
 0x410   :  { %2903 = vmatmul.mubr.bf16.gmra.mrb[120].mxu0 %v4996_v51  ;;  %2717 = vmatprep.mubr.bf16.mxu1 %v4997_v19 }
 0x411   :  { %2910 = vmatprep.mubr.bf16.mxu0 %v4998_v31 }
 0x417   :  { %2718 = vmatmul.mubr.bf16.gmra.mrb[124].mxu1 %v4999_v39 }
 0x418   :  { %2911 = vmatmul.mubr.bf16.gmra.mrb[124].mxu0 %v5000_v42  ;;  %2725 = vmatprep.mubr.bf16.mxu1 %v5001_v24 }
 0x419   :  { %2918 = vmatprep.mubr.bf16.mxu0 %v5002_v61 }
 0x41f   :  { %2726 = vmatmul.mubr.bf16.gmra.mrb[128].mxu1 %v5003_v1 }
 0x420   :  { %2919 = vmatmul.mubr.bf16.gmra.mrb[128].mxu0 %v5004_v53  ;;  %2733 = vmatprep.mubr.bf16.mxu1 %v5005_v43 }
 0x421   :  { %2926 = vmatprep.mubr.bf16.mxu0 %v5006_v10 }
 0x427   :  { %2734 = vmatmul.mubr.bf16.gmra.mrb[132].mxu1 %v5007_v8 }
 0x428   :  { %2927 = vmatmul.mubr.bf16.gmra.mrb[132].mxu0 %v5008_v23  ;;  %2741 = vmatprep.mubr.bf16.mxu1 %v5009_v9 }
 0x429   :  { %2934 = vmatprep.mubr.bf16.mxu0 %v5010_v0 }
 0x42f   :  { %2742 = vmatmul.mubr.bf16.gmra.mrb[136].mxu1 %v5011_v48 }
 0x430   :  { %2935 = vmatmul.mubr.bf16.gmra.mrb[136].mxu0 %v5012_v27  ;;  %2749 = vmatprep.mubr.bf16.mxu1 %v5013_v49 }
 0x431   :  { %2942 = vmatprep.mubr.bf16.mxu0 %v5014_v33 }
 0x437   :  { %2750 = vmatmul.mubr.bf16.gmra.mrb[140].mxu1 %v5015_v55 }
 0x438   :  { %2943 = vmatmul.mubr.bf16.gmra.mrb[140].mxu0 %v5016_v5  ;;  %2757 = vmatprep.mubr.bf16.mxu1 %v5017_v62 }
 0x439   :  { %2950 = vmatprep.mubr.bf16.mxu0 %v5018_v52 }
 0x43f   :  { %2758 = vmatmul.mubr.bf16.gmra.mrb[144].mxu1 %v5019_v41 }
 0x440   :  { %2951 = vmatmul.mubr.bf16.gmra.mrb[144].mxu0 %v5020_v20  ;;  %2765 = vmatprep.mubr.bf16.mxu1 %v5021_v50 }
 0x441   :  { %2958 = vmatprep.mubr.bf16.mxu0 %v5022_v54 }
 0x447   :  { %2766 = vmatmul.mubr.bf16.gmra.mrb[148].mxu1 %v5023_v14 }
 0x448   :  { %2959 = vmatmul.mubr.bf16.gmra.mrb[148].mxu0 %v5024_v38  ;;  %2773 = vmatprep.mubr.bf16.mxu1 %v5025_v13  ;;  %v2822_v38 = vld [vmem:[#allocation8] sm:$0xff] }
 0x449   :  { %2966 = vmatprep.mubr.bf16.mxu0 %v5026_v35 }
 0x44f   :  { %2774 = vmatmul.mubr.bf16.gmra.mrb[152].mxu1 %v5027_v36 }
 0x450   :  { %2967 = vmatmul.mubr.bf16.gmra.mrb[152].mxu0 %v5028_v59  ;;  %2781 = vmatprep.mubr.bf16.mxu1 %v5029_v17 }
 0x451   :  { %2974 = vmatprep.mubr.bf16.mxu0 %v5030_v16 }
 0x457   :  { %2782 = vmatmul.mubr.bf16.gmra.mrb[156].mxu1 %v5031_v6 }
 0x458   :  { %2975 = vmatmul.mubr.bf16.gmra.mrb[156].mxu0 %v5032_v56  ;;  %2789 = vmatprep.mubr.bf16.mxu1 %v5033_v44 }
 0x459   :  { %2982 = vmatprep.mubr.bf16.mxu0 %v5034_v37  ;;  %v2823_v37 = vld [vmem:[#allocation8 + $0x8] sm:$0xff] }
 0x45f   :  { %2790 = vmatmul.mubr.bf16.gmra.mrb[160].mxu1 %v5035_v57 }
 0x460   :  { %2983 = vmatmul.mubr.bf16.gmra.mrb[160].mxu0 %v5036_v32  ;;  %2797 = vmatprep.mubr.bf16.mxu1 %v5037_v7 }
 0x461   :  { %2990 = vmatprep.mubr.bf16.mxu0 %v5038_v28 }
 0x467   :  { %2798 = vmatmul.mubr.bf16.gmra.mrb[164].mxu1 %v5039_v26 }
 0x468   :  { %2991 = vmatmul.mubr.bf16.gmra.mrb[164].mxu0 %v5040_v60  ;;  %2805 = vmatprep.mubr.bf16.mxu1 %v5041_v45 }
 0x469   :  { %2998 = vmatprep.mubr.bf16.mxu0 %v5042_v22 }
 0x46f   :  { %2806 = vmatmul.mubr.bf16.gmra.mrb[168].mxu1 %v5043_v2 }
 0x470   :  { %2999 = vmatmul.mubr.bf16.gmra.mrb[168].mxu0 %v5044_v63  ;;  %2813 = vmatprep.mubr.bf16.mxu1 %v5045_v34 }
 0x471   :  { %3006 = vmatprep.mubr.bf16.mxu0 %v5046_v21 }
 0x477   :  { %2814 = vmatmul.mubr.bf16.gmra.mrb[172].mxu1 %v5047_v47 }
 0x478   :  { %3007 = vmatmul.mubr.bf16.gmra.mrb[172].mxu0 %v5048_v18 }
 0x4d2   :  { %v3894_v40 = vpop.f32.mrb[112].mxu1 }
 0x4d3   :  { %v4006_v30 = vpop.f32.mrb[112].mxu0  ;;  %v3895_v46 = vpop.f32.mrb[113].mxu1 }
 0x4d4   :  { %v4007_v4 = vpop.f32.mrb[113].mxu0  ;;  %v3896_v58 = vadd.f32 %v3895_v46, %v3894_v40  ;;  %v3897_v25 = vpop.f32.mrb[114].mxu1 }
 0x4d5   :  { %v4008_v12 = vadd.f32 %v4007_v4, %v4006_v30  ;;  %v4009_v29 = vpop.f32.mrb[114].mxu0  ;;  %v3898_v3 = vpop.f32.mrb[115].mxu1 }
 0x4d6   :  { %v4010_v15 = vpop.f32.mrb[115].mxu0  ;;  %v3899_v11 = vadd.f32 %v3898_v3, %v3897_v25 }
 0x4d7   :  { %v2889_v51 = vadd.f32 1e-08, %v4008_v12  ;;  %v4011_v19 = vadd.f32 %v4010_v15, %v4009_v29  ;;  %v2824_v12 = vld [vmem:[#allocation8 + $0x10] sm:$0xff] }
 0x4d9   :  { %4921 = vrsqrt.f32 %v2889_v51  ;;  %v2892_v31 = vadd.f32 1e-08, %v4011_v19  ;;  %vm3017_vm1 = vcmp.eq.f32.partialorder %v2889_v51, inf  ;;  %vm3019_vm2 = vcmp.eq.f32.partialorder %v2889_v51, 0.0 }
 0x4da   :  { %v3900_v39 = vpop.f32.mrb[116].mxu1  ;;  %v3020_v13 = vand.u32 2147483648, %v2889_v51 }
 0x4db   :  { %4923 = vrsqrt.f32 %v2892_v31  ;;  %v4012_v42 = vpop.f32.mrb[116].mxu0  ;;  %v3901_v24 = vpop.f32.mrb[117].mxu1  ;;  %vm3024_vm3 = vcmp.eq.f32.partialorder %v2892_v31, inf  ;;  %v3027_v57 = vand.u32 2147483648, %v2892_v31  ;;  %vm3026_vm4 = vcmp.eq.f32.partialorder %v2892_v31, 0.0 }
 0x4dc   :  { %v4013_v61 = vpop.f32.mrb[117].mxu0  ;;  %v6832_v1 = vadd.f32 %v3901_v24, %v3900_v39  ;;  %v3903_v53 = vpop.f32.mrb[118].mxu1 }
 0x4dd   :  { %v4014_v43 = vadd.f32 %v4013_v61, %v4012_v42  ;;  %v4015_v10 = vpop.f32.mrb[118].mxu0  ;;  %v3904_v8 = vpop.f32.mrb[119].mxu1  ;;  %v2825_v42 = vld [vmem:[#allocation8 + $0x18] sm:$0xff] }
 0x4de   :  { %v4016_v23 = vpop.f32.mrb[119].mxu0  ;;  %v6834_v9 = vadd.f32 %v3904_v8, %v3903_v53 }
 0x4df   :  { %v6836_v0 = vadd.f32 1e-08, %v4014_v43  ;;  %v4017_v48 = vadd.f32 %v4016_v23, %v4015_v10 }
 0x4e1   :  { %4925 = vrsqrt.f32 %v6836_v0  ;;  %v6839_v27 = vadd.f32 1e-08, %v4017_v48  ;;  %vm3031_vm5 = vcmp.eq.f32.partialorder %v6836_v0, inf  ;;  %vm3033_vm6 = vcmp.eq.f32.partialorder %v6836_v0, 0.0 }
 0x4e2   :  { %v3906_v49 = vpop.f32.mrb[120].mxu1 }
 0x4e3   :  { %v4922_v33 = vpop.eup %4921  ;;  %4927 = vrsqrt.f32 %v6839_v27  ;;  %v4018_v55 = vpop.f32.mrb[120].mxu0  ;;  %vm3038_vm7 = vcmp.eq.f32.partialorder %v6839_v27, inf  ;;  %v3041_v24 = vand.u32 2147483648, %v6839_v27  ;;  %vm3040_vm8 = vcmp.eq.f32.partialorder %v6839_v27, 0.0 }
 0x4e4   :  { %v3907_v5 = vpop.f32.mrb[121].mxu1  ;;  %v4019_v62 = vpop.f32.mrb[121].mxu0  ;;  %v3016_v52 = vmul.f32 %v4922_v33, %v2889_v51 }
 0x4e5   :  { %v6842_v41 = vadd.f32 %v3907_v5, %v3906_v49  ;;  %v3909_v20 = vpop.f32.mrb[122].mxu1  ;;  %v4924_v50 = vpop.eup %4923  ;;  %v4020_v54 = vadd.f32 %v4019_v62, %v4018_v55 }
 0x4e6   :  { %v4021_v14 = vpop.f32.mrb[122].mxu0  ;;  %v3910_v35 = vpop.f32.mrb[123].mxu1  ;;  %v3018_v59 = vsel %vm3017_vm1, %v2889_v51, %v3016_v52  ;;  %v3023_v17 = vmul.f32 %v4924_v50, %v2892_v31 }
 0x4e7   :  { %v4022_v36 = vpop.f32.mrb[123].mxu0  ;;  %v6844_v16 = vadd.f32 %v3910_v35, %v3909_v20  ;;  %v6846_v6 = vadd.f32 1e-08, %v4020_v54  ;;  %v3021_v44 = vsel %vm3019_vm2, %v3020_v13, %v3018_v59 }
 0x4e8   :  { %v4023_v56 = vadd.f32 %v4022_v36, %v4021_v14  ;;  %v3239_v32 = vmul.f32 %v3021_v44, %v2822_v38  ;;  %v3025_v7 = vsel %vm3024_vm3, %v2892_v31, %v3023_v17  ;;  %v2827_v44 = vld [vmem:[#allocation8 + $0x28] sm:$0xff] }
 0x4e9   :  { %4929 = vrsqrt.f32 %v6846_v6  ;;  %v3028_v26 = vsel %vm3026_vm4, %v3027_v57, %v3025_v7  ;;  %vm3045_vm9 = vcmp.eq.f32.partialorder %v6846_v6, inf  ;;  %vm3047_vm10 = vcmp.eq.f32.partialorder %v6846_v6, 0.0 }
 0x4ea   :  { %v6849_v28 = vadd.f32 1e-08, %v4023_v56  ;;  %v3271_v60 = vadd.f32 %v3896_v58, %v3239_v32  ;;  %v3240_v45 = vmul.f32 %v3028_v26, %v2823_v37  ;;  %v3912_v22 = vpop.f32.mrb[124].mxu1  ;;  %v3034_v58 = vand.u32 2147483648, %v6836_v0 }
 0x4eb   :  { %v4926_v2 = vpop.eup %4925  ;;  %v4024_v63 = vpop.f32.mrb[124].mxu0  ;;  %v3048_v14 = vand.u32 2147483648, %v6846_v6 }
 0x4ec   :  { %4931 = vrsqrt.f32 %v6849_v28  ;;  %v3913_v34 = vpop.f32.mrb[125].mxu1  ;;  %3303 = vst [vmem:[#allocation10] sm:$0xff] %v3271_v60  ;;  %v3272_v21 = vadd.f32 %v3899_v11, %v3240_v45  ;;  %v4025_v47 = vpop.f32.mrb[125].mxu0  ;;  %v3030_v18 = vmul.f32 %v4926_v2, %v6836_v0  ;;  %vm3052_vm11 = vcmp.eq.f32.partialorder %v6849_v28, inf }
 0x4ed   :  { %v6853_v40 = vadd.f32 %v3913_v34, %v3912_v22  ;;  %v3915_v30 = vpop.f32.mrb[126].mxu1  ;;  %v4928_v46 = vpop.eup %4927  ;;  %v4026_v4 = vadd.f32 %v4025_v47, %v4024_v63  ;;  %v3055_v37 = vand.u32 2147483648, %v6849_v28  ;;  %vm3054_vm12 = vcmp.eq.f32.partialorder %v6849_v28, 0.0 }
 0x4ee   :  { %v4027_v25 = vpop.f32.mrb[126].mxu0  ;;  %v3916_v29 = vpop.f32.mrb[127].mxu1  ;;  %3304 = vst [vmem:[#allocation10 + $0x8] sm:$0xff] %v3272_v21  ;;  %v3032_v15 = vsel %vm3031_vm5, %v6836_v0, %v3030_v18  ;;  %v3037_v11 = vmul.f32 %v4928_v46, %v6839_v27 }
 0x4ef   :  { %v4028_v3 = vpop.f32.mrb[127].mxu0  ;;  %v6861_v51 = vadd.f32 %v3916_v29, %v3915_v30  ;;  %v6863_v19 = vadd.f32 1e-08, %v4026_v4  ;;  %v3035_v39 = vsel %vm3033_vm6, %v3034_v58, %v3032_v15 }
 0x4f0   :  { %v4029_v31 = vadd.f32 %v4028_v3, %v4027_v25  ;;  %v3241_v61 = vmul.f32 %v3035_v39, %v2824_v12  ;;  %v3039_v53 = vsel %vm3038_vm7, %v6839_v27, %v3037_v11  ;;  %v2829_v39 = vld [vmem:[#allocation8 + $0x38] sm:$0xff] }
 0x4f1   :  { %4933 = vrsqrt.f32 %v6863_v19  ;;  %v3042_v10 = vsel %vm3040_vm8, %v3041_v24, %v3039_v53  ;;  %vm3059_vm13 = vcmp.eq.f32.partialorder %v6863_v19, inf  ;;  %vm3061_vm14 = vcmp.eq.f32.partialorder %v6863_v19, 0.0 }
 0x4f2   :  { %v6869_v43 = vadd.f32 1e-08, %v4029_v31  ;;  %v3273_v8 = vadd.f32 %v6832_v1, %v3241_v61  ;;  %v3242_v23 = vmul.f32 %v3042_v10, %v2825_v42  ;;  %v3918_v0 = vpop.f32.mrb[128].mxu1  ;;  %v2826_v1 = vld [vmem:[#allocation8 + $0x20] sm:$0xff]  ;;  %v3062_v25 = vand.u32 2147483648, %v6863_v19 }
 0x4f3   :  { %v4930_v48 = vpop.eup %4929  ;;  %v4030_v49 = vpop.f32.mrb[128].mxu0 }
 0x4f4   :  { %4935 = vrsqrt.f32 %v6869_v43  ;;  %v3919_v33 = vpop.f32.mrb[129].mxu1  ;;  %3305 = vst [vmem:[#allocation10 + $0x10] sm:$0xff] %v3273_v8  ;;  %v3274_v55 = vadd.f32 %v6834_v9, %v3242_v23  ;;  %v4031_v5 = vpop.f32.mrb[129].mxu0  ;;  %v3044_v27 = vmul.f32 %v4930_v48, %v6846_v6  ;;  %vm3066_vm15 = vcmp.eq.f32.partialorder %v6869_v43, inf }
 0x4f5   :  { %v6875_v62 = vadd.f32 %v3919_v33, %v3918_v0  ;;  %v3921_v52 = vpop.f32.mrb[130].mxu1  ;;  %v4032_v50 = vadd.f32 %v4031_v5, %v4030_v49  ;;  %v4033_v54 = vpop.f32.mrb[130].mxu0  ;;  %v3069_v42 = vand.u32 2147483648, %v6869_v43  ;;  %vm3068_vm0 = vcmp.eq.f32.partialorder %v6869_v43, 0.0 }
 0x4f6   :  { %v4932_v20 = vpop.eup %4931  ;;  %v3922_v38 = vpop.f32.mrb[131].mxu1  ;;  %3306 = vst [vmem:[#allocation10 + $0x18] sm:$0xff] %v3274_v55  ;;  %v3046_v9 = vsel %vm3045_vm9, %v6846_v6, %v3044_v27 }
 0x4f7   :  { %v4034_v13 = vpop.f32.mrb[131].mxu0  ;;  %v3051_v35 = vmul.f32 %v4932_v20, %v6849_v28  ;;  %v6883_v36 = vadd.f32 %v3922_v38, %v3921_v52  ;;  %v6885_v59 = vadd.f32 1e-08, %v4032_v50  ;;  %v3049_v56 = vsel %vm3047_vm10, %v3048_v14, %v3046_v9 }
 0x4f8   :  { %v4035_v17 = vadd.f32 %v4034_v13, %v4033_v54  ;;  %v3243_v57 = vmul.f32 %v3049_v56, %v2826_v1  ;;  %v2831_v56 = vld [vmem:[#allocation8 + $0x48] sm:$0xff] }
 0x4f9   :  { %v3053_v32 = vsel %vm3052_vm11, %v6849_v28, %v3051_v35  ;;  %4937 = vrsqrt.f32 %v6885_v59  ;;  %vm3073_vm1 = vcmp.eq.f32.partialorder %v6885_v59, inf  ;;  %vm3075_vm2 = vcmp.eq.f32.partialorder %v6885_v59, 0.0 }
 0x4fa   :  { %v6891_v6 = vadd.f32 1e-08, %v4035_v17  ;;  %v3056_v7 = vsel %vm3054_vm12, %v3055_v37, %v3053_v32  ;;  %v3275_v26 = vadd.f32 %v6842_v41, %v3243_v57  ;;  %v3924_v45 = vpop.f32.mrb[132].mxu1  ;;  %v2828_v41 = vld [vmem:[#allocation8 + $0x30] sm:$0xff]  ;;  %v3076_v54 = vand.u32 2147483648, %v6885_v59 }
 0x4fb   :  { %v3244_v60 = vmul.f32 %v3056_v7, %v2827_v44  ;;  %v4934_v22 = vpop.eup %4933  ;;  %v4036_v2 = vpop.f32.mrb[132].mxu0 }
 0x4fc   :  { %4939 = vrsqrt.f32 %v6891_v6  ;;  %v3925_v63 = vpop.f32.mrb[133].mxu1  ;;  %3307 = vst [vmem:[#allocation10 + $0x20] sm:$0xff] %v3275_v26  ;;  %v4037_v21 = vpop.f32.mrb[133].mxu0  ;;  %v3058_v28 = vmul.f32 %v4934_v22, %v6863_v19  ;;  %vm3080_vm3 = vcmp.eq.f32.partialorder %v6891_v6, inf  ;;  %v3083_v44 = vand.u32 2147483648, %v6891_v6 }
 0x4fd   :  { %v3276_v34 = vadd.f32 %v6844_v16, %v3244_v60  ;;  %v6897_v47 = vadd.f32 %v3925_v63, %v3924_v45  ;;  %v3927_v18 = vpop.f32.mrb[134].mxu1  ;;  %v4038_v46 = vadd.f32 %v4037_v21, %v4036_v2  ;;  %v4039_v4 = vpop.f32.mrb[134].mxu0  ;;  %vm3082_vm4 = vcmp.eq.f32.partialorder %v6891_v6, 0.0 }
 0x4fe   :  { %v4936_v30 = vpop.eup %4935  ;;  %v3928_v12 = vpop.f32.mrb[135].mxu1  ;;  %v3060_v16 = vsel %vm3059_vm13, %v6863_v19, %v3058_v28 }
 0x4ff   :  { %3308 = vst [vmem:[#allocation10 + $0x28] sm:$0xff] %v3276_v34  ;;  %v4040_v58 = vpop.f32.mrb[135].mxu0  ;;  %v3065_v29 = vmul.f32 %v4936_v30, %v6869_v43  ;;  %v6905_v3 = vadd.f32 %v3928_v12, %v3927_v18  ;;  %v6907_v15 = vadd.f32 1e-08, %v4038_v46  ;;  %v3063_v31 = vsel %vm3061_vm14, %v3062_v25, %v3060_v16 }
 0x500   :  { %v4041_v11 = vadd.f32 %v4040_v58, %v4039_v4  ;;  %v3245_v24 = vmul.f32 %v3063_v31, %v2828_v41  ;;  %v2833_v31 = vld [vmem:[#allocation8 + $0x58] sm:$0xff] }
 0x501   :  { %v3067_v61 = vsel %vm3066_vm15, %v6869_v43, %v3065_v29  ;;  %4941 = vrsqrt.f32 %v6907_v15  ;;  %vm3087_vm5 = vcmp.eq.f32.partialorder %v6907_v15, inf  ;;  %vm3089_vm6 = vcmp.eq.f32.partialorder %v6907_v15, 0.0 }
 0x502   :  { %v6913_v19 = vadd.f32 1e-08, %v4041_v11  ;;  %v3070_v53 = vsel %vm3068_vm0, %v3069_v42, %v3067_v61  ;;  %v3277_v10 = vadd.f32 %v6853_v40, %v3245_v24  ;;  %v3930_v23 = vpop.f32.mrb[136].mxu1  ;;  %v2830_v40 = vld [vmem:[#allocation8 + $0x40] sm:$0xff]  ;;  %v3090_v4 = vand.u32 2147483648, %v6907_v15 }
 0x503   :  { %v3246_v8 = vmul.f32 %v3070_v53, %v2829_v39  ;;  %v4938_v0 = vpop.eup %4937  ;;  %v4042_v48 = vpop.f32.mrb[136].mxu0 }
 0x504   :  { %4943 = vrsqrt.f32 %v6913_v19  ;;  %v3931_v49 = vpop.f32.mrb[137].mxu1  ;;  %3309 = vst [vmem:[#allocation10 + $0x30] sm:$0xff] %v3277_v10  ;;  %v4043_v55 = vpop.f32.mrb[137].mxu0  ;;  %v3072_v43 = vmul.f32 %v4938_v0, %v6885_v59  ;;  %vm3094_vm7 = vcmp.eq.f32.partialorder %v6913_v19, inf  ;;  %v3097_v39 = vand.u32 2147483648, %v6913_v19 }
 0x505   :  { %v3278_v33 = vadd.f32 %v6861_v51, %v3246_v8  ;;  %v6919_v5 = vadd.f32 %v3931_v49, %v3930_v23  ;;  %v3933_v27 = vpop.f32.mrb[138].mxu1  ;;  %v4044_v20 = vadd.f32 %v4043_v55, %v4042_v48  ;;  %v4045_v50 = vpop.f32.mrb[138].mxu0  ;;  %vm3096_vm8 = vcmp.eq.f32.partialorder %v6913_v19, 0.0 }
 0x506   :  { %v4940_v52 = vpop.eup %4939  ;;  %v3934_v1 = vpop.f32.mrb[139].mxu1  ;;  %v3074_v51 = vsel %vm3073_vm1, %v6885_v59, %v3072_v43 }
 0x507   :  { %3310 = vst [vmem:[#allocation10 + $0x38] sm:$0xff] %v3278_v33  ;;  %v4046_v14 = vpop.f32.mrb[139].mxu0  ;;  %v3079_v38 = vmul.f32 %v4940_v52, %v6891_v6  ;;  %v6927_v13 = vadd.f32 %v3934_v1, %v3933_v27  ;;  %v6929_v9 = vadd.f32 1e-08, %v4044_v20  ;;  %v3077_v17 = vsel %vm3075_vm2, %v3076_v54, %v3074_v51 }
 0x508   :  { %v4047_v35 = vadd.f32 %v4046_v14, %v4045_v50  ;;  %v3247_v37 = vmul.f32 %v3077_v17, %v2830_v40  ;;  %v2835_v17 = vld [vmem:[#allocation8 + $0x68] sm:$0xff] }
 0x509   :  { %v3081_v57 = vsel %vm3080_vm3, %v6891_v6, %v3079_v38  ;;  %4945 = vrsqrt.f32 %v6929_v9  ;;  %vm3101_vm9 = vcmp.eq.f32.partialorder %v6929_v9, inf  ;;  %vm3103_vm10 = vcmp.eq.f32.partialorder %v6929_v9, 0.0 }
 0x50a   :  { %v6935_v59 = vadd.f32 1e-08, %v4047_v35  ;;  %v3084_v32 = vsel %vm3082_vm4, %v3083_v44, %v3081_v57  ;;  %v3279_v7 = vadd.f32 %v6875_v62, %v3247_v37  ;;  %v3936_v60 = vpop.f32.mrb[140].mxu1  ;;  %v2832_v62 = vld [vmem:[#allocation8 + $0x50] sm:$0xff]  ;;  %v3104_v50 = vand.u32 2147483648, %v6929_v9 }
 0x50b   :  { %v3248_v26 = vmul.f32 %v3084_v32, %v2831_v56  ;;  %v4942_v45 = vpop.eup %4941  ;;  %v4048_v22 = vpop.f32.mrb[140].mxu0 }
 0x50c   :  { %4947 = vrsqrt.f32 %v6935_v59  ;;  %v3937_v2 = vpop.f32.mrb[141].mxu1  ;;  %3311 = vst [vmem:[#allocation10 + $0x40] sm:$0xff] %v3279_v7  ;;  %v4049_v34 = vpop.f32.mrb[141].mxu0  ;;  %v3086_v6 = vmul.f32 %v4942_v45, %v6907_v15  ;;  %vm3108_vm11 = vcmp.eq.f32.partialorder %v6935_v59, inf  ;;  %v3111_v56 = vand.u32 2147483648, %v6935_v59 }
 0x50d   :  { %v3280_v63 = vadd.f32 %v6883_v36, %v3248_v26  ;;  %v6941_v21 = vadd.f32 %v3937_v2, %v3936_v60  ;;  %v3939_v28 = vpop.f32.mrb[142].mxu1  ;;  %v4050_v30 = vadd.f32 %v4049_v34, %v4048_v22  ;;  %v4051_v46 = vpop.f32.mrb[142].mxu0  ;;  %vm3110_vm12 = vcmp.eq.f32.partialorder %v6935_v59, 0.0 }
 0x50e   :  { %v4944_v18 = vpop.eup %4943  ;;  %v3940_v41 = vpop.f32.mrb[143].mxu1  ;;  %v3088_v36 = vsel %vm3087_vm5, %v6907_v15, %v3086_v6 }
 0x50f   :  { %3312 = vst [vmem:[#allocation10 + $0x48] sm:$0xff] %v3280_v63  ;;  %v4052_v25 = vpop.f32.mrb[143].mxu0  ;;  %v3093_v12 = vmul.f32 %v4944_v18, %v6913_v19  ;;  %v6949_v58 = vadd.f32 %v3940_v41, %v3939_v28  ;;  %v6951_v16 = vadd.f32 1e-08, %v4050_v30  ;;  %v3091_v11 = vsel %vm3089_vm6, %v3090_v4, %v3088_v36 }
 0x510   :  { %v4053_v29 = vadd.f32 %v4052_v25, %v4051_v46  ;;  %v3249_v42 = vmul.f32 %v3091_v11, %v2832_v62  ;;  %v2837_v11 = vld [vmem:[#allocation8 + $0x78] sm:$0xff] }
 0x511   :  { %v3095_v24 = vsel %vm3094_vm7, %v6913_v19, %v3093_v12  ;;  %4949 = vrsqrt.f32 %v6951_v16  ;;  %vm3115_vm13 = vcmp.eq.f32.partialorder %v6951_v16, inf  ;;  %vm3117_vm14 = vcmp.eq.f32.partialorder %v6951_v16, 0.0 }
 0x512   :  { %v6957_v15 = vadd.f32 1e-08, %v4053_v29  ;;  %v3098_v61 = vsel %vm3096_vm8, %v3097_v39, %v3095_v24  ;;  %v3281_v53 = vadd.f32 %v6897_v47, %v3249_v42  ;;  %v3942_v8 = vpop.f32.mrb[144].mxu1  ;;  %v2834_v47 = vld [vmem:[#allocation8 + $0x60] sm:$0xff]  ;;  %v3118_v46 = vand.u32 2147483648, %v6951_v16 }
 0x513   :  { %v3250_v10 = vmul.f32 %v3098_v61, %v2833_v31  ;;  %v4946_v23 = vpop.eup %4945  ;;  %v4054_v0 = vpop.f32.mrb[144].mxu0 }
 0x514   :  { %4951 = vrsqrt.f32 %v6957_v15  ;;  %v3943_v48 = vpop.f32.mrb[145].mxu1  ;;  %3313 = vst [vmem:[#allocation10 + $0x50] sm:$0xff] %v3281_v53  ;;  %v4055_v33 = vpop.f32.mrb[145].mxu0  ;;  %v3100_v19 = vmul.f32 %v4946_v23, %v6929_v9  ;;  %vm3122_vm15 = vcmp.eq.f32.partialorder %v6957_v15, inf  ;;  %v3125_v31 = vand.u32 2147483648, %v6957_v15 }
 0x515   :  { %v3282_v49 = vadd.f32 %v6905_v3, %v3250_v10  ;;  %v6963_v55 = vadd.f32 %v3943_v48, %v3942_v8  ;;  %v3945_v43 = vpop.f32.mrb[146].mxu1  ;;  %v4056_v52 = vadd.f32 %v4055_v33, %v4054_v0  ;;  %v4057_v20 = vpop.f32.mrb[146].mxu0  ;;  %vm3124_vm0 = vcmp.eq.f32.partialorder %v6957_v15, 0.0 }
 0x516   :  { %v4948_v27 = vpop.eup %4947  ;;  %v3946_v40 = vpop.f32.mrb[147].mxu1  ;;  %v3102_v3 = vsel %vm3101_vm9, %v6929_v9, %v3100_v19 }
 0x517   :  { %3314 = vst [vmem:[#allocation10 + $0x58] sm:$0xff] %v3282_v49  ;;  %v4058_v54 = vpop.f32.mrb[147].mxu0  ;;  %v3107_v1 = vmul.f32 %v4948_v27, %v6935_v59  ;;  %v6971_v14 = vadd.f32 %v3946_v40, %v3945_v43  ;;  %v6973_v51 = vadd.f32 1e-08, %v4056_v52  ;;  %v3105_v35 = vsel %vm3103_vm10, %v3104_v50, %v3102_v3 }
 0x518   :  { %v4059_v38 = vadd.f32 %v4058_v54, %v4057_v20  ;;  %v3251_v44 = vmul.f32 %v3105_v35, %v2834_v47  ;;  %v2839_v35 = vld [vmem:[#allocation8 + $0x88] sm:$0xff] }
 0x519   :  { %v3109_v37 = vsel %vm3108_vm11, %v6935_v59, %v3107_v1  ;;  %4953 = vrsqrt.f32 %v6973_v51  ;;  %vm3129_vm1 = vcmp.eq.f32.partialorder %v6973_v51, inf  ;;  %vm3131_vm2 = vcmp.eq.f32.partialorder %v6973_v51, 0.0 }
 0x51a   :  { %v6979_v9 = vadd.f32 1e-08, %v4059_v38  ;;  %v3112_v57 = vsel %vm3110_vm12, %v3111_v56, %v3109_v37  ;;  %v3283_v32 = vadd.f32 %v6919_v5, %v3251_v44  ;;  %v3948_v26 = vpop.f32.mrb[148].mxu1  ;;  %v2836_v5 = vld [vmem:[#allocation8 + $0x70] sm:$0xff]  ;;  %v3132_v20 = vand.u32 2147483648, %v6973_v51 }
 0x51b   :  { %v3252_v7 = vmul.f32 %v3112_v57, %v2835_v17  ;;  %v4950_v60 = vpop.eup %4949  ;;  %v4060_v45 = vpop.f32.mrb[148].mxu0 }
 0x51c   :  { %4955 = vrsqrt.f32 %v6979_v9  ;;  %v3949_v22 = vpop.f32.mrb[149].mxu1  ;;  %3315 = vst [vmem:[#allocation10 + $0x60] sm:$0xff] %v3283_v32  ;;  %v4061_v63 = vpop.f32.mrb[149].mxu0  ;;  %v3114_v59 = vmul.f32 %v4950_v60, %v6951_v16  ;;  %vm3136_vm3 = vcmp.eq.f32.partialorder %v6979_v9, inf  ;;  %v3139_v17 = vand.u32 2147483648, %v6979_v9 }
 0x51d   :  { %v3284_v2 = vadd.f32 %v6927_v13, %v3252_v7  ;;  %v6985_v34 = vadd.f32 %v3949_v22, %v3948_v26  ;;  %v3951_v6 = vpop.f32.mrb[150].mxu1  ;;  %v4062_v18 = vadd.f32 %v4061_v63, %v4060_v45  ;;  %v4063_v30 = vpop.f32.mrb[150].mxu0  ;;  %vm3138_vm4 = vcmp.eq.f32.partialorder %v6979_v9, 0.0 }
 0x51e   :  { %v4952_v28 = vpop.eup %4951  ;;  %v3952_v62 = vpop.f32.mrb[151].mxu1  ;;  %v3116_v13 = vsel %vm3115_vm13, %v6951_v16, %v3114_v59 }
 0x51f   :  { %3316 = vst [vmem:[#allocation10 + $0x68] sm:$0xff] %v3284_v2  ;;  %v4064_v4 = vpop.f32.mrb[151].mxu0  ;;  %v3121_v41 = vmul.f32 %v4952_v28, %v6957_v15  ;;  %v6993_v25 = vadd.f32 %v3952_v62, %v3951_v6  ;;  %v6995_v36 = vadd.f32 1e-08, %v4062_v18  ;;  %v3119_v29 = vsel %vm3117_vm14, %v3118_v46, %v3116_v13 }
 0x520   :  { %v4065_v12 = vadd.f32 %v4064_v4, %v4063_v30  ;;  %v3253_v39 = vmul.f32 %v3119_v29, %v2836_v5  ;;  %v2841_v29 = vld [vmem:[#allocation8 + $0x98] sm:$0xff] }
 0x521   :  { %v3123_v42 = vsel %vm3122_vm15, %v6957_v15, %v3121_v41  ;;  %4957 = vrsqrt.f32 %v6995_v36  ;;  %vm3143_vm5 = vcmp.eq.f32.partialorder %v6995_v36, inf  ;;  %vm3145_vm6 = vcmp.eq.f32.partialorder %v6995_v36, 0.0 }
 0x522   :  { %v7001_v16 = vadd.f32 1e-08, %v4065_v12  ;;  %v3126_v24 = vsel %vm3124_vm0, %v3125_v31, %v3123_v42  ;;  %v3285_v61 = vadd.f32 %v6941_v21, %v3253_v39  ;;  %v3954_v10 = vpop.f32.mrb[152].mxu1  ;;  %v2838_v21 = vld [vmem:[#allocation8 + $0x80] sm:$0xff]  ;;  %v3146_v30 = vand.u32 2147483648, %v6995_v36 }
 0x523   :  { %v3254_v53 = vmul.f32 %v3126_v24, %v2837_v11  ;;  %v4954_v8 = vpop.eup %4953  ;;  %v4066_v23 = vpop.f32.mrb[152].mxu0 }
 0x524   :  { %4959 = vrsqrt.f32 %v7001_v16  ;;  %v3955_v0 = vpop.f32.mrb[153].mxu1  ;;  %3317 = vst [vmem:[#allocation10 + $0x70] sm:$0xff] %v3285_v61  ;;  %v4067_v49 = vpop.f32.mrb[153].mxu0  ;;  %v3128_v15 = vmul.f32 %v4954_v8, %v6973_v51  ;;  %vm3150_vm7 = vcmp.eq.f32.partialorder %v7001_v16, inf  ;;  %v3153_v11 = vand.u32 2147483648, %v7001_v16 }
 0x525   :  { %v3286_v48 = vadd.f32 %v6949_v58, %v3254_v53  ;;  %v7007_v33 = vadd.f32 %v3955_v0, %v3954_v10  ;;  %v3957_v19 = vpop.f32.mrb[154].mxu1  ;;  %v4068_v27 = vadd.f32 %v4067_v49, %v4066_v23  ;;  %v4069_v52 = vpop.f32.mrb[154].mxu0  ;;  %vm3152_vm8 = vcmp.eq.f32.partialorder %v7001_v16, 0.0 }
 0x526   :  { %v4956_v43 = vpop.eup %4955  ;;  %v3958_v47 = vpop.f32.mrb[155].mxu1  ;;  %v3130_v58 = vsel %vm3129_vm1, %v6973_v51, %v3128_v15 }
 0x527   :  { %3318 = vst [vmem:[#allocation10 + $0x78] sm:$0xff] %v3286_v48  ;;  %v4070_v50 = vpop.f32.mrb[155].mxu0  ;;  %v3135_v40 = vmul.f32 %v4956_v43, %v6979_v9  ;;  %v7015_v54 = vadd.f32 %v3958_v47, %v3957_v19  ;;  %v7017_v3 = vadd.f32 1e-08, %v4068_v27  ;;  %v3133_v38 = vsel %vm3131_vm2, %v3132_v20, %v3130_v58 }
 0x528   :  { %v4071_v1 = vadd.f32 %v4070_v50, %v4069_v52  ;;  %v3255_v56 = vmul.f32 %v3133_v38, %v2838_v21  ;;  %v2843_v38 = vld [vmem:[#allocation8 + $0xa8] sm:$0xff] }
 0x529   :  { %v3137_v44 = vsel %vm3136_vm3, %v6979_v9, %v3135_v40  ;;  %4961 = vrsqrt.f32 %v7017_v3  ;;  %vm3157_vm9 = vcmp.eq.f32.partialorder %v7017_v3, inf  ;;  %vm3159_vm10 = vcmp.eq.f32.partialorder %v7017_v3, 0.0 }
 0x52a   :  { %v7023_v51 = vadd.f32 1e-08, %v4071_v1  ;;  %v3140_v37 = vsel %vm3138_vm4, %v3139_v17, %v3137_v44  ;;  %v3287_v57 = vadd.f32 %v6963_v55, %v3255_v56  ;;  %v3960_v7 = vpop.f32.mrb[156].mxu1  ;;  %v2840_v55 = vld [vmem:[#allocation8 + $0x90] sm:$0xff]  ;;  %v3160_v52 = vand.u32 2147483648, %v7017_v3 }
 0x52b   :  { %v3256_v32 = vmul.f32 %v3140_v37, %v2839_v35  ;;  %v4958_v26 = vpop.eup %4957  ;;  %v4072_v60 = vpop.f32.mrb[156].mxu0 }
 0x52c   :  { %4963 = vrsqrt.f32 %v7023_v51  ;;  %v3961_v45 = vpop.f32.mrb[157].mxu1  ;;  %3319 = vst [vmem:[#allocation10 + $0x80] sm:$0xff] %v3287_v57  ;;  %v4073_v2 = vpop.f32.mrb[157].mxu0  ;;  %v3142_v9 = vmul.f32 %v4958_v26, %v6995_v36  ;;  %vm3164_vm11 = vcmp.eq.f32.partialorder %v7023_v51, inf  ;;  %v3167_v35 = vand.u32 2147483648, %v7023_v51 }
 0x52d   :  { %v3288_v22 = vadd.f32 %v6971_v14, %v3256_v32  ;;  %v7029_v63 = vadd.f32 %v3961_v45, %v3960_v7  ;;  %v3963_v59 = vpop.f32.mrb[158].mxu1  ;;  %v4074_v28 = vadd.f32 %v4073_v2, %v4072_v60  ;;  %v4075_v18 = vpop.f32.mrb[158].mxu0  ;;  %vm3166_vm12 = vcmp.eq.f32.partialorder %v7023_v51, 0.0 }
 0x52e   :  { %v4960_v6 = vpop.eup %4959  ;;  %v3964_v5 = vpop.f32.mrb[159].mxu1  ;;  %v3144_v14 = vsel %vm3143_vm5, %v6995_v36, %v3142_v9 }
 0x52f   :  { %3320 = vst [vmem:[#allocation10 + $0x88] sm:$0xff] %v3288_v22  ;;  %v4076_v46 = vpop.f32.mrb[159].mxu0  ;;  %v3149_v62 = vmul.f32 %v4960_v6, %v7001_v16  ;;  %v7037_v4 = vadd.f32 %v3964_v5, %v3963_v59  ;;  %v7039_v13 = vadd.f32 1e-08, %v4074_v28  ;;  %v3147_v12 = vsel %vm3145_vm6, %v3146_v30, %v3144_v14 }
 0x530   :  { %v4077_v41 = vadd.f32 %v4076_v46, %v4075_v18  ;;  %v3257_v31 = vmul.f32 %v3147_v12, %v2840_v55  ;;  %v2845_v12 = vld [vmem:[#allocation8 + $0xb8] sm:$0xff] }
 0x531   :  { %v3151_v39 = vsel %vm3150_vm7, %v7001_v16, %v3149_v62  ;;  %4965 = vrsqrt.f32 %v7039_v13  ;;  %vm3171_vm13 = vcmp.eq.f32.partialorder %v7039_v13, inf  ;;  %vm3173_vm14 = vcmp.eq.f32.partialorder %v7039_v13, 0.0 }
 0x532   :  { %v7045_v36 = vadd.f32 1e-08, %v4077_v41  ;;  %v3154_v42 = vsel %vm3152_vm8, %v3153_v11, %v3151_v39  ;;  %v3289_v24 = vadd.f32 %v6985_v34, %v3257_v31  ;;  %v3966_v53 = vpop.f32.mrb[160].mxu1  ;;  %v2842_v34 = vld [vmem:[#allocation8 + $0xa0] sm:$0xff]  ;;  %v3174_v18 = vand.u32 2147483648, %v7039_v13 }
 0x533   :  { %v3258_v61 = vmul.f32 %v3154_v42, %v2841_v29  ;;  %v4962_v10 = vpop.eup %4961  ;;  %v4078_v8 = vpop.f32.mrb[160].mxu0 }
 0x534   :  { %4967 = vrsqrt.f32 %v7045_v36  ;;  %v3967_v23 = vpop.f32.mrb[161].mxu1  ;;  %3321 = vst [vmem:[#allocation10 + $0x90] sm:$0xff] %v3289_v24  ;;  %v4079_v48 = vpop.f32.mrb[161].mxu0  ;;  %v3156_v16 = vmul.f32 %v4962_v10, %v7017_v3  ;;  %vm3178_vm15 = vcmp.eq.f32.partialorder %v7045_v36, inf  ;;  %v3181_v29 = vand.u32 2147483648, %v7045_v36 }
 0x535   :  { %v3290_v0 = vadd.f32 %v6993_v25, %v3258_v61  ;;  %v7051_v49 = vadd.f32 %v3967_v23, %v3966_v53  ;;  %v3969_v15 = vpop.f32.mrb[162].mxu1  ;;  %v4080_v43 = vadd.f32 %v4079_v48, %v4078_v8  ;;  %v4081_v27 = vpop.f32.mrb[162].mxu0  ;;  %vm3180_vm0 = vcmp.eq.f32.partialorder %v7045_v36, 0.0 }
 0x536   :  { %v4964_v19 = vpop.eup %4963  ;;  %v3970_v21 = vpop.f32.mrb[163].mxu1  ;;  %v3158_v25 = vsel %vm3157_vm9, %v7017_v3, %v3156_v16 }
 0x537   :  { %3322 = vst [vmem:[#allocation10 + $0x98] sm:$0xff] %v3290_v0  ;;  %v4082_v20 = vpop.f32.mrb[163].mxu0  ;;  %v3163_v47 = vmul.f32 %v4964_v19, %v7023_v51  ;;  %v7059_v50 = vadd.f32 %v3970_v21, %v3969_v15  ;;  %v7061_v58 = vadd.f32 1e-08, %v4080_v43  ;;  %v3161_v1 = vsel %vm3159_vm10, %v3160_v52, %v3158_v25 }
 0x538   :  { %v4083_v40 = vadd.f32 %v4082_v20, %v4081_v27  ;;  %v3259_v17 = vmul.f32 %v3161_v1, %v2842_v34  ;;  %v2847_v1 = vld [vmem:[#allocation8 + $0xc8] sm:$0xff] }
 0x539   :  { %v3165_v56 = vsel %vm3164_vm11, %v7023_v51, %v3163_v47  ;;  %4969 = vrsqrt.f32 %v7061_v58  ;;  %vm3185_vm1 = vcmp.eq.f32.partialorder %v7061_v58, inf  ;;  %vm3187_vm2 = vcmp.eq.f32.partialorder %v7061_v58, 0.0 }
 0x53a   :  { %v7067_v3 = vadd.f32 1e-08, %v4083_v40  ;;  %v3168_v44 = vsel %vm3166_vm12, %v3167_v35, %v3165_v56  ;;  %v3291_v37 = vadd.f32 %v7007_v33, %v3259_v17  ;;  %v3972_v32 = vpop.f32.mrb[164].mxu1  ;;  %v2844_v33 = vld [vmem:[#allocation8 + $0xb0] sm:$0xff]  ;;  %v3188_v27 = vand.u32 2147483648, %v7061_v58 }
 0x53b   :  { %v3260_v57 = vmul.f32 %v3168_v44, %v2843_v38  ;;  %v4966_v7 = vpop.eup %4965  ;;  %v4084_v26 = vpop.f32.mrb[164].mxu0 }
 0x53c   :  { %4971 = vrsqrt.f32 %v7067_v3  ;;  %v3973_v60 = vpop.f32.mrb[165].mxu1  ;;  %3323 = vst [vmem:[#allocation10 + $0xa0] sm:$0xff] %v3291_v37  ;;  %v4085_v22 = vpop.f32.mrb[165].mxu0  ;;  %v3170_v51 = vmul.f32 %v4966_v7, %v7039_v13  ;;  %vm3192_vm3 = vcmp.eq.f32.partialorder %v7067_v3, inf  ;;  %v3195_v38 = vand.u32 2147483648, %v7067_v3 }
 0x53d   :  { %v3292_v45 = vadd.f32 %v7015_v54, %v3260_v57  ;;  %v7073_v2 = vadd.f32 %v3973_v60, %v3972_v32  ;;  %v3975_v9 = vpop.f32.mrb[166].mxu1  ;;  %v4086_v6 = vadd.f32 %v4085_v22, %v4084_v26  ;;  %v4087_v28 = vpop.f32.mrb[166].mxu0  ;;  %vm3194_vm4 = vcmp.eq.f32.partialorder %v7067_v3, 0.0 }
 0x53e   :  { %v4968_v59 = vpop.eup %4967  ;;  %v3976_v55 = vpop.f32.mrb[167].mxu1  ;;  %v3172_v54 = vsel %vm3171_vm13, %v7039_v13, %v3170_v51 }
 0x53f   :  { %3324 = vst [vmem:[#allocation10 + $0xa8] sm:$0xff] %v3292_v45  ;;  %v4088_v30 = vpop.f32.mrb[167].mxu0  ;;  %v3177_v5 = vmul.f32 %v4968_v59, %v7045_v36  ;;  %v7081_v46 = vadd.f32 %v3976_v55, %v3975_v9  ;;  %v7083_v14 = vadd.f32 1e-08, %v4086_v6  ;;  %v3175_v41 = vsel %vm3173_vm14, %v3174_v18, %v3172_v54 }
 0x540   :  { %v4089_v62 = vadd.f32 %v4088_v30, %v4087_v28  ;;  %v3261_v11 = vmul.f32 %v3175_v41, %v2844_v33  ;;  %v2849_v41 = vld [vmem:[#allocation8 + $0xd8] sm:$0xff] }
 0x541   :  { %v3179_v31 = vsel %vm3178_vm15, %v7045_v36, %v3177_v5  ;;  %4973 = vrsqrt.f32 %v7083_v14  ;;  %vm3199_vm5 = vcmp.eq.f32.partialorder %v7083_v14, inf  ;;  %vm3201_vm6 = vcmp.eq.f32.partialorder %v7083_v14, 0.0 }
 0x542   :  { %v7089_v13 = vadd.f32 1e-08, %v4089_v62  ;;  %v3182_v39 = vsel %vm3180_vm0, %v3181_v29, %v3179_v31  ;;  %v3293_v42 = vadd.f32 %v7029_v63, %v3261_v11  ;;  %v3978_v61 = vpop.f32.mrb[168].mxu1  ;;  %v2846_v63 = vld [vmem:[#allocation8 + $0xc0] sm:$0xff]  ;;  %v3202_v28 = vand.u32 2147483648, %v7083_v14 }
 0x543   :  { %v3262_v24 = vmul.f32 %v3182_v39, %v2845_v12  ;;  %v4970_v53 = vpop.eup %4969  ;;  %v4090_v10 = vpop.f32.mrb[168].mxu0 }
 0x544   :  { %4975 = vrsqrt.f32 %v7089_v13  ;;  %v3979_v8 = vpop.f32.mrb[169].mxu1  ;;  %3325 = vst [vmem:[#allocation10 + $0xb0] sm:$0xff] %v3293_v42  ;;  %v4091_v0 = vpop.f32.mrb[169].mxu0  ;;  %v3184_v36 = vmul.f32 %v4970_v53, %v7061_v58  ;;  %vm3206_vm7 = vcmp.eq.f32.partialorder %v7089_v13, inf  ;;  %v3209_v12 = vand.u32 2147483648, %v7089_v13 }
 0x545   :  { %v3294_v23 = vadd.f32 %v7037_v4, %v3262_v24  ;;  %v7095_v48 = vadd.f32 %v3979_v8, %v3978_v61  ;;  %v3981_v16 = vpop.f32.mrb[170].mxu1  ;;  %v4092_v19 = vadd.f32 %v4091_v0, %v4090_v10  ;;  %v4093_v43 = vpop.f32.mrb[170].mxu0  ;;  %vm3208_vm8 = vcmp.eq.f32.partialorder %v7089_v13, 0.0  ;;  %v2850_v8 = vld [vmem:[#allocation8 + $0xe0] sm:$0xff] }
 0x546   :  { %v4972_v15 = vpop.eup %4971  ;;  %v3982_v34 = vpop.f32.mrb[171].mxu1  ;;  %v3186_v4 = vsel %vm3185_vm1, %v7061_v58, %v3184_v36  ;;  %v2851_v36 = vld [vmem:[#allocation8 + $0xe8] sm:$0xff] }
 0x547   :  { %3326 = vst [vmem:[#allocation10 + $0xb8] sm:$0xff] %v3294_v23  ;;  %v4094_v52 = vpop.f32.mrb[171].mxu0  ;;  %v3191_v21 = vmul.f32 %v4972_v15, %v7067_v3  ;;  %v7103_v20 = vadd.f32 %v3982_v34, %v3981_v16  ;;  %v7105_v25 = vadd.f32 1e-08, %v4092_v19  ;;  %v3189_v40 = vsel %vm3187_vm2, %v3188_v27, %v3186_v4 }
 0x548   :  { %v4095_v47 = vadd.f32 %v4094_v52, %v4093_v43  ;;  %v3263_v35 = vmul.f32 %v3189_v40, %v2846_v63 }
 0x549   :  { %v3193_v17 = vsel %vm3192_vm3, %v7067_v3, %v3191_v21  ;;  %4977 = vrsqrt.f32 %v7105_v25  ;;  %vm3213_vm9 = vcmp.eq.f32.partialorder %v7105_v25, inf  ;;  %v3216_v23 = vand.u32 2147483648, %v7105_v25  ;;  %v2852_v21 = vld [vmem:[#allocation8 + $0xf0] sm:$0xff] }
 0x54a   :  { %v7111_v58 = vadd.f32 1e-08, %v4095_v47  ;;  %v3196_v56 = vsel %vm3194_vm4, %v3195_v38, %v3193_v17  ;;  %v3295_v44 = vadd.f32 %v7051_v49, %v3263_v35  ;;  %v3984_v57 = vpop.f32.mrb[172].mxu1  ;;  %v2848_v49 = vld [vmem:[#allocation8 + $0xd0] sm:$0xff]  ;;  %vm3215_vm10 = vcmp.eq.f32.partialorder %v7105_v25, 0.0  ;;  %v2853_v38 = vld [vmem:[#allocation8 + $0xf8] sm:$0xff] }
 0x54b   :  { %v3264_v37 = vmul.f32 %v3196_v56, %v2847_v1  ;;  %v4974_v32 = vpop.eup %4973  ;;  %v4096_v7 = vpop.f32.mrb[172].mxu0 }
 0x54c   :  { %4979 = vrsqrt.f32 %v7111_v58  ;;  %v3985_v26 = vpop.f32.mrb[173].mxu1  ;;  %3327 = vst [vmem:[#allocation10 + $0xc0] sm:$0xff] %v3295_v44  ;;  %v4097_v45 = vpop.f32.mrb[173].mxu0  ;;  %v3198_v3 = vmul.f32 %v4974_v32, %v7083_v14  ;;  %vm3220_vm11 = vcmp.eq.f32.partialorder %v7111_v58, inf  ;;  %vm3222_vm12 = vcmp.eq.f32.partialorder %v7111_v58, 0.0 }
 0x54d   :  { %v3296_v60 = vadd.f32 %v7059_v50, %v3264_v37  ;;  %v7117_v22 = vadd.f32 %v3985_v26, %v3984_v57  ;;  %v3987_v51 = vpop.f32.mrb[174].mxu1  ;;  %v4098_v59 = vadd.f32 %v4097_v45, %v4096_v7  ;;  %v4099_v6 = vpop.f32.mrb[174].mxu0 }
 0x54e   :  { %v4976_v9 = vpop.eup %4975  ;;  %v3988_v33 = vpop.f32.mrb[175].mxu1  ;;  %v3200_v50 = vsel %vm3199_vm5, %v7083_v14, %v3198_v3 }
 0x54f   :  { %3328 = vst [vmem:[#allocation10 + $0xc8] sm:$0xff] %v3296_v60  ;;  %v4100_v18 = vpop.f32.mrb[175].mxu0  ;;  %v3205_v55 = vmul.f32 %v4976_v9, %v7089_v13  ;;  %v3989_v30 = vadd.f32 %v3988_v33, %v3987_v51  ;;  %v3009_v54 = vadd.f32 1e-08, %v4098_v59  ;;  %v3203_v62 = vsel %vm3201_vm6, %v3202_v28, %v3200_v50 }
 0x550   :  { %v4101_v5 = vadd.f32 %v4100_v18, %v4099_v6  ;;  %v3265_v29 = vmul.f32 %v3203_v62, %v2848_v49 }
 0x551   :  { %v3207_v11 = vsel %vm3206_vm7, %v7089_v13, %v3205_v55  ;;  %4981 = vrsqrt.f32 %v3009_v54  ;;  %vm3227_vm13 = vcmp.eq.f32.partialorder %v3009_v54, inf  ;;  %vm3229_vm14 = vcmp.eq.f32.partialorder %v3009_v54, 0.0 }
 0x552   :  { %v3012_v31 = vadd.f32 1e-08, %v4101_v5  ;;  %v3210_v39 = vsel %vm3208_vm8, %v3209_v12, %v3207_v11  ;;  %v3297_v14 = vadd.f32 %v7073_v2, %v3265_v29 }
 0x553   :  { %v3266_v42 = vmul.f32 %v3210_v39, %v2849_v41  ;;  %v4978_v24 = vpop.eup %4977 }
 0x554   :  { %4983 = vrsqrt.f32 %v3012_v31  ;;  %3329 = vst [vmem:[#allocation10 + $0xd0] sm:$0xff] %v3297_v14  ;;  %v3212_v53 = vmul.f32 %v4978_v24, %v7105_v25  ;;  %vm3234_vm15 = vcmp.eq.f32.partialorder %v3012_v31, inf  ;;  %v3237_v35 = vand.u32 2147483648, %v3012_v31 }
 0x555   :  { %v3298_v61 = vadd.f32 %v7081_v46, %v3266_v42  ;;  %v3223_v46 = vand.u32 2147483648, %v7111_v58  ;;  %vm3236_vm0 = vcmp.eq.f32.partialorder %v3012_v31, 0.0 }
 0x556   :  { %v4980_v10 = vpop.eup %4979  ;;  %v3214_v13 = vsel %vm3213_vm9, %v7105_v25, %v3212_v53  ;;  %v3230_v25 = vand.u32 2147483648, %v3009_v54 }
 0x557   :  { %3330 = vst [vmem:[#allocation10 + $0xd8] sm:$0xff] %v3298_v61  ;;  %v3219_v2 = vmul.f32 %v4980_v10, %v7111_v58  ;;  %v3217_v0 = vsel %vm3215_vm10, %v3216_v23, %v3214_v13 }
 0x558   :  { %v3267_v16 = vmul.f32 %v3217_v0, %v2850_v8 }
 0x559   :  { %v3221_v15 = vsel %vm3220_vm11, %v7111_v58, %v3219_v2 }
 0x55a   :  { %v3224_v19 = vsel %vm3222_vm12, %v3223_v46, %v3221_v15  ;;  %v3299_v43 = vadd.f32 %v7095_v48, %v3267_v16 }
 0x55b   :  { %v3268_v63 = vmul.f32 %v3224_v19, %v2851_v36  ;;  %v4982_v27 = vpop.eup %4981 }
 0x55c   :  { %3331 = vst [vmem:[#allocation10 + $0xe0] sm:$0xff] %v3299_v43  ;;  %v3226_v52 = vmul.f32 %v4982_v27, %v3009_v54 }
 0x55d   :  { %v3300_v34 = vadd.f32 %v7103_v20, %v3268_v63 }
 0x55e   :  { %v4984_v4 = vpop.eup %4983  ;;  %v3228_v47 = vsel %vm3227_vm13, %v3009_v54, %v3226_v52 }
 0x55f   :  { %3332 = vst [vmem:[#allocation10 + $0xe8] sm:$0xff] %v3300_v34  ;;  %v3233_v40 = vmul.f32 %v4984_v4, %v3012_v31  ;;  %v3231_v1 = vsel %vm3229_vm14, %v3230_v25, %v3228_v47 }
 0x560   :  { %v3269_v17 = vmul.f32 %v3231_v1, %v2852_v21 }
 0x561   :  { %v3235_v48 = vsel %vm3234_vm15, %v3012_v31, %v3233_v40 }
 0x562   :  { %v3238_v58 = vsel %vm3236_vm0, %v3237_v35, %v3235_v48  ;;  %v3301_v20 = vadd.f32 %v7117_v22, %v3269_v17 }
 0x563   :  { %v3270_v56 = vmul.f32 %v3238_v58, %v2853_v38 }
 0x564   :  { %3333 = vst [vmem:[#allocation10 + $0xf0] sm:$0xff] %v3301_v20 }
 0x565   :  { %v3302_v44 = vadd.f32 %v3989_v30, %v3270_v56 }
 0x567   :  { %3334 = vst [vmem:[#allocation10 + $0xf8] sm:$0xff] %v3302_v44 }
 0x568   :  { %5148 = shalt.err (!%p5145_p8)
}
 0x569   :  { %s5149_s21 = scalar_lea.hbm %s7165_s7, 4096 }
 0x56a   :  { %p5150_p9 = scmp.ne.s32.totalorder %s7165_s7, %s5149_s21  ;;  %p5153_p10 = scmp.lt.u32.totalorder %s5149_s21, %s7165_s7 }
 0x56c   :  { %p5155_p11 = pnand %p5153_p10, %p5150_p9 }
 0x56e   :  { %5158 = shalt.err (!%p5155_p11)
}
 0x56f   :  { %3346 = dma.vmem_to_hbm [thread:$0]  %s3341_s17, 4096, %s7165_s7, [#allocation4], %s5169_s13, %s5169_s13, %s5170_s14  }
 0x570   :  { %5165 = dma.done.wait [#allocation4], 4096  }
 0x571   :  { %5166 = vsyncadd [#allocation4], 4294963200 }
 0x572   :  { %3350 = vsyncpa [#allocation3], 1 }
 0x573   :  { %3351 = vsyncpa [#allocation6], 1 }
 0x574   :  { %3352 = vsyncpa [#allocation9], 1 }
 0x575   :  { %3353 = vsyncpa [#allocation4], 1 }

</bundles_post_ra>
